<compile_context>
chip_gen: v7x
topology: tpu7x:2x2x1
jax: 0.10.0
libtpu: 0.0.40
codegen_flags: <defaults>
</compile_context>

<pallas_src>
import jax
import jax.numpy as jnp
from jax.experimental import pallas as pl
from jax.experimental.pallas import tpu as pltpu

# ---- synthetic tag vocabularies (my_dependencies / universal_tags stand-ins) ----
EMB_DIM = 128      # embedding_dim
NUM_POS = 5        # num_pos_params
NUM_DEP = 6        # num_dep_params
MAX_CH  = 3        # max children per node (padded with -1)


def dep_tree_kernel(pos_ids_ref, dep_ids_ref, children_ref,       # scalar prefetch (SMEM, 1-D)
                    emb_ref,                                       # (N, D)     this tree's embeddings
                    pos_w_ref, pos_b_ref,                          # (NUM_POS, D, D) / (NUM_POS, 1, D)
                    dep_w_ref, dep_b_ref,                          # (NUM_DEP, D, D) / (NUM_DEP, 1, D)
                    out_ref,                                       # (1, 1, D)  this tree's root output
                    z_scratch,                                     # VMEM (N, D): per-node phrase emb z
                    x_scratch):                                    # VMEM (1, D): running max for a node
    b = pl.program_id(0)
    n = z_scratch.shape[0]
    base = b * n

    def node_body(i, carry):
        # x = relu(pos_params[pos_tag](embedding))
        p = pos_ids_ref[base + i]
        e = emb_ref[pl.ds(i, 1), :]                               # (1, D)
        x = jnp.maximum(
            jnp.dot(e, pos_w_ref[p], preferred_element_type=jnp.float32)
            + pos_b_ref[p], 0.0)
        x_scratch[...] = x

        # z = max over { relu(dep_params[dep_tag[c]](z_c)) for valid children c } U { x }
        for j in range(MAX_CH):                                   # static unroll over child slots
            c = children_ref[(base + i) * MAX_CH + j]

            @pl.when(c >= 0)                                      # skip padded slots entirely
            def _():
                zc = z_scratch[pl.ds(c, 1), :]                    # (1, D) child's phrase embedding
                d = dep_ids_ref[base + c]                         # child's dep tag id
                zt = jnp.maximum(
                    jnp.dot(zc, dep_w_ref[d], preferred_element_type=jnp.float32)
                    + dep_b_ref[d], 0.0)
                x_scratch[...] = jnp.maximum(x_scratch[...], zt)

        z_scratch[pl.ds(i, 1), :] = x_scratch[...]
        return carry

    jax.lax.fori_loop(0, n, node_body, 0, unroll=True)

    # Root (last node in post-order) -> single output write per tree.
    out_ref[0] = z_scratch[pl.ds(n - 1, 1), :]


def dep_tree_forward(emb, pos_ids, dep_ids, children, pos_w, pos_b, dep_w, dep_b):
    """Batched forward over independent trees.

    emb:      [B, N, D] node word embeddings, post-order per tree (children before parents)
    pos_ids:  [B, N]    int32 POS-tag ids
    dep_ids:  [B, N]    int32 dep-tag ids (tag of the edge to the node's parent)
    children: [B, N, MAX_CH] int32 child indices, padded with -1
    pos_w/pos_b/dep_w/dep_b: torch nn.Linear layout (W is [out, in]).
    """
    bsz, n, d = emb.shape
    # Pre-transpose weights to (in, out) so the kernel does y = x @ W_T + b on the MXU.
    pos_w_t = jnp.transpose(pos_w, (0, 2, 1))
    dep_w_t = jnp.transpose(dep_w, (0, 2, 1))
    pos_b3 = pos_b.reshape(NUM_POS, 1, d)
    dep_b3 = dep_b.reshape(NUM_DEP, 1, d)

    # Flatten scalar tables to 1-D to avoid 2-D SMEM [R, 128]-word padding.
    pos_ids_flat = pos_ids.reshape(-1).astype(jnp.int32)
    dep_ids_flat = dep_ids.reshape(-1).astype(jnp.int32)
    children_flat = children.reshape(-1).astype(jnp.int32)

    grid_spec = pltpu.PrefetchScalarGridSpec(
        num_scalar_prefetch=3,
        grid=(bsz,),
        in_specs=[
            pl.BlockSpec((None, n, d),     lambda b, *_: (b, 0, 0)),   # emb[b], resident for the tree
            pl.BlockSpec((NUM_POS, d, d),  lambda b, *_: (0, 0, 0)),   # all pos W (resident)
            pl.BlockSpec((NUM_POS, 1, d),  lambda b, *_: (0, 0, 0)),   # all pos b (resident)
            pl.BlockSpec((NUM_DEP, d, d),  lambda b, *_: (0, 0, 0)),   # all dep W (resident)
            pl.BlockSpec((NUM_DEP, 1, d),  lambda b, *_: (0, 0, 0)),   # all dep b (resident)
        ],
        out_specs=pl.BlockSpec((1, 1, d), lambda b, *_: (b, 0, 0)),
        scratch_shapes=[pltpu.VMEM((n, d), jnp.float32),               # z per node
                        pltpu.VMEM((1, d), jnp.float32)],              # running max for current node
    )
    # TODO(synk): if EMB_DIM grows (>=768), cast weight tables to bf16 and/or tile dep_w's
    # D_out to stay inside v7x's 64 MiB VMEM; kept f32 here to match the f32 reference exactly.
    return pl.pallas_call(
        dep_tree_kernel,
        out_shape=jax.ShapeDtypeStruct((bsz, 1, d), jnp.float32),
        grid_spec=grid_spec,
        compiler_params=pltpu.CompilerParams(dimension_semantics=("parallel",)),
    )(pos_ids_flat, dep_ids_flat, children_flat, emb, pos_w_t, pos_b3, dep_w_t, dep_b3)


def reference_forward(emb, pos_ids, dep_ids, children_list, root,
                      pos_w, pos_b, dep_w, dep_b):
    """Pure-JAX replica of DEPTree.recur (torch semantics: y = x @ W^T + b)."""
    def recur(i):
        x = jnp.maximum(emb[i][None, :] @ pos_w[pos_ids[i]].T + pos_b[pos_ids[i]][None, :], 0.0)
        zs = []
        for c in children_list[i]:
            zc = recur(c)
            zt = jnp.maximum(zc @ dep_w[dep_ids[c]].T + dep_b[dep_ids[c]][None, :], 0.0)
            zs.append(zt)
        return jnp.max(jnp.stack(zs + [x], 0), axis=0)
    return recur(root)


if __name__ == "__main__":
    key = jax.random.PRNGKey(0)
    k_emb, k_pw, k_pb, k_dw, k_db, k_pos, k_dep = jax.random.split(key, 7)

    B, N = 2, 8  # two independent trees, N nodes each, listed in post-order (root = N-1)
    trees = [
        # tree 0: 7 <- {3, 6}; 3 <- {0, 1, 2}; 6 <- {4, 5}; 0,1,2,4,5 leaves
        {0: [], 1: [], 2: [], 3: [0, 1, 2], 4: [], 5: [], 6: [4, 5], 7: [3, 6]},
        # tree 1: 7 <- {6}; 6 <- {2, 5}; 2 <- {0, 1}; 5 <- {3, 4}
        {0: [], 1: [], 2: [0, 1], 3: [], 4: [], 5: [3, 4], 6: [2, 5], 7: [6]},
    ]
    children = -jnp.ones((B, N, MAX_CH), dtype=jnp.int32)
    for b, tr in enumerate(trees):
        for node, chs in tr.items():
            for j, c in enumerate(chs):
                children = children.at[b, node, j].set(c)

    pos_ids = jax.random.randint(k_pos, (B, N), 0, NUM_POS, dtype=jnp.int32)
    dep_ids = jax.random.randint(k_dep, (B, N), 0, NUM_DEP, dtype=jnp.int32)
    emb = jax.random.normal(k_emb, (B, N, EMB_DIM), dtype=jnp.float32)

    # nn.Linear-style deterministic init: U(-1/sqrt(D), 1/sqrt(D))
    bound = 1.0 / (EMB_DIM ** 0.5)
    pos_w = jax.random.uniform(k_pw, (NUM_POS, EMB_DIM, EMB_DIM), jnp.float32, -bound, bound)
    pos_b = jax.random.uniform(k_pb, (NUM_POS, EMB_DIM), jnp.float32, -bound, bound)
    dep_w = jax.random.uniform(k_dw, (NUM_DEP, EMB_DIM, EMB_DIM), jnp.float32, -bound, bound)
    dep_b = jax.random.uniform(k_db, (NUM_DEP, EMB_DIM), jnp.float32, -bound, bound)

    out = dep_tree_forward(emb, pos_ids, dep_ids, children, pos_w, pos_b, dep_w, dep_b)
    out = jax.block_until_ready(out)
    assert out.shape == (B, 1, EMB_DIM)

    for b in range(B):
        pos_host = [int(v) for v in pos_ids[b]]
        dep_host = [int(v) for v in dep_ids[b]]
        ref = reference_forward(emb[b], pos_host, dep_host, trees[b], N - 1,
                                pos_w, pos_b, dep_w, dep_b)
        ref = jax.block_until_ready(ref)
        assert jnp.allclose(out[b], ref, rtol=1e-5, atol=1e-5), f"mismatch vs reference, tree {b}"
    print("KERNEL_OK")
</pallas_src>

<mosaic_0001>
module attributes {stable_mosaic.version = 11 : i64} {
  func.func @dep_tree_kernel(%arg0: i32, %arg1: memref<16xi32, #tpu.memory_space<smem>>, %arg2: memref<16xi32, #tpu.memory_space<smem>>, %arg3: memref<48xi32, #tpu.memory_space<smem>>, %arg4: memref<1x8x128xf32, #tpu.memory_space<vmem>>, %arg5: memref<5x128x128xf32, #tpu.memory_space<vmem>>, %arg6: memref<5x1x128xf32, #tpu.memory_space<vmem>>, %arg7: memref<6x128x128xf32, #tpu.memory_space<vmem>>, %arg8: memref<6x1x128xf32, #tpu.memory_space<vmem>>, %arg9: memref<1x1x128xf32, #tpu.memory_space<vmem>>, %arg10: memref<8x128xf32, #tpu.memory_space<vmem>>, %arg11: memref<1x128xf32, #tpu.memory_space<vmem>>) attributes {dimension_semantics = [#tpu.dimension_semantics<parallel>], iteration_bounds = array<i64: 2>, scalar_prefetch = 3 : i64, scratch_operands = 2 : i64, tpu.core_type = #tpu.core_type<tc>, window_params = [{transform_indices = @transform_0, window_bounds = array<i64: 1, 8, 128>}, {pipeline_mode = #tpu.pipeline_mode<synchronous>, transform_indices = @transform_1, window_bounds = array<i64: 5, 128, 128>}, {pipeline_mode = #tpu.pipeline_mode<synchronous>, transform_indices = @transform_2, window_bounds = array<i64: 5, 1, 128>}, {pipeline_mode = #tpu.pipeline_mode<synchronous>, transform_indices = @transform_3, window_bounds = array<i64: 6, 128, 128>}, {pipeline_mode = #tpu.pipeline_mode<synchronous>, transform_indices = @transform_4, window_bounds = array<i64: 6, 1, 128>}, {transform_indices = @transform_5, window_bounds = array<i64: 1, 1, 128>}]} {
    %c8_i32 = arith.constant 8 : i32
    %0 = arith.muli %arg0, %c8_i32 : i32
    %c0_i32 = arith.constant 0 : i32
    %1 = arith.addi %0, %c0_i32 : i32
    %2 = arith.index_cast %1 : i32 to index
    %3 = memref.load %arg1[%2] : memref<16xi32, #tpu.memory_space<smem>>
    %c0 = arith.constant 0 : index
    %4 = arith.index_cast %c0_i32 : i32 to index
    %c0_0 = arith.constant 0 : index
    %5 = vector.load %arg4[%c0, %4, %c0_0] : memref<1x8x128xf32, #tpu.memory_space<vmem>>, vector<1x1x128xf32>
    %6 = vector.shape_cast %5 : vector<1x1x128xf32> to vector<1x128xf32>
    %7 = arith.index_cast %3 : i32 to index
    %c0_1 = arith.constant 0 : index
    %c0_2 = arith.constant 0 : index
    %8 = vector.load %arg5[%7, %c0_1, %c0_2] : memref<5x128x128xf32, #tpu.memory_space<vmem>>, vector<1x128x128xf32>
    %9 = vector.shape_cast %8 : vector<1x128x128xf32> to vector<128x128xf32>
    %cst = arith.constant dense<0.000000e+00> : vector<1x128xf32>
    %10 = tpu.matmul %6, %9, %cst {dimension_numbers = #tpu.dot_dimension_numbers<[1], [0], [0], [1], [0, 0, 1, 1], [], []>} : vector<1x128xf32>, vector<128x128xf32>, vector<1x128xf32> -> vector<1x128xf32>
    %11 = arith.index_cast %3 : i32 to index
    %c0_3 = arith.constant 0 : index
    %c0_4 = arith.constant 0 : index
    %12 = vector.load %arg6[%11, %c0_3, %c0_4] : memref<5x1x128xf32, #tpu.memory_space<vmem>>, vector<1x1x128xf32>
    %13 = vector.shape_cast %12 : vector<1x1x128xf32> to vector<1x128xf32>
    %14 = arith.addf %10, %13 : vector<1x128xf32>
    %cst_5 = arith.constant 0.000000e+00 : f32
    %15 = vector.broadcast %cst_5 : f32 to vector<1x128xf32>
    %16 = arith.maximumf %14, %15 : vector<1x128xf32>
    %c0_6 = arith.constant 0 : index
    %c0_7 = arith.constant 0 : index
    %17 = vector.load %arg11[%c0_6, %c0_7] : memref<1x128xf32, #tpu.memory_space<vmem>>, vector<1x128xf32>
    tpu.vector_store %arg11[%c0_6, %c0_7], %16 {strides = array<i32>} : memref<1x128xf32, #tpu.memory_space<vmem>>, vector<1x128xf32>,
    %18 = arith.addi %0, %c0_i32 : i32
    %c3_i32 = arith.constant 3 : i32
    %19 = arith.muli %18, %c3_i32 : i32
    %c0_i32_8 = arith.constant 0 : i32
    %20 = arith.addi %19, %c0_i32_8 : i32
    %21 = arith.index_cast %20 : i32 to index
    %22 = memref.load %arg3[%21] : memref<48xi32, #tpu.memory_space<smem>>
    %c0_i32_9 = arith.constant 0 : i32
    %23 = arith.cmpi sge, %22, %c0_i32_9 : i32
    %24 = arith.extui %23 : i1 to i32
    %c0_i32_10 = arith.constant 0 : i32
    %25 = arith.cmpi ne, %24, %c0_i32_10 : i32
    scf.if %25 {
      %357 = arith.index_cast %22 : i32 to index
      %c0_203 = arith.constant 0 : index
      %358 = vector.load %arg10[%357, %c0_203] : memref<8x128xf32, #tpu.memory_space<vmem>>, vector<1x128xf32>
      %359 = arith.addi %0, %22 : i32
      %360 = arith.index_cast %359 : i32 to index
      %361 = memref.load %arg2[%360] : memref<16xi32, #tpu.memory_space<smem>>
      %362 = arith.index_cast %361 : i32 to index
      %c0_204 = arith.constant 0 : index
      %c0_205 = arith.constant 0 : index
      %363 = vector.load %arg7[%362, %c0_204, %c0_205] : memref<6x128x128xf32, #tpu.memory_space<vmem>>, vector<1x128x128xf32>
      %364 = vector.shape_cast %363 : vector<1x128x128xf32> to vector<128x128xf32>
      %cst_206 = arith.constant dense<0.000000e+00> : vector<1x128xf32>
      %365 = tpu.matmul %358, %364, %cst_206 {dimension_numbers = #tpu.dot_dimension_numbers<[1], [0], [0], [1], [0, 0, 1, 1], [], []>} : vector<1x128xf32>, vector<128x128xf32>, vector<1x128xf32> -> vector<1x128xf32>
      %366 = arith.index_cast %361 : i32 to index
      %c0_207 = arith.constant 0 : index
      %c0_208 = arith.constant 0 : index
      %367 = vector.load %arg8[%366, %c0_207, %c0_208] : memref<6x1x128xf32, #tpu.memory_space<vmem>>, vector<1x1x128xf32>
      %368 = vector.shape_cast %367 : vector<1x1x128xf32> to vector<1x128xf32>
      %369 = arith.addf %365, %368 : vector<1x128xf32>
      %cst_209 = arith.constant 0.000000e+00 : f32
      %370 = vector.broadcast %cst_209 : f32 to vector<1x128xf32>
      %371 = arith.maximumf %369, %370 : vector<1x128xf32>
      %c0_210 = arith.constant 0 : index
      %c0_211 = arith.constant 0 : index
      %372 = vector.load %arg11[%c0_210, %c0_211] : memref<1x128xf32, #tpu.memory_space<vmem>>, vector<1x128xf32>
      %373 = arith.maximumf %372, %371 : vector<1x128xf32>
      %c0_212 = arith.constant 0 : index
      %c0_213 = arith.constant 0 : index
      %374 = vector.load %arg11[%c0_212, %c0_213] : memref<1x128xf32, #tpu.memory_space<vmem>>, vector<1x128xf32>
      tpu.vector_store %arg11[%c0_212, %c0_213], %373 {strides = array<i32>} : memref<1x128xf32, #tpu.memory_space<vmem>>, vector<1x128xf32>,
    } else {
    }
    %26 = arith.addi %0, %c0_i32 : i32
    %c3_i32_11 = arith.constant 3 : i32
    %27 = arith.muli %26, %c3_i32_11 : i32
    %c1_i32 = arith.constant 1 : i32
    %28 = arith.addi %27, %c1_i32 : i32
    %29 = arith.index_cast %28 : i32 to index
    %30 = memref.load %arg3[%29] : memref<48xi32, #tpu.memory_space<smem>>
    %c0_i32_12 = arith.constant 0 : i32
    %31 = arith.cmpi sge, %30, %c0_i32_12 : i32
    %32 = arith.extui %31 : i1 to i32
    %c0_i32_13 = arith.constant 0 : i32
    %33 = arith.cmpi ne, %32, %c0_i32_13 : i32
    scf.if %33 {
      %357 = arith.index_cast %30 : i32 to index
      %c0_203 = arith.constant 0 : index
      %358 = vector.load %arg10[%357, %c0_203] : memref<8x128xf32, #tpu.memory_space<vmem>>, vector<1x128xf32>
      %359 = arith.addi %0, %30 : i32
      %360 = arith.index_cast %359 : i32 to index
      %361 = memref.load %arg2[%360] : memref<16xi32, #tpu.memory_space<smem>>
      %362 = arith.index_cast %361 : i32 to index
      %c0_204 = arith.constant 0 : index
      %c0_205 = arith.constant 0 : index
      %363 = vector.load %arg7[%362, %c0_204, %c0_205] : memref<6x128x128xf32, #tpu.memory_space<vmem>>, vector<1x128x128xf32>
      %364 = vector.shape_cast %363 : vector<1x128x128xf32> to vector<128x128xf32>
      %cst_206 = arith.constant dense<0.000000e+00> : vector<1x128xf32>
      %365 = tpu.matmul %358, %364, %cst_206 {dimension_numbers = #tpu.dot_dimension_numbers<[1], [0], [0], [1], [0, 0, 1, 1], [], []>} : vector<1x128xf32>, vector<128x128xf32>, vector<1x128xf32> -> vector<1x128xf32>
      %366 = arith.index_cast %361 : i32 to index
      %c0_207 = arith.constant 0 : index
      %c0_208 = arith.constant 0 : index
      %367 = vector.load %arg8[%366, %c0_207, %c0_208] : memref<6x1x128xf32, #tpu.memory_space<vmem>>, vector<1x1x128xf32>
      %368 = vector.shape_cast %367 : vector<1x1x128xf32> to vector<1x128xf32>
      %369 = arith.addf %365, %368 : vector<1x128xf32>
      %cst_209 = arith.constant 0.000000e+00 : f32
      %370 = vector.broadcast %cst_209 : f32 to vector<1x128xf32>
      %371 = arith.maximumf %369, %370 : vector<1x128xf32>
      %c0_210 = arith.constant 0 : index
      %c0_211 = arith.constant 0 : index
      %372 = vector.load %arg11[%c0_210, %c0_211] : memref<1x128xf32, #tpu.memory_space<vmem>>, vector<1x128xf32>
      %373 = arith.maximumf %372, %371 : vector<1x128xf32>
      %c0_212 = arith.constant 0 : index
      %c0_213 = arith.constant 0 : index
      %374 = vector.load %arg11[%c0_212, %c0_213] : memref<1x128xf32, #tpu.memory_space<vmem>>, vector<1x128xf32>
      tpu.vector_store %arg11[%c0_212, %c0_213], %373 {strides = array<i32>} : memref<1x128xf32, #tpu.memory_space<vmem>>, vector<1x128xf32>,
    } else {
    }
    %34 = arith.addi %0, %c0_i32 : i32
    %c3_i32_14 = arith.constant 3 : i32
    %35 = arith.muli %34, %c3_i32_14 : i32
    %c2_i32 = arith.constant 2 : i32
    %36 = arith.addi %35, %c2_i32 : i32
    %37 = arith.index_cast %36 : i32 to index
    %38 = memref.load %arg3[%37] : memref<48xi32, #tpu.memory_space<smem>>
    %c0_i32_15 = arith.constant 0 : i32
    %39 = arith.cmpi sge, %38, %c0_i32_15 : i32
    %40 = arith.extui %39 : i1 to i32
    %c0_i32_16 = arith.constant 0 : i32
    %41 = arith.cmpi ne, %40, %c0_i32_16 : i32
    scf.if %41 {
      %357 = arith.index_cast %38 : i32 to index
      %c0_203 = arith.constant 0 : index
      %358 = vector.load %arg10[%357, %c0_203] : memref<8x128xf32, #tpu.memory_space<vmem>>, vector<1x128xf32>
      %359 = arith.addi %0, %38 : i32
      %360 = arith.index_cast %359 : i32 to index
      %361 = memref.load %arg2[%360] : memref<16xi32, #tpu.memory_space<smem>>
      %362 = arith.index_cast %361 : i32 to index
      %c0_204 = arith.constant 0 : index
      %c0_205 = arith.constant 0 : index
      %363 = vector.load %arg7[%362, %c0_204, %c0_205] : memref<6x128x128xf32, #tpu.memory_space<vmem>>, vector<1x128x128xf32>
      %364 = vector.shape_cast %363 : vector<1x128x128xf32> to vector<128x128xf32>
      %cst_206 = arith.constant dense<0.000000e+00> : vector<1x128xf32>
      %365 = tpu.matmul %358, %364, %cst_206 {dimension_numbers = #tpu.dot_dimension_numbers<[1], [0], [0], [1], [0, 0, 1, 1], [], []>} : vector<1x128xf32>, vector<128x128xf32>, vector<1x128xf32> -> vector<1x128xf32>
      %366 = arith.index_cast %361 : i32 to index
      %c0_207 = arith.constant 0 : index
      %c0_208 = arith.constant 0 : index
      %367 = vector.load %arg8[%366, %c0_207, %c0_208] : memref<6x1x128xf32, #tpu.memory_space<vmem>>, vector<1x1x128xf32>
      %368 = vector.shape_cast %367 : vector<1x1x128xf32> to vector<1x128xf32>
      %369 = arith.addf %365, %368 : vector<1x128xf32>
      %cst_209 = arith.constant 0.000000e+00 : f32
      %370 = vector.broadcast %cst_209 : f32 to vector<1x128xf32>
      %371 = arith.maximumf %369, %370 : vector<1x128xf32>
      %c0_210 = arith.constant 0 : index
      %c0_211 = arith.constant 0 : index
      %372 = vector.load %arg11[%c0_210, %c0_211] : memref<1x128xf32, #tpu.memory_space<vmem>>, vector<1x128xf32>
      %373 = arith.maximumf %372, %371 : vector<1x128xf32>
      %c0_212 = arith.constant 0 : index
      %c0_213 = arith.constant 0 : index
      %374 = vector.load %arg11[%c0_212, %c0_213] : memref<1x128xf32, #tpu.memory_space<vmem>>, vector<1x128xf32>
      tpu.vector_store %arg11[%c0_212, %c0_213], %373 {strides = array<i32>} : memref<1x128xf32, #tpu.memory_space<vmem>>, vector<1x128xf32>,
    } else {
    }
    %c0_17 = arith.constant 0 : index
    %c0_18 = arith.constant 0 : index
    %42 = vector.load %arg11[%c0_17, %c0_18] : memref<1x128xf32, #tpu.memory_space<vmem>>, vector<1x128xf32>
    %43 = arith.index_cast %c0_i32 : i32 to index
    %c0_19 = arith.constant 0 : index
    %44 = vector.load %arg10[%43, %c0_19] : memref<8x128xf32, #tpu.memory_space<vmem>>, vector<1x128xf32>
    tpu.vector_store %arg10[%43, %c0_19], %42 {strides = array<i32>} : memref<8x128xf32, #tpu.memory_space<vmem>>, vector<1x128xf32>,
    %c1_i32_20 = arith.constant 1 : i32
    %45 = arith.addi %0, %c1_i32_20 : i32
    %46 = arith.index_cast %45 : i32 to index
    %47 = memref.load %arg1[%46] : memref<16xi32, #tpu.memory_space<smem>>
    %c0_21 = arith.constant 0 : index
    %48 = arith.index_cast %c1_i32_20 : i32 to index
    %c0_22 = arith.constant 0 : index
    %49 = vector.load %arg4[%c0_21, %48, %c0_22] : memref<1x8x128xf32, #tpu.memory_space<vmem>>, vector<1x1x128xf32>
    %50 = vector.shape_cast %49 : vector<1x1x128xf32> to vector<1x128xf32>
    %51 = arith.index_cast %47 : i32 to index
    %c0_23 = arith.constant 0 : index
    %c0_24 = arith.constant 0 : index
    %52 = vector.load %arg5[%51, %c0_23, %c0_24] : memref<5x128x128xf32, #tpu.memory_space<vmem>>, vector<1x128x128xf32>
    %53 = vector.shape_cast %52 : vector<1x128x128xf32> to vector<128x128xf32>
    %cst_25 = arith.constant dense<0.000000e+00> : vector<1x128xf32>
    %54 = tpu.matmul %50, %53, %cst_25 {dimension_numbers = #tpu.dot_dimension_numbers<[1], [0], [0], [1], [0, 0, 1, 1], [], []>} : vector<1x128xf32>, vector<128x128xf32>, vector<1x128xf32> -> vector<1x128xf32>
    %55 = arith.index_cast %47 : i32 to index
    %c0_26 = arith.constant 0 : index
    %c0_27 = arith.constant 0 : index
    %56 = vector.load %arg6[%55, %c0_26, %c0_27] : memref<5x1x128xf32, #tpu.memory_space<vmem>>, vector<1x1x128xf32>
    %57 = vector.shape_cast %56 : vector<1x1x128xf32> to vector<1x128xf32>
    %58 = arith.addf %54, %57 : vector<1x128xf32>
    %cst_28 = arith.constant 0.000000e+00 : f32
    %59 = vector.broadcast %cst_28 : f32 to vector<1x128xf32>
    %60 = arith.maximumf %58, %59 : vector<1x128xf32>
    %c0_29 = arith.constant 0 : index
    %c0_30 = arith.constant 0 : index
    %61 = vector.load %arg11[%c0_29, %c0_30] : memref<1x128xf32, #tpu.memory_space<vmem>>, vector<1x128xf32>
    tpu.vector_store %arg11[%c0_29, %c0_30], %60 {strides = array<i32>} : memref<1x128xf32, #tpu.memory_space<vmem>>, vector<1x128xf32>,
    %62 = arith.addi %0, %c1_i32_20 : i32
    %c3_i32_31 = arith.constant 3 : i32
    %63 = arith.muli %62, %c3_i32_31 : i32
    %c0_i32_32 = arith.constant 0 : i32
    %64 = arith.addi %63, %c0_i32_32 : i32
    %65 = arith.index_cast %64 : i32 to index
    %66 = memref.load %arg3[%65] : memref<48xi32, #tpu.memory_space<smem>>
    %c0_i32_33 = arith.constant 0 : i32
    %67 = arith.cmpi sge, %66, %c0_i32_33 : i32
    %68 = arith.extui %67 : i1 to i32
    %c0_i32_34 = arith.constant 0 : i32
    %69 = arith.cmpi ne, %68, %c0_i32_34 : i32
    scf.if %69 {
      %357 = arith.index_cast %66 : i32 to index
      %c0_203 = arith.constant 0 : index
      %358 = vector.load %arg10[%357, %c0_203] : memref<8x128xf32, #tpu.memory_space<vmem>>, vector<1x128xf32>
      %359 = arith.addi %0, %66 : i32
      %360 = arith.index_cast %359 : i32 to index
      %361 = memref.load %arg2[%360] : memref<16xi32, #tpu.memory_space<smem>>
      %362 = arith.index_cast %361 : i32 to index
      %c0_204 = arith.constant 0 : index
      %c0_205 = arith.constant 0 : index
      %363 = vector.load %arg7[%362, %c0_204, %c0_205] : memref<6x128x128xf32, #tpu.memory_space<vmem>>, vector<1x128x128xf32>
      %364 = vector.shape_cast %363 : vector<1x128x128xf32> to vector<128x128xf32>
      %cst_206 = arith.constant dense<0.000000e+00> : vector<1x128xf32>
      %365 = tpu.matmul %358, %364, %cst_206 {dimension_numbers = #tpu.dot_dimension_numbers<[1], [0], [0], [1], [0, 0, 1, 1], [], []>} : vector<1x128xf32>, vector<128x128xf32>, vector<1x128xf32> -> vector<1x128xf32>
      %366 = arith.index_cast %361 : i32 to index
      %c0_207 = arith.constant 0 : index
      %c0_208 = arith.constant 0 : index
      %367 = vector.load %arg8[%366, %c0_207, %c0_208] : memref<6x1x128xf32, #tpu.memory_space<vmem>>, vector<1x1x128xf32>
      %368 = vector.shape_cast %367 : vector<1x1x128xf32> to vector<1x128xf32>
      %369 = arith.addf %365, %368 : vector<1x128xf32>
      %cst_209 = arith.constant 0.000000e+00 : f32
      %370 = vector.broadcast %cst_209 : f32 to vector<1x128xf32>
      %371 = arith.maximumf %369, %370 : vector<1x128xf32>
      %c0_210 = arith.constant 0 : index
      %c0_211 = arith.constant 0 : index
      %372 = vector.load %arg11[%c0_210, %c0_211] : memref<1x128xf32, #tpu.memory_space<vmem>>, vector<1x128xf32>
      %373 = arith.maximumf %372, %371 : vector<1x128xf32>
      %c0_212 = arith.constant 0 : index
      %c0_213 = arith.constant 0 : index
      %374 = vector.load %arg11[%c0_212, %c0_213] : memref<1x128xf32, #tpu.memory_space<vmem>>, vector<1x128xf32>
      tpu.vector_store %arg11[%c0_212, %c0_213], %373 {strides = array<i32>} : memref<1x128xf32, #tpu.memory_space<vmem>>, vector<1x128xf32>,
    } else {
    }
    %70 = arith.addi %0, %c1_i32_20 : i32
    %c3_i32_35 = arith.constant 3 : i32
    %71 = arith.muli %70, %c3_i32_35 : i32
    %c1_i32_36 = arith.constant 1 : i32
    %72 = arith.addi %71, %c1_i32_36 : i32
    %73 = arith.index_cast %72 : i32 to index
    %74 = memref.load %arg3[%73] : memref<48xi32, #tpu.memory_space<smem>>
    %c0_i32_37 = arith.constant 0 : i32
    %75 = arith.cmpi sge, %74, %c0_i32_37 : i32
    %76 = arith.extui %75 : i1 to i32
    %c0_i32_38 = arith.constant 0 : i32
    %77 = arith.cmpi ne, %76, %c0_i32_38 : i32
    scf.if %77 {
      %357 = arith.index_cast %74 : i32 to index
      %c0_203 = arith.constant 0 : index
      %358 = vector.load %arg10[%357, %c0_203] : memref<8x128xf32, #tpu.memory_space<vmem>>, vector<1x128xf32>
      %359 = arith.addi %0, %74 : i32
      %360 = arith.index_cast %359 : i32 to index
      %361 = memref.load %arg2[%360] : memref<16xi32, #tpu.memory_space<smem>>
      %362 = arith.index_cast %361 : i32 to index
      %c0_204 = arith.constant 0 : index
      %c0_205 = arith.constant 0 : index
      %363 = vector.load %arg7[%362, %c0_204, %c0_205] : memref<6x128x128xf32, #tpu.memory_space<vmem>>, vector<1x128x128xf32>
      %364 = vector.shape_cast %363 : vector<1x128x128xf32> to vector<128x128xf32>
      %cst_206 = arith.constant dense<0.000000e+00> : vector<1x128xf32>
      %365 = tpu.matmul %358, %364, %cst_206 {dimension_numbers = #tpu.dot_dimension_numbers<[1], [0], [0], [1], [0, 0, 1, 1], [], []>} : vector<1x128xf32>, vector<128x128xf32>, vector<1x128xf32> -> vector<1x128xf32>
      %366 = arith.index_cast %361 : i32 to index
      %c0_207 = arith.constant 0 : index
      %c0_208 = arith.constant 0 : index
      %367 = vector.load %arg8[%366, %c0_207, %c0_208] : memref<6x1x128xf32, #tpu.memory_space<vmem>>, vector<1x1x128xf32>
      %368 = vector.shape_cast %367 : vector<1x1x128xf32> to vector<1x128xf32>
      %369 = arith.addf %365, %368 : vector<1x128xf32>
      %cst_209 = arith.constant 0.000000e+00 : f32
      %370 = vector.broadcast %cst_209 : f32 to vector<1x128xf32>
      %371 = arith.maximumf %369, %370 : vector<1x128xf32>
      %c0_210 = arith.constant 0 : index
      %c0_211 = arith.constant 0 : index
      %372 = vector.load %arg11[%c0_210, %c0_211] : memref<1x128xf32, #tpu.memory_space<vmem>>, vector<1x128xf32>
      %373 = arith.maximumf %372, %371 : vector<1x128xf32>
      %c0_212 = arith.constant 0 : index
      %c0_213 = arith.constant 0 : index
      %374 = vector.load %arg11[%c0_212, %c0_213] : memref<1x128xf32, #tpu.memory_space<vmem>>, vector<1x128xf32>
      tpu.vector_store %arg11[%c0_212, %c0_213], %373 {strides = array<i32>} : memref<1x128xf32, #tpu.memory_space<vmem>>, vector<1x128xf32>,
    } else {
    }
    %78 = arith.addi %0, %c1_i32_20 : i32
    %c3_i32_39 = arith.constant 3 : i32
    %79 = arith.muli %78, %c3_i32_39 : i32
    %c2_i32_40 = arith.constant 2 : i32
    %80 = arith.addi %79, %c2_i32_40 : i32
    %81 = arith.index_cast %80 : i32 to index
    %82 = memref.load %arg3[%81] : memref<48xi32, #tpu.memory_space<smem>>
    %c0_i32_41 = arith.constant 0 : i32
    %83 = arith.cmpi sge, %82, %c0_i32_41 : i32
    %84 = arith.extui %83 : i1 to i32
    %c0_i32_42 = arith.constant 0 : i32
    %85 = arith.cmpi ne, %84, %c0_i32_42 : i32
    scf.if %85 {
      %357 = arith.index_cast %82 : i32 to index
      %c0_203 = arith.constant 0 : index
      %358 = vector.load %arg10[%357, %c0_203] : memref<8x128xf32, #tpu.memory_space<vmem>>, vector<1x128xf32>
      %359 = arith.addi %0, %82 : i32
      %360 = arith.index_cast %359 : i32 to index
      %361 = memref.load %arg2[%360] : memref<16xi32, #tpu.memory_space<smem>>
      %362 = arith.index_cast %361 : i32 to index
      %c0_204 = arith.constant 0 : index
      %c0_205 = arith.constant 0 : index
      %363 = vector.load %arg7[%362, %c0_204, %c0_205] : memref<6x128x128xf32, #tpu.memory_space<vmem>>, vector<1x128x128xf32>
      %364 = vector.shape_cast %363 : vector<1x128x128xf32> to vector<128x128xf32>
      %cst_206 = arith.constant dense<0.000000e+00> : vector<1x128xf32>
      %365 = tpu.matmul %358, %364, %cst_206 {dimension_numbers = #tpu.dot_dimension_numbers<[1], [0], [0], [1], [0, 0, 1, 1], [], []>} : vector<1x128xf32>, vector<128x128xf32>, vector<1x128xf32> -> vector<1x128xf32>
      %366 = arith.index_cast %361 : i32 to index
      %c0_207 = arith.constant 0 : index
      %c0_208 = arith.constant 0 : index
      %367 = vector.load %arg8[%366, %c0_207, %c0_208] : memref<6x1x128xf32, #tpu.memory_space<vmem>>, vector<1x1x128xf32>
      %368 = vector.shape_cast %367 : vector<1x1x128xf32> to vector<1x128xf32>
      %369 = arith.addf %365, %368 : vector<1x128xf32>
      %cst_209 = arith.constant 0.000000e+00 : f32
      %370 = vector.broadcast %cst_209 : f32 to vector<1x128xf32>
      %371 = arith.maximumf %369, %370 : vector<1x128xf32>
      %c0_210 = arith.constant 0 : index
      %c0_211 = arith.constant 0 : index
      %372 = vector.load %arg11[%c0_210, %c0_211] : memref<1x128xf32, #tpu.memory_space<vmem>>, vector<1x128xf32>
      %373 = arith.maximumf %372, %371 : vector<1x128xf32>
      %c0_212 = arith.constant 0 : index
      %c0_213 = arith.constant 0 : index
      %374 = vector.load %arg11[%c0_212, %c0_213] : memref<1x128xf32, #tpu.memory_space<vmem>>, vector<1x128xf32>
      tpu.vector_store %arg11[%c0_212, %c0_213], %373 {strides = array<i32>} : memref<1x128xf32, #tpu.memory_space<vmem>>, vector<1x128xf32>,
    } else {
    }
    %c0_43 = arith.constant 0 : index
    %c0_44 = arith.constant 0 : index
    %86 = vector.load %arg11[%c0_43, %c0_44] : memref<1x128xf32, #tpu.memory_space<vmem>>, vector<1x128xf32>
    %87 = arith.index_cast %c1_i32_20 : i32 to index
    %c0_45 = arith.constant 0 : index
    %88 = vector.load %arg10[%87, %c0_45] : memref<8x128xf32, #tpu.memory_space<vmem>>, vector<1x128xf32>
    tpu.vector_store %arg10[%87, %c0_45], %86 {strides = array<i32>} : memref<8x128xf32, #tpu.memory_space<vmem>>, vector<1x128xf32>,
    %c2_i32_46 = arith.constant 2 : i32
    %89 = arith.addi %0, %c2_i32_46 : i32
    %90 = arith.index_cast %89 : i32 to index
    %91 = memref.load %arg1[%90] : memref<16xi32, #tpu.memory_space<smem>>
    %c0_47 = arith.constant 0 : index
    %92 = arith.index_cast %c2_i32_46 : i32 to index
    %c0_48 = arith.constant 0 : index
    %93 = vector.load %arg4[%c0_47, %92, %c0_48] : memref<1x8x128xf32, #tpu.memory_space<vmem>>, vector<1x1x128xf32>
    %94 = vector.shape_cast %93 : vector<1x1x128xf32> to vector<1x128xf32>
    %95 = arith.index_cast %91 : i32 to index
    %c0_49 = arith.constant 0 : index
    %c0_50 = arith.constant 0 : index
    %96 = vector.load %arg5[%95, %c0_49, %c0_50] : memref<5x128x128xf32, #tpu.memory_space<vmem>>, vector<1x128x128xf32>
    %97 = vector.shape_cast %96 : vector<1x128x128xf32> to vector<128x128xf32>
    %cst_51 = arith.constant dense<0.000000e+00> : vector<1x128xf32>
    %98 = tpu.matmul %94, %97, %cst_51 {dimension_numbers = #tpu.dot_dimension_numbers<[1], [0], [0], [1], [0, 0, 1, 1], [], []>} : vector<1x128xf32>, vector<128x128xf32>, vector<1x128xf32> -> vector<1x128xf32>
    %99 = arith.index_cast %91 : i32 to index
    %c0_52 = arith.constant 0 : index
    %c0_53 = arith.constant 0 : index
    %100 = vector.load %arg6[%99, %c0_52, %c0_53] : memref<5x1x128xf32, #tpu.memory_space<vmem>>, vector<1x1x128xf32>
    %101 = vector.shape_cast %100 : vector<1x1x128xf32> to vector<1x128xf32>
    %102 = arith.addf %98, %101 : vector<1x128xf32>
    %cst_54 = arith.constant 0.000000e+00 : f32
    %103 = vector.broadcast %cst_54 : f32 to vector<1x128xf32>
    %104 = arith.maximumf %102, %103 : vector<1x128xf32>
    %c0_55 = arith.constant 0 : index
    %c0_56 = arith.constant 0 : index
    %105 = vector.load %arg11[%c0_55, %c0_56] : memref<1x128xf32, #tpu.memory_space<vmem>>, vector<1x128xf32>
    tpu.vector_store %arg11[%c0_55, %c0_56], %104 {strides = array<i32>} : memref<1x128xf32, #tpu.memory_space<vmem>>, vector<1x128xf32>,
    %106 = arith.addi %0, %c2_i32_46 : i32
    %c3_i32_57 = arith.constant 3 : i32
    %107 = arith.muli %106, %c3_i32_57 : i32
    %c0_i32_58 = arith.constant 0 : i32
    %108 = arith.addi %107, %c0_i32_58 : i32
    %109 = arith.index_cast %108 : i32 to index
    %110 = memref.load %arg3[%109] : memref<48xi32, #tpu.memory_space<smem>>
    %c0_i32_59 = arith.constant 0 : i32
    %111 = arith.cmpi sge, %110, %c0_i32_59 : i32
    %112 = arith.extui %111 : i1 to i32
    %c0_i32_60 = arith.constant 0 : i32
    %113 = arith.cmpi ne, %112, %c0_i32_60 : i32
    scf.if %113 {
      %357 = arith.index_cast %110 : i32 to index
      %c0_203 = arith.constant 0 : index
      %358 = vector.load %arg10[%357, %c0_203] : memref<8x128xf32, #tpu.memory_space<vmem>>, vector<1x128xf32>
      %359 = arith.addi %0, %110 : i32
      %360 = arith.index_cast %359 : i32 to index
      %361 = memref.load %arg2[%360] : memref<16xi32, #tpu.memory_space<smem>>
      %362 = arith.index_cast %361 : i32 to index
      %c0_204 = arith.constant 0 : index
      %c0_205 = arith.constant 0 : index
      %363 = vector.load %arg7[%362, %c0_204, %c0_205] : memref<6x128x128xf32, #tpu.memory_space<vmem>>, vector<1x128x128xf32>
      %364 = vector.shape_cast %363 : vector<1x128x128xf32> to vector<128x128xf32>
      %cst_206 = arith.constant dense<0.000000e+00> : vector<1x128xf32>
      %365 = tpu.matmul %358, %364, %cst_206 {dimension_numbers = #tpu.dot_dimension_numbers<[1], [0], [0], [1], [0, 0, 1, 1], [], []>} : vector<1x128xf32>, vector<128x128xf32>, vector<1x128xf32> -> vector<1x128xf32>
      %366 = arith.index_cast %361 : i32 to index
      %c0_207 = arith.constant 0 : index
      %c0_208 = arith.constant 0 : index
      %367 = vector.load %arg8[%366, %c0_207, %c0_208] : memref<6x1x128xf32, #tpu.memory_space<vmem>>, vector<1x1x128xf32>
      %368 = vector.shape_cast %367 : vector<1x1x128xf32> to vector<1x128xf32>
      %369 = arith.addf %365, %368 : vector<1x128xf32>
      %cst_209 = arith.constant 0.000000e+00 : f32
      %370 = vector.broadcast %cst_209 : f32 to vector<1x128xf32>
      %371 = arith.maximumf %369, %370 : vector<1x128xf32>
      %c0_210 = arith.constant 0 : index
      %c0_211 = arith.constant 0 : index
      %372 = vector.load %arg11[%c0_210, %c0_211] : memref<1x128xf32, #tpu.memory_space<vmem>>, vector<1x128xf32>
      %373 = arith.maximumf %372, %371 : vector<1x128xf32>
      %c0_212 = arith.constant 0 : index
      %c0_213 = arith.constant 0 : index
      %374 = vector.load %arg11[%c0_212, %c0_213] : memref<1x128xf32, #tpu.memory_space<vmem>>, vector<1x128xf32>
      tpu.vector_store %arg11[%c0_212, %c0_213], %373 {strides = array<i32>} : memref<1x128xf32, #tpu.memory_space<vmem>>, vector<1x128xf32>,
    } else {
    }
    %114 = arith.addi %0, %c2_i32_46 : i32
    %c3_i32_61 = arith.constant 3 : i32
    %115 = arith.muli %114, %c3_i32_61 : i32
    %c1_i32_62 = arith.constant 1 : i32
    %116 = arith.addi %115, %c1_i32_62 : i32
    %117 = arith.index_cast %116 : i32 to index
    %118 = memref.load %arg3[%117] : memref<48xi32, #tpu.memory_space<smem>>
    %c0_i32_63 = arith.constant 0 : i32
    %119 = arith.cmpi sge, %118, %c0_i32_63 : i32
    %120 = arith.extui %119 : i1 to i32
    %c0_i32_64 = arith.constant 0 : i32
    %121 = arith.cmpi ne, %120, %c0_i32_64 : i32
    scf.if %121 {
      %357 = arith.index_cast %118 : i32 to index
      %c0_203 = arith.constant 0 : index
      %358 = vector.load %arg10[%357, %c0_203] : memref<8x128xf32, #tpu.memory_space<vmem>>, vector<1x128xf32>
      %359 = arith.addi %0, %118 : i32
      %360 = arith.index_cast %359 : i32 to index
      %361 = memref.load %arg2[%360] : memref<16xi32, #tpu.memory_space<smem>>
      %362 = arith.index_cast %361 : i32 to index
      %c0_204 = arith.constant 0 : index
      %c0_205 = arith.constant 0 : index
      %363 = vector.load %arg7[%362, %c0_204, %c0_205] : memref<6x128x128xf32, #tpu.memory_space<vmem>>, vector<1x128x128xf32>
      %364 = vector.shape_cast %363 : vector<1x128x128xf32> to vector<128x128xf32>
      %cst_206 = arith.constant dense<0.000000e+00> : vector<1x128xf32>
      %365 = tpu.matmul %358, %364, %cst_206 {dimension_numbers = #tpu.dot_dimension_numbers<[1], [0], [0], [1], [0, 0, 1, 1], [], []>} : vector<1x128xf32>, vector<128x128xf32>, vector<1x128xf32> -> vector<1x128xf32>
      %366 = arith.index_cast %361 : i32 to index
      %c0_207 = arith.constant 0 : index
      %c0_208 = arith.constant 0 : index
      %367 = vector.load %arg8[%366, %c0_207, %c0_208] : memref<6x1x128xf32, #tpu.memory_space<vmem>>, vector<1x1x128xf32>
      %368 = vector.shape_cast %367 : vector<1x1x128xf32> to vector<1x128xf32>
      %369 = arith.addf %365, %368 : vector<1x128xf32>
      %cst_209 = arith.constant 0.000000e+00 : f32
      %370 = vector.broadcast %cst_209 : f32 to vector<1x128xf32>
      %371 = arith.maximumf %369, %370 : vector<1x128xf32>
      %c0_210 = arith.constant 0 : index
      %c0_211 = arith.constant 0 : index
      %372 = vector.load %arg11[%c0_210, %c0_211] : memref<1x128xf32, #tpu.memory_space<vmem>>, vector<1x128xf32>
      %373 = arith.maximumf %372, %371 : vector<1x128xf32>
      %c0_212 = arith.constant 0 : index
      %c0_213 = arith.constant 0 : index
      %374 = vector.load %arg11[%c0_212, %c0_213] : memref<1x128xf32, #tpu.memory_space<vmem>>, vector<1x128xf32>
      tpu.vector_store %arg11[%c0_212, %c0_213], %373 {strides = array<i32>} : memref<1x128xf32, #tpu.memory_space<vmem>>, vector<1x128xf32>,
    } else {
    }
    %122 = arith.addi %0, %c2_i32_46 : i32
    %c3_i32_65 = arith.constant 3 : i32
    %123 = arith.muli %122, %c3_i32_65 : i32
    %c2_i32_66 = arith.constant 2 : i32
    %124 = arith.addi %123, %c2_i32_66 : i32
    %125 = arith.index_cast %124 : i32 to index
    %126 = memref.load %arg3[%125] : memref<48xi32, #tpu.memory_space<smem>>
    %c0_i32_67 = arith.constant 0 : i32
    %127 = arith.cmpi sge, %126, %c0_i32_67 : i32
    %128 = arith.extui %127 : i1 to i32
    %c0_i32_68 = arith.constant 0 : i32
    %129 = arith.cmpi ne, %128, %c0_i32_68 : i32
    scf.if %129 {
      %357 = arith.index_cast %126 : i32 to index
      %c0_203 = arith.constant 0 : index
      %358 = vector.load %arg10[%357, %c0_203] : memref<8x128xf32, #tpu.memory_space<vmem>>, vector<1x128xf32>
      %359 = arith.addi %0, %126 : i32
      %360 = arith.index_cast %359 : i32 to index
      %361 = memref.load %arg2[%360] : memref<16xi32, #tpu.memory_space<smem>>
      %362 = arith.index_cast %361 : i32 to index
      %c0_204 = arith.constant 0 : index
      %c0_205 = arith.constant 0 : index
      %363 = vector.load %arg7[%362, %c0_204, %c0_205] : memref<6x128x128xf32, #tpu.memory_space<vmem>>, vector<1x128x128xf32>
      %364 = vector.shape_cast %363 : vector<1x128x128xf32> to vector<128x128xf32>
      %cst_206 = arith.constant dense<0.000000e+00> : vector<1x128xf32>
      %365 = tpu.matmul %358, %364, %cst_206 {dimension_numbers = #tpu.dot_dimension_numbers<[1], [0], [0], [1], [0, 0, 1, 1], [], []>} : vector<1x128xf32>, vector<128x128xf32>, vector<1x128xf32> -> vector<1x128xf32>
      %366 = arith.index_cast %361 : i32 to index
      %c0_207 = arith.constant 0 : index
      %c0_208 = arith.constant 0 : index
      %367 = vector.load %arg8[%366, %c0_207, %c0_208] : memref<6x1x128xf32, #tpu.memory_space<vmem>>, vector<1x1x128xf32>
      %368 = vector.shape_cast %367 : vector<1x1x128xf32> to vector<1x128xf32>
      %369 = arith.addf %365, %368 : vector<1x128xf32>
      %cst_209 = arith.constant 0.000000e+00 : f32
      %370 = vector.broadcast %cst_209 : f32 to vector<1x128xf32>
      %371 = arith.maximumf %369, %370 : vector<1x128xf32>
      %c0_210 = arith.constant 0 : index
      %c0_211 = arith.constant 0 : index
      %372 = vector.load %arg11[%c0_210, %c0_211] : memref<1x128xf32, #tpu.memory_space<vmem>>, vector<1x128xf32>
      %373 = arith.maximumf %372, %371 : vector<1x128xf32>
      %c0_212 = arith.constant 0 : index
      %c0_213 = arith.constant 0 : index
      %374 = vector.load %arg11[%c0_212, %c0_213] : memref<1x128xf32, #tpu.memory_space<vmem>>, vector<1x128xf32>
      tpu.vector_store %arg11[%c0_212, %c0_213], %373 {strides = array<i32>} : memref<1x128xf32, #tpu.memory_space<vmem>>, vector<1x128xf32>,
    } else {
    }
    %c0_69 = arith.constant 0 : index
    %c0_70 = arith.constant 0 : index
    %130 = vector.load %arg11[%c0_69, %c0_70] : memref<1x128xf32, #tpu.memory_space<vmem>>, vector<1x128xf32>
    %131 = arith.index_cast %c2_i32_46 : i32 to index
    %c0_71 = arith.constant 0 : index
    %132 = vector.load %arg10[%131, %c0_71] : memref<8x128xf32, #tpu.memory_space<vmem>>, vector<1x128xf32>
    tpu.vector_store %arg10[%131, %c0_71], %130 {strides = array<i32>} : memref<8x128xf32, #tpu.memory_space<vmem>>, vector<1x128xf32>,
    %c3_i32_72 = arith.constant 3 : i32
    %133 = arith.addi %0, %c3_i32_72 : i32
    %134 = arith.index_cast %133 : i32 to index
    %135 = memref.load %arg1[%134] : memref<16xi32, #tpu.memory_space<smem>>
    %c0_73 = arith.constant 0 : index
    %136 = arith.index_cast %c3_i32_72 : i32 to index
    %c0_74 = arith.constant 0 : index
    %137 = vector.load %arg4[%c0_73, %136, %c0_74] : memref<1x8x128xf32, #tpu.memory_space<vmem>>, vector<1x1x128xf32>
    %138 = vector.shape_cast %137 : vector<1x1x128xf32> to vector<1x128xf32>
    %139 = arith.index_cast %135 : i32 to index
    %c0_75 = arith.constant 0 : index
    %c0_76 = arith.constant 0 : index
    %140 = vector.load %arg5[%139, %c0_75, %c0_76] : memref<5x128x128xf32, #tpu.memory_space<vmem>>, vector<1x128x128xf32>
    %141 = vector.shape_cast %140 : vector<1x128x128xf32> to vector<128x128xf32>
    %cst_77 = arith.constant dense<0.000000e+00> : vector<1x128xf32>
    %142 = tpu.matmul %138, %141, %cst_77 {dimension_numbers = #tpu.dot_dimension_numbers<[1], [0], [0], [1], [0, 0, 1, 1], [], []>} : vector<1x128xf32>, vector<128x128xf32>, vector<1x128xf32> -> vector<1x128xf32>
    %143 = arith.index_cast %135 : i32 to index
    %c0_78 = arith.constant 0 : index
    %c0_79 = arith.constant 0 : index
    %144 = vector.load %arg6[%143, %c0_78, %c0_79] : memref<5x1x128xf32, #tpu.memory_space<vmem>>, vector<1x1x128xf32>
    %145 = vector.shape_cast %144 : vector<1x1x128xf32> to vector<1x128xf32>
    %146 = arith.addf %142, %145 : vector<1x128xf32>
    %cst_80 = arith.constant 0.000000e+00 : f32
    %147 = vector.broadcast %cst_80 : f32 to vector<1x128xf32>
    %148 = arith.maximumf %146, %147 : vector<1x128xf32>
    %c0_81 = arith.constant 0 : index
    %c0_82 = arith.constant 0 : index
    %149 = vector.load %arg11[%c0_81, %c0_82] : memref<1x128xf32, #tpu.memory_space<vmem>>, vector<1x128xf32>
    tpu.vector_store %arg11[%c0_81, %c0_82], %148 {strides = array<i32>} : memref<1x128xf32, #tpu.memory_space<vmem>>, vector<1x128xf32>,
    %150 = arith.addi %0, %c3_i32_72 : i32
    %c3_i32_83 = arith.constant 3 : i32
    %151 = arith.muli %150, %c3_i32_83 : i32
    %c0_i32_84 = arith.constant 0 : i32
    %152 = arith.addi %151, %c0_i32_84 : i32
    %153 = arith.index_cast %152 : i32 to index
    %154 = memref.load %arg3[%153] : memref<48xi32, #tpu.memory_space<smem>>
    %c0_i32_85 = arith.constant 0 : i32
    %155 = arith.cmpi sge, %154, %c0_i32_85 : i32
    %156 = arith.extui %155 : i1 to i32
    %c0_i32_86 = arith.constant 0 : i32
    %157 = arith.cmpi ne, %156, %c0_i32_86 : i32
    scf.if %157 {
      %357 = arith.index_cast %154 : i32 to index
      %c0_203 = arith.constant 0 : index
      %358 = vector.load %arg10[%357, %c0_203] : memref<8x128xf32, #tpu.memory_space<vmem>>, vector<1x128xf32>
      %359 = arith.addi %0, %154 : i32
      %360 = arith.index_cast %359 : i32 to index
      %361 = memref.load %arg2[%360] : memref<16xi32, #tpu.memory_space<smem>>
      %362 = arith.index_cast %361 : i32 to index
      %c0_204 = arith.constant 0 : index
      %c0_205 = arith.constant 0 : index
      %363 = vector.load %arg7[%362, %c0_204, %c0_205] : memref<6x128x128xf32, #tpu.memory_space<vmem>>, vector<1x128x128xf32>
      %364 = vector.shape_cast %363 : vector<1x128x128xf32> to vector<128x128xf32>
      %cst_206 = arith.constant dense<0.000000e+00> : vector<1x128xf32>
      %365 = tpu.matmul %358, %364, %cst_206 {dimension_numbers = #tpu.dot_dimension_numbers<[1], [0], [0], [1], [0, 0, 1, 1], [], []>} : vector<1x128xf32>, vector<128x128xf32>, vector<1x128xf32> -> vector<1x128xf32>
      %366 = arith.index_cast %361 : i32 to index
      %c0_207 = arith.constant 0 : index
      %c0_208 = arith.constant 0 : index
      %367 = vector.load %arg8[%366, %c0_207, %c0_208] : memref<6x1x128xf32, #tpu.memory_space<vmem>>, vector<1x1x128xf32>
      %368 = vector.shape_cast %367 : vector<1x1x128xf32> to vector<1x128xf32>
      %369 = arith.addf %365, %368 : vector<1x128xf32>
      %cst_209 = arith.constant 0.000000e+00 : f32
      %370 = vector.broadcast %cst_209 : f32 to vector<1x128xf32>
      %371 = arith.maximumf %369, %370 : vector<1x128xf32>
      %c0_210 = arith.constant 0 : index
      %c0_211 = arith.constant 0 : index
      %372 = vector.load %arg11[%c0_210, %c0_211] : memref<1x128xf32, #tpu.memory_space<vmem>>, vector<1x128xf32>
      %373 = arith.maximumf %372, %371 : vector<1x128xf32>
      %c0_212 = arith.constant 0 : index
      %c0_213 = arith.constant 0 : index
      %374 = vector.load %arg11[%c0_212, %c0_213] : memref<1x128xf32, #tpu.memory_space<vmem>>, vector<1x128xf32>
      tpu.vector_store %arg11[%c0_212, %c0_213], %373 {strides = array<i32>} : memref<1x128xf32, #tpu.memory_space<vmem>>, vector<1x128xf32>,
    } else {
    }
    %158 = arith.addi %0, %c3_i32_72 : i32
    %c3_i32_87 = arith.constant 3 : i32
    %159 = arith.muli %158, %c3_i32_87 : i32
    %c1_i32_88 = arith.constant 1 : i32
    %160 = arith.addi %159, %c1_i32_88 : i32
    %161 = arith.index_cast %160 : i32 to index
    %162 = memref.load %arg3[%161] : memref<48xi32, #tpu.memory_space<smem>>
    %c0_i32_89 = arith.constant 0 : i32
    %163 = arith.cmpi sge, %162, %c0_i32_89 : i32
    %164 = arith.extui %163 : i1 to i32
    %c0_i32_90 = arith.constant 0 : i32
    %165 = arith.cmpi ne, %164, %c0_i32_90 : i32
    scf.if %165 {
      %357 = arith.index_cast %162 : i32 to index
      %c0_203 = arith.constant 0 : index
      %358 = vector.load %arg10[%357, %c0_203] : memref<8x128xf32, #tpu.memory_space<vmem>>, vector<1x128xf32>
      %359 = arith.addi %0, %162 : i32
      %360 = arith.index_cast %359 : i32 to index
      %361 = memref.load %arg2[%360] : memref<16xi32, #tpu.memory_space<smem>>
      %362 = arith.index_cast %361 : i32 to index
      %c0_204 = arith.constant 0 : index
      %c0_205 = arith.constant 0 : index
      %363 = vector.load %arg7[%362, %c0_204, %c0_205] : memref<6x128x128xf32, #tpu.memory_space<vmem>>, vector<1x128x128xf32>
      %364 = vector.shape_cast %363 : vector<1x128x128xf32> to vector<128x128xf32>
      %cst_206 = arith.constant dense<0.000000e+00> : vector<1x128xf32>
      %365 = tpu.matmul %358, %364, %cst_206 {dimension_numbers = #tpu.dot_dimension_numbers<[1], [0], [0], [1], [0, 0, 1, 1], [], []>} : vector<1x128xf32>, vector<128x128xf32>, vector<1x128xf32> -> vector<1x128xf32>
      %366 = arith.index_cast %361 : i32 to index
      %c0_207 = arith.constant 0 : index
      %c0_208 = arith.constant 0 : index
      %367 = vector.load %arg8[%366, %c0_207, %c0_208] : memref<6x1x128xf32, #tpu.memory_space<vmem>>, vector<1x1x128xf32>
      %368 = vector.shape_cast %367 : vector<1x1x128xf32> to vector<1x128xf32>
      %369 = arith.addf %365, %368 : vector<1x128xf32>
      %cst_209 = arith.constant 0.000000e+00 : f32
      %370 = vector.broadcast %cst_209 : f32 to vector<1x128xf32>
      %371 = arith.maximumf %369, %370 : vector<1x128xf32>
      %c0_210 = arith.constant 0 : index
      %c0_211 = arith.constant 0 : index
      %372 = vector.load %arg11[%c0_210, %c0_211] : memref<1x128xf32, #tpu.memory_space<vmem>>, vector<1x128xf32>
      %373 = arith.maximumf %372, %371 : vector<1x128xf32>
      %c0_212 = arith.constant 0 : index
      %c0_213 = arith.constant 0 : index
      %374 = vector.load %arg11[%c0_212, %c0_213] : memref<1x128xf32, #tpu.memory_space<vmem>>, vector<1x128xf32>
      tpu.vector_store %arg11[%c0_212, %c0_213], %373 {strides = array<i32>} : memref<1x128xf32, #tpu.memory_space<vmem>>, vector<1x128xf32>,
    } else {
    }
    %166 = arith.addi %0, %c3_i32_72 : i32
    %c3_i32_91 = arith.constant 3 : i32
    %167 = arith.muli %166, %c3_i32_91 : i32
    %c2_i32_92 = arith.constant 2 : i32
    %168 = arith.addi %167, %c2_i32_92 : i32
    %169 = arith.index_cast %168 : i32 to index
    %170 = memref.load %arg3[%169] : memref<48xi32, #tpu.memory_space<smem>>
    %c0_i32_93 = arith.constant 0 : i32
    %171 = arith.cmpi sge, %170, %c0_i32_93 : i32
    %172 = arith.extui %171 : i1 to i32
    %c0_i32_94 = arith.constant 0 : i32
    %173 = arith.cmpi ne, %172, %c0_i32_94 : i32
    scf.if %173 {
      %357 = arith.index_cast %170 : i32 to index
      %c0_203 = arith.constant 0 : index
      %358 = vector.load %arg10[%357, %c0_203] : memref<8x128xf32, #tpu.memory_space<vmem>>, vector<1x128xf32>
      %359 = arith.addi %0, %170 : i32
      %360 = arith.index_cast %359 : i32 to index
      %361 = memref.load %arg2[%360] : memref<16xi32, #tpu.memory_space<smem>>
      %362 = arith.index_cast %361 : i32 to index
      %c0_204 = arith.constant 0 : index
      %c0_205 = arith.constant 0 : index
      %363 = vector.load %arg7[%362, %c0_204, %c0_205] : memref<6x128x128xf32, #tpu.memory_space<vmem>>, vector<1x128x128xf32>
      %364 = vector.shape_cast %363 : vector<1x128x128xf32> to vector<128x128xf32>
      %cst_206 = arith.constant dense<0.000000e+00> : vector<1x128xf32>
      %365 = tpu.matmul %358, %364, %cst_206 {dimension_numbers = #tpu.dot_dimension_numbers<[1], [0], [0], [1], [0, 0, 1, 1], [], []>} : vector<1x128xf32>, vector<128x128xf32>, vector<1x128xf32> -> vector<1x128xf32>
      %366 = arith.index_cast %361 : i32 to index
      %c0_207 = arith.constant 0 : index
      %c0_208 = arith.constant 0 : index
      %367 = vector.load %arg8[%366, %c0_207, %c0_208] : memref<6x1x128xf32, #tpu.memory_space<vmem>>, vector<1x1x128xf32>
      %368 = vector.shape_cast %367 : vector<1x1x128xf32> to vector<1x128xf32>
      %369 = arith.addf %365, %368 : vector<1x128xf32>
      %cst_209 = arith.constant 0.000000e+00 : f32
      %370 = vector.broadcast %cst_209 : f32 to vector<1x128xf32>
      %371 = arith.maximumf %369, %370 : vector<1x128xf32>
      %c0_210 = arith.constant 0 : index
      %c0_211 = arith.constant 0 : index
      %372 = vector.load %arg11[%c0_210, %c0_211] : memref<1x128xf32, #tpu.memory_space<vmem>>, vector<1x128xf32>
      %373 = arith.maximumf %372, %371 : vector<1x128xf32>
      %c0_212 = arith.constant 0 : index
      %c0_213 = arith.constant 0 : index
      %374 = vector.load %arg11[%c0_212, %c0_213] : memref<1x128xf32, #tpu.memory_space<vmem>>, vector<1x128xf32>
      tpu.vector_store %arg11[%c0_212, %c0_213], %373 {strides = array<i32>} : memref<1x128xf32, #tpu.memory_space<vmem>>, vector<1x128xf32>,
    } else {
    }
    %c0_95 = arith.constant 0 : index
    %c0_96 = arith.constant 0 : index
    %174 = vector.load %arg11[%c0_95, %c0_96] : memref<1x128xf32, #tpu.memory_space<vmem>>, vector<1x128xf32>
    %175 = arith.index_cast %c3_i32_72 : i32 to index
    %c0_97 = arith.constant 0 : index
    %176 = vector.load %arg10[%175, %c0_97] : memref<8x128xf32, #tpu.memory_space<vmem>>, vector<1x128xf32>
    tpu.vector_store %arg10[%175, %c0_97], %174 {strides = array<i32>} : memref<8x128xf32, #tpu.memory_space<vmem>>, vector<1x128xf32>,
    %c4_i32 = arith.constant 4 : i32
    %177 = arith.addi %0, %c4_i32 : i32
    %178 = arith.index_cast %177 : i32 to index
    %179 = memref.load %arg1[%178] : memref<16xi32, #tpu.memory_space<smem>>
    %c0_98 = arith.constant 0 : index
    %180 = arith.index_cast %c4_i32 : i32 to index
    %c0_99 = arith.constant 0 : index
    %181 = vector.load %arg4[%c0_98, %180, %c0_99] : memref<1x8x128xf32, #tpu.memory_space<vmem>>, vector<1x1x128xf32>
    %182 = vector.shape_cast %181 : vector<1x1x128xf32> to vector<1x128xf32>
    %183 = arith.index_cast %179 : i32 to index
    %c0_100 = arith.constant 0 : index
    %c0_101 = arith.constant 0 : index
    %184 = vector.load %arg5[%183, %c0_100, %c0_101] : memref<5x128x128xf32, #tpu.memory_space<vmem>>, vector<1x128x128xf32>
    %185 = vector.shape_cast %184 : vector<1x128x128xf32> to vector<128x128xf32>
    %cst_102 = arith.constant dense<0.000000e+00> : vector<1x128xf32>
    %186 = tpu.matmul %182, %185, %cst_102 {dimension_numbers = #tpu.dot_dimension_numbers<[1], [0], [0], [1], [0, 0, 1, 1], [], []>} : vector<1x128xf32>, vector<128x128xf32>, vector<1x128xf32> -> vector<1x128xf32>
    %187 = arith.index_cast %179 : i32 to index
    %c0_103 = arith.constant 0 : index
    %c0_104 = arith.constant 0 : index
    %188 = vector.load %arg6[%187, %c0_103, %c0_104] : memref<5x1x128xf32, #tpu.memory_space<vmem>>, vector<1x1x128xf32>
    %189 = vector.shape_cast %188 : vector<1x1x128xf32> to vector<1x128xf32>
    %190 = arith.addf %186, %189 : vector<1x128xf32>
    %cst_105 = arith.constant 0.000000e+00 : f32
    %191 = vector.broadcast %cst_105 : f32 to vector<1x128xf32>
    %192 = arith.maximumf %190, %191 : vector<1x128xf32>
    %c0_106 = arith.constant 0 : index
    %c0_107 = arith.constant 0 : index
    %193 = vector.load %arg11[%c0_106, %c0_107] : memref<1x128xf32, #tpu.memory_space<vmem>>, vector<1x128xf32>
    tpu.vector_store %arg11[%c0_106, %c0_107], %192 {strides = array<i32>} : memref<1x128xf32, #tpu.memory_space<vmem>>, vector<1x128xf32>,
    %194 = arith.addi %0, %c4_i32 : i32
    %c3_i32_108 = arith.constant 3 : i32
    %195 = arith.muli %194, %c3_i32_108 : i32
    %c0_i32_109 = arith.constant 0 : i32
    %196 = arith.addi %195, %c0_i32_109 : i32
    %197 = arith.index_cast %196 : i32 to index
    %198 = memref.load %arg3[%197] : memref<48xi32, #tpu.memory_space<smem>>
    %c0_i32_110 = arith.constant 0 : i32
    %199 = arith.cmpi sge, %198, %c0_i32_110 : i32
    %200 = arith.extui %199 : i1 to i32
    %c0_i32_111 = arith.constant 0 : i32
    %201 = arith.cmpi ne, %200, %c0_i32_111 : i32
    scf.if %201 {
      %357 = arith.index_cast %198 : i32 to index
      %c0_203 = arith.constant 0 : index
      %358 = vector.load %arg10[%357, %c0_203] : memref<8x128xf32, #tpu.memory_space<vmem>>, vector<1x128xf32>
      %359 = arith.addi %0, %198 : i32
      %360 = arith.index_cast %359 : i32 to index
      %361 = memref.load %arg2[%360] : memref<16xi32, #tpu.memory_space<smem>>
      %362 = arith.index_cast %361 : i32 to index
      %c0_204 = arith.constant 0 : index
      %c0_205 = arith.constant 0 : index
      %363 = vector.load %arg7[%362, %c0_204, %c0_205] : memref<6x128x128xf32, #tpu.memory_space<vmem>>, vector<1x128x128xf32>
      %364 = vector.shape_cast %363 : vector<1x128x128xf32> to vector<128x128xf32>
      %cst_206 = arith.constant dense<0.000000e+00> : vector<1x128xf32>
      %365 = tpu.matmul %358, %364, %cst_206 {dimension_numbers = #tpu.dot_dimension_numbers<[1], [0], [0], [1], [0, 0, 1, 1], [], []>} : vector<1x128xf32>, vector<128x128xf32>, vector<1x128xf32> -> vector<1x128xf32>
      %366 = arith.index_cast %361 : i32 to index
      %c0_207 = arith.constant 0 : index
      %c0_208 = arith.constant 0 : index
      %367 = vector.load %arg8[%366, %c0_207, %c0_208] : memref<6x1x128xf32, #tpu.memory_space<vmem>>, vector<1x1x128xf32>
      %368 = vector.shape_cast %367 : vector<1x1x128xf32> to vector<1x128xf32>
      %369 = arith.addf %365, %368 : vector<1x128xf32>
      %cst_209 = arith.constant 0.000000e+00 : f32
      %370 = vector.broadcast %cst_209 : f32 to vector<1x128xf32>
      %371 = arith.maximumf %369, %370 : vector<1x128xf32>
      %c0_210 = arith.constant 0 : index
      %c0_211 = arith.constant 0 : index
      %372 = vector.load %arg11[%c0_210, %c0_211] : memref<1x128xf32, #tpu.memory_space<vmem>>, vector<1x128xf32>
      %373 = arith.maximumf %372, %371 : vector<1x128xf32>
      %c0_212 = arith.constant 0 : index
      %c0_213 = arith.constant 0 : index
      %374 = vector.load %arg11[%c0_212, %c0_213] : memref<1x128xf32, #tpu.memory_space<vmem>>, vector<1x128xf32>
      tpu.vector_store %arg11[%c0_212, %c0_213], %373 {strides = array<i32>} : memref<1x128xf32, #tpu.memory_space<vmem>>, vector<1x128xf32>,
    } else {
    }
    %202 = arith.addi %0, %c4_i32 : i32
    %c3_i32_112 = arith.constant 3 : i32
    %203 = arith.muli %202, %c3_i32_112 : i32
    %c1_i32_113 = arith.constant 1 : i32
    %204 = arith.addi %203, %c1_i32_113 : i32
    %205 = arith.index_cast %204 : i32 to index
    %206 = memref.load %arg3[%205] : memref<48xi32, #tpu.memory_space<smem>>
    %c0_i32_114 = arith.constant 0 : i32
    %207 = arith.cmpi sge, %206, %c0_i32_114 : i32
    %208 = arith.extui %207 : i1 to i32
    %c0_i32_115 = arith.constant 0 : i32
    %209 = arith.cmpi ne, %208, %c0_i32_115 : i32
    scf.if %209 {
      %357 = arith.index_cast %206 : i32 to index
      %c0_203 = arith.constant 0 : index
      %358 = vector.load %arg10[%357, %c0_203] : memref<8x128xf32, #tpu.memory_space<vmem>>, vector<1x128xf32>
      %359 = arith.addi %0, %206 : i32
      %360 = arith.index_cast %359 : i32 to index
      %361 = memref.load %arg2[%360] : memref<16xi32, #tpu.memory_space<smem>>
      %362 = arith.index_cast %361 : i32 to index
      %c0_204 = arith.constant 0 : index
      %c0_205 = arith.constant 0 : index
      %363 = vector.load %arg7[%362, %c0_204, %c0_205] : memref<6x128x128xf32, #tpu.memory_space<vmem>>, vector<1x128x128xf32>
      %364 = vector.shape_cast %363 : vector<1x128x128xf32> to vector<128x128xf32>
      %cst_206 = arith.constant dense<0.000000e+00> : vector<1x128xf32>
      %365 = tpu.matmul %358, %364, %cst_206 {dimension_numbers = #tpu.dot_dimension_numbers<[1], [0], [0], [1], [0, 0, 1, 1], [], []>} : vector<1x128xf32>, vector<128x128xf32>, vector<1x128xf32> -> vector<1x128xf32>
      %366 = arith.index_cast %361 : i32 to index
      %c0_207 = arith.constant 0 : index
      %c0_208 = arith.constant 0 : index
      %367 = vector.load %arg8[%366, %c0_207, %c0_208] : memref<6x1x128xf32, #tpu.memory_space<vmem>>, vector<1x1x128xf32>
      %368 = vector.shape_cast %367 : vector<1x1x128xf32> to vector<1x128xf32>
      %369 = arith.addf %365, %368 : vector<1x128xf32>
      %cst_209 = arith.constant 0.000000e+00 : f32
      %370 = vector.broadcast %cst_209 : f32 to vector<1x128xf32>
      %371 = arith.maximumf %369, %370 : vector<1x128xf32>
      %c0_210 = arith.constant 0 : index
      %c0_211 = arith.constant 0 : index
      %372 = vector.load %arg11[%c0_210, %c0_211] : memref<1x128xf32, #tpu.memory_space<vmem>>, vector<1x128xf32>
      %373 = arith.maximumf %372, %371 : vector<1x128xf32>
      %c0_212 = arith.constant 0 : index
      %c0_213 = arith.constant 0 : index
      %374 = vector.load %arg11[%c0_212, %c0_213] : memref<1x128xf32, #tpu.memory_space<vmem>>, vector<1x128xf32>
      tpu.vector_store %arg11[%c0_212, %c0_213], %373 {strides = array<i32>} : memref<1x128xf32, #tpu.memory_space<vmem>>, vector<1x128xf32>,
    } else {
    }
    %210 = arith.addi %0, %c4_i32 : i32
    %c3_i32_116 = arith.constant 3 : i32
    %211 = arith.muli %210, %c3_i32_116 : i32
    %c2_i32_117 = arith.constant 2 : i32
    %212 = arith.addi %211, %c2_i32_117 : i32
    %213 = arith.index_cast %212 : i32 to index
    %214 = memref.load %arg3[%213] : memref<48xi32, #tpu.memory_space<smem>>
    %c0_i32_118 = arith.constant 0 : i32
    %215 = arith.cmpi sge, %214, %c0_i32_118 : i32
    %216 = arith.extui %215 : i1 to i32
    %c0_i32_119 = arith.constant 0 : i32
    %217 = arith.cmpi ne, %216, %c0_i32_119 : i32
    scf.if %217 {
      %357 = arith.index_cast %214 : i32 to index
      %c0_203 = arith.constant 0 : index
      %358 = vector.load %arg10[%357, %c0_203] : memref<8x128xf32, #tpu.memory_space<vmem>>, vector<1x128xf32>
      %359 = arith.addi %0, %214 : i32
      %360 = arith.index_cast %359 : i32 to index
      %361 = memref.load %arg2[%360] : memref<16xi32, #tpu.memory_space<smem>>
      %362 = arith.index_cast %361 : i32 to index
      %c0_204 = arith.constant 0 : index
      %c0_205 = arith.constant 0 : index
      %363 = vector.load %arg7[%362, %c0_204, %c0_205] : memref<6x128x128xf32, #tpu.memory_space<vmem>>, vector<1x128x128xf32>
      %364 = vector.shape_cast %363 : vector<1x128x128xf32> to vector<128x128xf32>
      %cst_206 = arith.constant dense<0.000000e+00> : vector<1x128xf32>
      %365 = tpu.matmul %358, %364, %cst_206 {dimension_numbers = #tpu.dot_dimension_numbers<[1], [0], [0], [1], [0, 0, 1, 1], [], []>} : vector<1x128xf32>, vector<128x128xf32>, vector<1x128xf32> -> vector<1x128xf32>
      %366 = arith.index_cast %361 : i32 to index
      %c0_207 = arith.constant 0 : index
      %c0_208 = arith.constant 0 : index
      %367 = vector.load %arg8[%366, %c0_207, %c0_208] : memref<6x1x128xf32, #tpu.memory_space<vmem>>, vector<1x1x128xf32>
      %368 = vector.shape_cast %367 : vector<1x1x128xf32> to vector<1x128xf32>
      %369 = arith.addf %365, %368 : vector<1x128xf32>
      %cst_209 = arith.constant 0.000000e+00 : f32
      %370 = vector.broadcast %cst_209 : f32 to vector<1x128xf32>
      %371 = arith.maximumf %369, %370 : vector<1x128xf32>
      %c0_210 = arith.constant 0 : index
      %c0_211 = arith.constant 0 : index
      %372 = vector.load %arg11[%c0_210, %c0_211] : memref<1x128xf32, #tpu.memory_space<vmem>>, vector<1x128xf32>
      %373 = arith.maximumf %372, %371 : vector<1x128xf32>
      %c0_212 = arith.constant 0 : index
      %c0_213 = arith.constant 0 : index
      %374 = vector.load %arg11[%c0_212, %c0_213] : memref<1x128xf32, #tpu.memory_space<vmem>>, vector<1x128xf32>
      tpu.vector_store %arg11[%c0_212, %c0_213], %373 {strides = array<i32>} : memref<1x128xf32, #tpu.memory_space<vmem>>, vector<1x128xf32>,
    } else {
    }
    %c0_120 = arith.constant 0 : index
    %c0_121 = arith.constant 0 : index
    %218 = vector.load %arg11[%c0_120, %c0_121] : memref<1x128xf32, #tpu.memory_space<vmem>>, vector<1x128xf32>
    %219 = arith.index_cast %c4_i32 : i32 to index
    %c0_122 = arith.constant 0 : index
    %220 = vector.load %arg10[%219, %c0_122] : memref<8x128xf32, #tpu.memory_space<vmem>>, vector<1x128xf32>
    tpu.vector_store %arg10[%219, %c0_122], %218 {strides = array<i32>} : memref<8x128xf32, #tpu.memory_space<vmem>>, vector<1x128xf32>,
    %c5_i32 = arith.constant 5 : i32
    %221 = arith.addi %0, %c5_i32 : i32
    %222 = arith.index_cast %221 : i32 to index
    %223 = memref.load %arg1[%222] : memref<16xi32, #tpu.memory_space<smem>>
    %c0_123 = arith.constant 0 : index
    %224 = arith.index_cast %c5_i32 : i32 to index
    %c0_124 = arith.constant 0 : index
    %225 = vector.load %arg4[%c0_123, %224, %c0_124] : memref<1x8x128xf32, #tpu.memory_space<vmem>>, vector<1x1x128xf32>
    %226 = vector.shape_cast %225 : vector<1x1x128xf32> to vector<1x128xf32>
    %227 = arith.index_cast %223 : i32 to index
    %c0_125 = arith.constant 0 : index
    %c0_126 = arith.constant 0 : index
    %228 = vector.load %arg5[%227, %c0_125, %c0_126] : memref<5x128x128xf32, #tpu.memory_space<vmem>>, vector<1x128x128xf32>
    %229 = vector.shape_cast %228 : vector<1x128x128xf32> to vector<128x128xf32>
    %cst_127 = arith.constant dense<0.000000e+00> : vector<1x128xf32>
    %230 = tpu.matmul %226, %229, %cst_127 {dimension_numbers = #tpu.dot_dimension_numbers<[1], [0], [0], [1], [0, 0, 1, 1], [], []>} : vector<1x128xf32>, vector<128x128xf32>, vector<1x128xf32> -> vector<1x128xf32>
    %231 = arith.index_cast %223 : i32 to index
    %c0_128 = arith.constant 0 : index
    %c0_129 = arith.constant 0 : index
    %232 = vector.load %arg6[%231, %c0_128, %c0_129] : memref<5x1x128xf32, #tpu.memory_space<vmem>>, vector<1x1x128xf32>
    %233 = vector.shape_cast %232 : vector<1x1x128xf32> to vector<1x128xf32>
    %234 = arith.addf %230, %233 : vector<1x128xf32>
    %cst_130 = arith.constant 0.000000e+00 : f32
    %235 = vector.broadcast %cst_130 : f32 to vector<1x128xf32>
    %236 = arith.maximumf %234, %235 : vector<1x128xf32>
    %c0_131 = arith.constant 0 : index
    %c0_132 = arith.constant 0 : index
    %237 = vector.load %arg11[%c0_131, %c0_132] : memref<1x128xf32, #tpu.memory_space<vmem>>, vector<1x128xf32>
    tpu.vector_store %arg11[%c0_131, %c0_132], %236 {strides = array<i32>} : memref<1x128xf32, #tpu.memory_space<vmem>>, vector<1x128xf32>,
    %238 = arith.addi %0, %c5_i32 : i32
    %c3_i32_133 = arith.constant 3 : i32
    %239 = arith.muli %238, %c3_i32_133 : i32
    %c0_i32_134 = arith.constant 0 : i32
    %240 = arith.addi %239, %c0_i32_134 : i32
    %241 = arith.index_cast %240 : i32 to index
    %242 = memref.load %arg3[%241] : memref<48xi32, #tpu.memory_space<smem>>
    %c0_i32_135 = arith.constant 0 : i32
    %243 = arith.cmpi sge, %242, %c0_i32_135 : i32
    %244 = arith.extui %243 : i1 to i32
    %c0_i32_136 = arith.constant 0 : i32
    %245 = arith.cmpi ne, %244, %c0_i32_136 : i32
    scf.if %245 {
      %357 = arith.index_cast %242 : i32 to index
      %c0_203 = arith.constant 0 : index
      %358 = vector.load %arg10[%357, %c0_203] : memref<8x128xf32, #tpu.memory_space<vmem>>, vector<1x128xf32>
      %359 = arith.addi %0, %242 : i32
      %360 = arith.index_cast %359 : i32 to index
      %361 = memref.load %arg2[%360] : memref<16xi32, #tpu.memory_space<smem>>
      %362 = arith.index_cast %361 : i32 to index
      %c0_204 = arith.constant 0 : index
      %c0_205 = arith.constant 0 : index
      %363 = vector.load %arg7[%362, %c0_204, %c0_205] : memref<6x128x128xf32, #tpu.memory_space<vmem>>, vector<1x128x128xf32>
      %364 = vector.shape_cast %363 : vector<1x128x128xf32> to vector<128x128xf32>
      %cst_206 = arith.constant dense<0.000000e+00> : vector<1x128xf32>
      %365 = tpu.matmul %358, %364, %cst_206 {dimension_numbers = #tpu.dot_dimension_numbers<[1], [0], [0], [1], [0, 0, 1, 1], [], []>} : vector<1x128xf32>, vector<128x128xf32>, vector<1x128xf32> -> vector<1x128xf32>
      %366 = arith.index_cast %361 : i32 to index
      %c0_207 = arith.constant 0 : index
      %c0_208 = arith.constant 0 : index
      %367 = vector.load %arg8[%366, %c0_207, %c0_208] : memref<6x1x128xf32, #tpu.memory_space<vmem>>, vector<1x1x128xf32>
      %368 = vector.shape_cast %367 : vector<1x1x128xf32> to vector<1x128xf32>
      %369 = arith.addf %365, %368 : vector<1x128xf32>
      %cst_209 = arith.constant 0.000000e+00 : f32
      %370 = vector.broadcast %cst_209 : f32 to vector<1x128xf32>
      %371 = arith.maximumf %369, %370 : vector<1x128xf32>
      %c0_210 = arith.constant 0 : index
      %c0_211 = arith.constant 0 : index
      %372 = vector.load %arg11[%c0_210, %c0_211] : memref<1x128xf32, #tpu.memory_space<vmem>>, vector<1x128xf32>
      %373 = arith.maximumf %372, %371 : vector<1x128xf32>
      %c0_212 = arith.constant 0 : index
      %c0_213 = arith.constant 0 : index
      %374 = vector.load %arg11[%c0_212, %c0_213] : memref<1x128xf32, #tpu.memory_space<vmem>>, vector<1x128xf32>
      tpu.vector_store %arg11[%c0_212, %c0_213], %373 {strides = array<i32>} : memref<1x128xf32, #tpu.memory_space<vmem>>, vector<1x128xf32>,
    } else {
    }
    %246 = arith.addi %0, %c5_i32 : i32
    %c3_i32_137 = arith.constant 3 : i32
    %247 = arith.muli %246, %c3_i32_137 : i32
    %c1_i32_138 = arith.constant 1 : i32
    %248 = arith.addi %247, %c1_i32_138 : i32
    %249 = arith.index_cast %248 : i32 to index
    %250 = memref.load %arg3[%249] : memref<48xi32, #tpu.memory_space<smem>>
    %c0_i32_139 = arith.constant 0 : i32
    %251 = arith.cmpi sge, %250, %c0_i32_139 : i32
    %252 = arith.extui %251 : i1 to i32
    %c0_i32_140 = arith.constant 0 : i32
    %253 = arith.cmpi ne, %252, %c0_i32_140 : i32
    scf.if %253 {
      %357 = arith.index_cast %250 : i32 to index
      %c0_203 = arith.constant 0 : index
      %358 = vector.load %arg10[%357, %c0_203] : memref<8x128xf32, #tpu.memory_space<vmem>>, vector<1x128xf32>
      %359 = arith.addi %0, %250 : i32
      %360 = arith.index_cast %359 : i32 to index
      %361 = memref.load %arg2[%360] : memref<16xi32, #tpu.memory_space<smem>>
      %362 = arith.index_cast %361 : i32 to index
      %c0_204 = arith.constant 0 : index
      %c0_205 = arith.constant 0 : index
      %363 = vector.load %arg7[%362, %c0_204, %c0_205] : memref<6x128x128xf32, #tpu.memory_space<vmem>>, vector<1x128x128xf32>
      %364 = vector.shape_cast %363 : vector<1x128x128xf32> to vector<128x128xf32>
      %cst_206 = arith.constant dense<0.000000e+00> : vector<1x128xf32>
      %365 = tpu.matmul %358, %364, %cst_206 {dimension_numbers = #tpu.dot_dimension_numbers<[1], [0], [0], [1], [0, 0, 1, 1], [], []>} : vector<1x128xf32>, vector<128x128xf32>, vector<1x128xf32> -> vector<1x128xf32>
      %366 = arith.index_cast %361 : i32 to index
      %c0_207 = arith.constant 0 : index
      %c0_208 = arith.constant 0 : index
      %367 = vector.load %arg8[%366, %c0_207, %c0_208] : memref<6x1x128xf32, #tpu.memory_space<vmem>>, vector<1x1x128xf32>
      %368 = vector.shape_cast %367 : vector<1x1x128xf32> to vector<1x128xf32>
      %369 = arith.addf %365, %368 : vector<1x128xf32>
      %cst_209 = arith.constant 0.000000e+00 : f32
      %370 = vector.broadcast %cst_209 : f32 to vector<1x128xf32>
      %371 = arith.maximumf %369, %370 : vector<1x128xf32>
      %c0_210 = arith.constant 0 : index
      %c0_211 = arith.constant 0 : index
      %372 = vector.load %arg11[%c0_210, %c0_211] : memref<1x128xf32, #tpu.memory_space<vmem>>, vector<1x128xf32>
      %373 = arith.maximumf %372, %371 : vector<1x128xf32>
      %c0_212 = arith.constant 0 : index
      %c0_213 = arith.constant 0 : index
      %374 = vector.load %arg11[%c0_212, %c0_213] : memref<1x128xf32, #tpu.memory_space<vmem>>, vector<1x128xf32>
      tpu.vector_store %arg11[%c0_212, %c0_213], %373 {strides = array<i32>} : memref<1x128xf32, #tpu.memory_space<vmem>>, vector<1x128xf32>,
    } else {
    }
    %254 = arith.addi %0, %c5_i32 : i32
    %c3_i32_141 = arith.constant 3 : i32
    %255 = arith.muli %254, %c3_i32_141 : i32
    %c2_i32_142 = arith.constant 2 : i32
    %256 = arith.addi %255, %c2_i32_142 : i32
    %257 = arith.index_cast %256 : i32 to index
    %258 = memref.load %arg3[%257] : memref<48xi32, #tpu.memory_space<smem>>
    %c0_i32_143 = arith.constant 0 : i32
    %259 = arith.cmpi sge, %258, %c0_i32_143 : i32
    %260 = arith.extui %259 : i1 to i32
    %c0_i32_144 = arith.constant 0 : i32
    %261 = arith.cmpi ne, %260, %c0_i32_144 : i32
    scf.if %261 {
      %357 = arith.index_cast %258 : i32 to index
      %c0_203 = arith.constant 0 : index
      %358 = vector.load %arg10[%357, %c0_203] : memref<8x128xf32, #tpu.memory_space<vmem>>, vector<1x128xf32>
      %359 = arith.addi %0, %258 : i32
      %360 = arith.index_cast %359 : i32 to index
      %361 = memref.load %arg2[%360] : memref<16xi32, #tpu.memory_space<smem>>
      %362 = arith.index_cast %361 : i32 to index
      %c0_204 = arith.constant 0 : index
      %c0_205 = arith.constant 0 : index
      %363 = vector.load %arg7[%362, %c0_204, %c0_205] : memref<6x128x128xf32, #tpu.memory_space<vmem>>, vector<1x128x128xf32>
      %364 = vector.shape_cast %363 : vector<1x128x128xf32> to vector<128x128xf32>
      %cst_206 = arith.constant dense<0.000000e+00> : vector<1x128xf32>
      %365 = tpu.matmul %358, %364, %cst_206 {dimension_numbers = #tpu.dot_dimension_numbers<[1], [0], [0], [1], [0, 0, 1, 1], [], []>} : vector<1x128xf32>, vector<128x128xf32>, vector<1x128xf32> -> vector<1x128xf32>
      %366 = arith.index_cast %361 : i32 to index
      %c0_207 = arith.constant 0 : index
      %c0_208 = arith.constant 0 : index
      %367 = vector.load %arg8[%366, %c0_207, %c0_208] : memref<6x1x128xf32, #tpu.memory_space<vmem>>, vector<1x1x128xf32>
      %368 = vector.shape_cast %367 : vector<1x1x128xf32> to vector<1x128xf32>
      %369 = arith.addf %365, %368 : vector<1x128xf32>
      %cst_209 = arith.constant 0.000000e+00 : f32
      %370 = vector.broadcast %cst_209 : f32 to vector<1x128xf32>
      %371 = arith.maximumf %369, %370 : vector<1x128xf32>
      %c0_210 = arith.constant 0 : index
      %c0_211 = arith.constant 0 : index
      %372 = vector.load %arg11[%c0_210, %c0_211] : memref<1x128xf32, #tpu.memory_space<vmem>>, vector<1x128xf32>
      %373 = arith.maximumf %372, %371 : vector<1x128xf32>
      %c0_212 = arith.constant 0 : index
      %c0_213 = arith.constant 0 : index
      %374 = vector.load %arg11[%c0_212, %c0_213] : memref<1x128xf32, #tpu.memory_space<vmem>>, vector<1x128xf32>
      tpu.vector_store %arg11[%c0_212, %c0_213], %373 {strides = array<i32>} : memref<1x128xf32, #tpu.memory_space<vmem>>, vector<1x128xf32>,
    } else {
    }
    %c0_145 = arith.constant 0 : index
    %c0_146 = arith.constant 0 : index
    %262 = vector.load %arg11[%c0_145, %c0_146] : memref<1x128xf32, #tpu.memory_space<vmem>>, vector<1x128xf32>
    %263 = arith.index_cast %c5_i32 : i32 to index
    %c0_147 = arith.constant 0 : index
    %264 = vector.load %arg10[%263, %c0_147] : memref<8x128xf32, #tpu.memory_space<vmem>>, vector<1x128xf32>
    tpu.vector_store %arg10[%263, %c0_147], %262 {strides = array<i32>} : memref<8x128xf32, #tpu.memory_space<vmem>>, vector<1x128xf32>,
    %c6_i32 = arith.constant 6 : i32
    %265 = arith.addi %0, %c6_i32 : i32
    %266 = arith.index_cast %265 : i32 to index
    %267 = memref.load %arg1[%266] : memref<16xi32, #tpu.memory_space<smem>>
    %c0_148 = arith.constant 0 : index
    %268 = arith.index_cast %c6_i32 : i32 to index
    %c0_149 = arith.constant 0 : index
    %269 = vector.load %arg4[%c0_148, %268, %c0_149] : memref<1x8x128xf32, #tpu.memory_space<vmem>>, vector<1x1x128xf32>
    %270 = vector.shape_cast %269 : vector<1x1x128xf32> to vector<1x128xf32>
    %271 = arith.index_cast %267 : i32 to index
    %c0_150 = arith.constant 0 : index
    %c0_151 = arith.constant 0 : index
    %272 = vector.load %arg5[%271, %c0_150, %c0_151] : memref<5x128x128xf32, #tpu.memory_space<vmem>>, vector<1x128x128xf32>
    %273 = vector.shape_cast %272 : vector<1x128x128xf32> to vector<128x128xf32>
    %cst_152 = arith.constant dense<0.000000e+00> : vector<1x128xf32>
    %274 = tpu.matmul %270, %273, %cst_152 {dimension_numbers = #tpu.dot_dimension_numbers<[1], [0], [0], [1], [0, 0, 1, 1], [], []>} : vector<1x128xf32>, vector<128x128xf32>, vector<1x128xf32> -> vector<1x128xf32>
    %275 = arith.index_cast %267 : i32 to index
    %c0_153 = arith.constant 0 : index
    %c0_154 = arith.constant 0 : index
    %276 = vector.load %arg6[%275, %c0_153, %c0_154] : memref<5x1x128xf32, #tpu.memory_space<vmem>>, vector<1x1x128xf32>
    %277 = vector.shape_cast %276 : vector<1x1x128xf32> to vector<1x128xf32>
    %278 = arith.addf %274, %277 : vector<1x128xf32>
    %cst_155 = arith.constant 0.000000e+00 : f32
    %279 = vector.broadcast %cst_155 : f32 to vector<1x128xf32>
    %280 = arith.maximumf %278, %279 : vector<1x128xf32>
    %c0_156 = arith.constant 0 : index
    %c0_157 = arith.constant 0 : index
    %281 = vector.load %arg11[%c0_156, %c0_157] : memref<1x128xf32, #tpu.memory_space<vmem>>, vector<1x128xf32>
    tpu.vector_store %arg11[%c0_156, %c0_157], %280 {strides = array<i32>} : memref<1x128xf32, #tpu.memory_space<vmem>>, vector<1x128xf32>,
    %282 = arith.addi %0, %c6_i32 : i32
    %c3_i32_158 = arith.constant 3 : i32
    %283 = arith.muli %282, %c3_i32_158 : i32
    %c0_i32_159 = arith.constant 0 : i32
    %284 = arith.addi %283, %c0_i32_159 : i32
    %285 = arith.index_cast %284 : i32 to index
    %286 = memref.load %arg3[%285] : memref<48xi32, #tpu.memory_space<smem>>
    %c0_i32_160 = arith.constant 0 : i32
    %287 = arith.cmpi sge, %286, %c0_i32_160 : i32
    %288 = arith.extui %287 : i1 to i32
    %c0_i32_161 = arith.constant 0 : i32
    %289 = arith.cmpi ne, %288, %c0_i32_161 : i32
    scf.if %289 {
      %357 = arith.index_cast %286 : i32 to index
      %c0_203 = arith.constant 0 : index
      %358 = vector.load %arg10[%357, %c0_203] : memref<8x128xf32, #tpu.memory_space<vmem>>, vector<1x128xf32>
      %359 = arith.addi %0, %286 : i32
      %360 = arith.index_cast %359 : i32 to index
      %361 = memref.load %arg2[%360] : memref<16xi32, #tpu.memory_space<smem>>
      %362 = arith.index_cast %361 : i32 to index
      %c0_204 = arith.constant 0 : index
      %c0_205 = arith.constant 0 : index
      %363 = vector.load %arg7[%362, %c0_204, %c0_205] : memref<6x128x128xf32, #tpu.memory_space<vmem>>, vector<1x128x128xf32>
      %364 = vector.shape_cast %363 : vector<1x128x128xf32> to vector<128x128xf32>
      %cst_206 = arith.constant dense<0.000000e+00> : vector<1x128xf32>
      %365 = tpu.matmul %358, %364, %cst_206 {dimension_numbers = #tpu.dot_dimension_numbers<[1], [0], [0], [1], [0, 0, 1, 1], [], []>} : vector<1x128xf32>, vector<128x128xf32>, vector<1x128xf32> -> vector<1x128xf32>
      %366 = arith.index_cast %361 : i32 to index
      %c0_207 = arith.constant 0 : index
      %c0_208 = arith.constant 0 : index
      %367 = vector.load %arg8[%366, %c0_207, %c0_208] : memref<6x1x128xf32, #tpu.memory_space<vmem>>, vector<1x1x128xf32>
      %368 = vector.shape_cast %367 : vector<1x1x128xf32> to vector<1x128xf32>
      %369 = arith.addf %365, %368 : vector<1x128xf32>
      %cst_209 = arith.constant 0.000000e+00 : f32
      %370 = vector.broadcast %cst_209 : f32 to vector<1x128xf32>
      %371 = arith.maximumf %369, %370 : vector<1x128xf32>
      %c0_210 = arith.constant 0 : index
      %c0_211 = arith.constant 0 : index
      %372 = vector.load %arg11[%c0_210, %c0_211] : memref<1x128xf32, #tpu.memory_space<vmem>>, vector<1x128xf32>
      %373 = arith.maximumf %372, %371 : vector<1x128xf32>
      %c0_212 = arith.constant 0 : index
      %c0_213 = arith.constant 0 : index
      %374 = vector.load %arg11[%c0_212, %c0_213] : memref<1x128xf32, #tpu.memory_space<vmem>>, vector<1x128xf32>
      tpu.vector_store %arg11[%c0_212, %c0_213], %373 {strides = array<i32>} : memref<1x128xf32, #tpu.memory_space<vmem>>, vector<1x128xf32>,
    } else {
    }
    %290 = arith.addi %0, %c6_i32 : i32
    %c3_i32_162 = arith.constant 3 : i32
    %291 = arith.muli %290, %c3_i32_162 : i32
    %c1_i32_163 = arith.constant 1 : i32
    %292 = arith.addi %291, %c1_i32_163 : i32
    %293 = arith.index_cast %292 : i32 to index
    %294 = memref.load %arg3[%293] : memref<48xi32, #tpu.memory_space<smem>>
    %c0_i32_164 = arith.constant 0 : i32
    %295 = arith.cmpi sge, %294, %c0_i32_164 : i32
    %296 = arith.extui %295 : i1 to i32
    %c0_i32_165 = arith.constant 0 : i32
    %297 = arith.cmpi ne, %296, %c0_i32_165 : i32
    scf.if %297 {
      %357 = arith.index_cast %294 : i32 to index
      %c0_203 = arith.constant 0 : index
      %358 = vector.load %arg10[%357, %c0_203] : memref<8x128xf32, #tpu.memory_space<vmem>>, vector<1x128xf32>
      %359 = arith.addi %0, %294 : i32
      %360 = arith.index_cast %359 : i32 to index
      %361 = memref.load %arg2[%360] : memref<16xi32, #tpu.memory_space<smem>>
      %362 = arith.index_cast %361 : i32 to index
      %c0_204 = arith.constant 0 : index
      %c0_205 = arith.constant 0 : index
      %363 = vector.load %arg7[%362, %c0_204, %c0_205] : memref<6x128x128xf32, #tpu.memory_space<vmem>>, vector<1x128x128xf32>
      %364 = vector.shape_cast %363 : vector<1x128x128xf32> to vector<128x128xf32>
      %cst_206 = arith.constant dense<0.000000e+00> : vector<1x128xf32>
      %365 = tpu.matmul %358, %364, %cst_206 {dimension_numbers = #tpu.dot_dimension_numbers<[1], [0], [0], [1], [0, 0, 1, 1], [], []>} : vector<1x128xf32>, vector<128x128xf32>, vector<1x128xf32> -> vector<1x128xf32>
      %366 = arith.index_cast %361 : i32 to index
      %c0_207 = arith.constant 0 : index
      %c0_208 = arith.constant 0 : index
      %367 = vector.load %arg8[%366, %c0_207, %c0_208] : memref<6x1x128xf32, #tpu.memory_space<vmem>>, vector<1x1x128xf32>
      %368 = vector.shape_cast %367 : vector<1x1x128xf32> to vector<1x128xf32>
      %369 = arith.addf %365, %368 : vector<1x128xf32>
      %cst_209 = arith.constant 0.000000e+00 : f32
      %370 = vector.broadcast %cst_209 : f32 to vector<1x128xf32>
      %371 = arith.maximumf %369, %370 : vector<1x128xf32>
      %c0_210 = arith.constant 0 : index
      %c0_211 = arith.constant 0 : index
      %372 = vector.load %arg11[%c0_210, %c0_211] : memref<1x128xf32, #tpu.memory_space<vmem>>, vector<1x128xf32>
      %373 = arith.maximumf %372, %371 : vector<1x128xf32>
      %c0_212 = arith.constant 0 : index
      %c0_213 = arith.constant 0 : index
      %374 = vector.load %arg11[%c0_212, %c0_213] : memref<1x128xf32, #tpu.memory_space<vmem>>, vector<1x128xf32>
      tpu.vector_store %arg11[%c0_212, %c0_213], %373 {strides = array<i32>} : memref<1x128xf32, #tpu.memory_space<vmem>>, vector<1x128xf32>,
    } else {
    }
    %298 = arith.addi %0, %c6_i32 : i32
    %c3_i32_166 = arith.constant 3 : i32
    %299 = arith.muli %298, %c3_i32_166 : i32
    %c2_i32_167 = arith.constant 2 : i32
    %300 = arith.addi %299, %c2_i32_167 : i32
    %301 = arith.index_cast %300 : i32 to index
    %302 = memref.load %arg3[%301] : memref<48xi32, #tpu.memory_space<smem>>
    %c0_i32_168 = arith.constant 0 : i32
    %303 = arith.cmpi sge, %302, %c0_i32_168 : i32
    %304 = arith.extui %303 : i1 to i32
    %c0_i32_169 = arith.constant 0 : i32
    %305 = arith.cmpi ne, %304, %c0_i32_169 : i32
    scf.if %305 {
      %357 = arith.index_cast %302 : i32 to index
      %c0_203 = arith.constant 0 : index
      %358 = vector.load %arg10[%357, %c0_203] : memref<8x128xf32, #tpu.memory_space<vmem>>, vector<1x128xf32>
      %359 = arith.addi %0, %302 : i32
      %360 = arith.index_cast %359 : i32 to index
      %361 = memref.load %arg2[%360] : memref<16xi32, #tpu.memory_space<smem>>
      %362 = arith.index_cast %361 : i32 to index
      %c0_204 = arith.constant 0 : index
      %c0_205 = arith.constant 0 : index
      %363 = vector.load %arg7[%362, %c0_204, %c0_205] : memref<6x128x128xf32, #tpu.memory_space<vmem>>, vector<1x128x128xf32>
      %364 = vector.shape_cast %363 : vector<1x128x128xf32> to vector<128x128xf32>
      %cst_206 = arith.constant dense<0.000000e+00> : vector<1x128xf32>
      %365 = tpu.matmul %358, %364, %cst_206 {dimension_numbers = #tpu.dot_dimension_numbers<[1], [0], [0], [1], [0, 0, 1, 1], [], []>} : vector<1x128xf32>, vector<128x128xf32>, vector<1x128xf32> -> vector<1x128xf32>
      %366 = arith.index_cast %361 : i32 to index
      %c0_207 = arith.constant 0 : index
      %c0_208 = arith.constant 0 : index
      %367 = vector.load %arg8[%366, %c0_207, %c0_208] : memref<6x1x128xf32, #tpu.memory_space<vmem>>, vector<1x1x128xf32>
      %368 = vector.shape_cast %367 : vector<1x1x128xf32> to vector<1x128xf32>
      %369 = arith.addf %365, %368 : vector<1x128xf32>
      %cst_209 = arith.constant 0.000000e+00 : f32
      %370 = vector.broadcast %cst_209 : f32 to vector<1x128xf32>
      %371 = arith.maximumf %369, %370 : vector<1x128xf32>
      %c0_210 = arith.constant 0 : index
      %c0_211 = arith.constant 0 : index
      %372 = vector.load %arg11[%c0_210, %c0_211] : memref<1x128xf32, #tpu.memory_space<vmem>>, vector<1x128xf32>
      %373 = arith.maximumf %372, %371 : vector<1x128xf32>
      %c0_212 = arith.constant 0 : index
      %c0_213 = arith.constant 0 : index
      %374 = vector.load %arg11[%c0_212, %c0_213] : memref<1x128xf32, #tpu.memory_space<vmem>>, vector<1x128xf32>
      tpu.vector_store %arg11[%c0_212, %c0_213], %373 {strides = array<i32>} : memref<1x128xf32, #tpu.memory_space<vmem>>, vector<1x128xf32>,
    } else {
    }
    %c0_170 = arith.constant 0 : index
    %c0_171 = arith.constant 0 : index
    %306 = vector.load %arg11[%c0_170, %c0_171] : memref<1x128xf32, #tpu.memory_space<vmem>>, vector<1x128xf32>
    %307 = arith.index_cast %c6_i32 : i32 to index
    %c0_172 = arith.constant 0 : index
    %308 = vector.load %arg10[%307, %c0_172] : memref<8x128xf32, #tpu.memory_space<vmem>>, vector<1x128xf32>
    tpu.vector_store %arg10[%307, %c0_172], %306 {strides = array<i32>} : memref<8x128xf32, #tpu.memory_space<vmem>>, vector<1x128xf32>,
    %c7_i32 = arith.constant 7 : i32
    %309 = arith.addi %0, %c7_i32 : i32
    %310 = arith.index_cast %309 : i32 to index
    %311 = memref.load %arg1[%310] : memref<16xi32, #tpu.memory_space<smem>>
    %c0_173 = arith.constant 0 : index
    %312 = arith.index_cast %c7_i32 : i32 to index
    %c0_174 = arith.constant 0 : index
    %313 = vector.load %arg4[%c0_173, %312, %c0_174] : memref<1x8x128xf32, #tpu.memory_space<vmem>>, vector<1x1x128xf32>
    %314 = vector.shape_cast %313 : vector<1x1x128xf32> to vector<1x128xf32>
    %315 = arith.index_cast %311 : i32 to index
    %c0_175 = arith.constant 0 : index
    %c0_176 = arith.constant 0 : index
    %316 = vector.load %arg5[%315, %c0_175, %c0_176] : memref<5x128x128xf32, #tpu.memory_space<vmem>>, vector<1x128x128xf32>
    %317 = vector.shape_cast %316 : vector<1x128x128xf32> to vector<128x128xf32>
    %cst_177 = arith.constant dense<0.000000e+00> : vector<1x128xf32>
    %318 = tpu.matmul %314, %317, %cst_177 {dimension_numbers = #tpu.dot_dimension_numbers<[1], [0], [0], [1], [0, 0, 1, 1], [], []>} : vector<1x128xf32>, vector<128x128xf32>, vector<1x128xf32> -> vector<1x128xf32>
    %319 = arith.index_cast %311 : i32 to index
    %c0_178 = arith.constant 0 : index
    %c0_179 = arith.constant 0 : index
    %320 = vector.load %arg6[%319, %c0_178, %c0_179] : memref<5x1x128xf32, #tpu.memory_space<vmem>>, vector<1x1x128xf32>
    %321 = vector.shape_cast %320 : vector<1x1x128xf32> to vector<1x128xf32>
    %322 = arith.addf %318, %321 : vector<1x128xf32>
    %cst_180 = arith.constant 0.000000e+00 : f32
    %323 = vector.broadcast %cst_180 : f32 to vector<1x128xf32>
    %324 = arith.maximumf %322, %323 : vector<1x128xf32>
    %c0_181 = arith.constant 0 : index
    %c0_182 = arith.constant 0 : index
    %325 = vector.load %arg11[%c0_181, %c0_182] : memref<1x128xf32, #tpu.memory_space<vmem>>, vector<1x128xf32>
    tpu.vector_store %arg11[%c0_181, %c0_182], %324 {strides = array<i32>} : memref<1x128xf32, #tpu.memory_space<vmem>>, vector<1x128xf32>,
    %326 = arith.addi %0, %c7_i32 : i32
    %c3_i32_183 = arith.constant 3 : i32
    %327 = arith.muli %326, %c3_i32_183 : i32
    %c0_i32_184 = arith.constant 0 : i32
    %328 = arith.addi %327, %c0_i32_184 : i32
    %329 = arith.index_cast %328 : i32 to index
    %330 = memref.load %arg3[%329] : memref<48xi32, #tpu.memory_space<smem>>
    %c0_i32_185 = arith.constant 0 : i32
    %331 = arith.cmpi sge, %330, %c0_i32_185 : i32
    %332 = arith.extui %331 : i1 to i32
    %c0_i32_186 = arith.constant 0 : i32
    %333 = arith.cmpi ne, %332, %c0_i32_186 : i32
    scf.if %333 {
      %357 = arith.index_cast %330 : i32 to index
      %c0_203 = arith.constant 0 : index
      %358 = vector.load %arg10[%357, %c0_203] : memref<8x128xf32, #tpu.memory_space<vmem>>, vector<1x128xf32>
      %359 = arith.addi %0, %330 : i32
      %360 = arith.index_cast %359 : i32 to index
      %361 = memref.load %arg2[%360] : memref<16xi32, #tpu.memory_space<smem>>
      %362 = arith.index_cast %361 : i32 to index
      %c0_204 = arith.constant 0 : index
      %c0_205 = arith.constant 0 : index
      %363 = vector.load %arg7[%362, %c0_204, %c0_205] : memref<6x128x128xf32, #tpu.memory_space<vmem>>, vector<1x128x128xf32>
      %364 = vector.shape_cast %363 : vector<1x128x128xf32> to vector<128x128xf32>
      %cst_206 = arith.constant dense<0.000000e+00> : vector<1x128xf32>
      %365 = tpu.matmul %358, %364, %cst_206 {dimension_numbers = #tpu.dot_dimension_numbers<[1], [0], [0], [1], [0, 0, 1, 1], [], []>} : vector<1x128xf32>, vector<128x128xf32>, vector<1x128xf32> -> vector<1x128xf32>
      %366 = arith.index_cast %361 : i32 to index
      %c0_207 = arith.constant 0 : index
      %c0_208 = arith.constant 0 : index
      %367 = vector.load %arg8[%366, %c0_207, %c0_208] : memref<6x1x128xf32, #tpu.memory_space<vmem>>, vector<1x1x128xf32>
      %368 = vector.shape_cast %367 : vector<1x1x128xf32> to vector<1x128xf32>
      %369 = arith.addf %365, %368 : vector<1x128xf32>
      %cst_209 = arith.constant 0.000000e+00 : f32
      %370 = vector.broadcast %cst_209 : f32 to vector<1x128xf32>
      %371 = arith.maximumf %369, %370 : vector<1x128xf32>
      %c0_210 = arith.constant 0 : index
      %c0_211 = arith.constant 0 : index
      %372 = vector.load %arg11[%c0_210, %c0_211] : memref<1x128xf32, #tpu.memory_space<vmem>>, vector<1x128xf32>
      %373 = arith.maximumf %372, %371 : vector<1x128xf32>
      %c0_212 = arith.constant 0 : index
      %c0_213 = arith.constant 0 : index
      %374 = vector.load %arg11[%c0_212, %c0_213] : memref<1x128xf32, #tpu.memory_space<vmem>>, vector<1x128xf32>
      tpu.vector_store %arg11[%c0_212, %c0_213], %373 {strides = array<i32>} : memref<1x128xf32, #tpu.memory_space<vmem>>, vector<1x128xf32>,
    } else {
    }
    %334 = arith.addi %0, %c7_i32 : i32
    %c3_i32_187 = arith.constant 3 : i32
    %335 = arith.muli %334, %c3_i32_187 : i32
    %c1_i32_188 = arith.constant 1 : i32
    %336 = arith.addi %335, %c1_i32_188 : i32
    %337 = arith.index_cast %336 : i32 to index
    %338 = memref.load %arg3[%337] : memref<48xi32, #tpu.memory_space<smem>>
    %c0_i32_189 = arith.constant 0 : i32
    %339 = arith.cmpi sge, %338, %c0_i32_189 : i32
    %340 = arith.extui %339 : i1 to i32
    %c0_i32_190 = arith.constant 0 : i32
    %341 = arith.cmpi ne, %340, %c0_i32_190 : i32
    scf.if %341 {
      %357 = arith.index_cast %338 : i32 to index
      %c0_203 = arith.constant 0 : index
      %358 = vector.load %arg10[%357, %c0_203] : memref<8x128xf32, #tpu.memory_space<vmem>>, vector<1x128xf32>
      %359 = arith.addi %0, %338 : i32
      %360 = arith.index_cast %359 : i32 to index
      %361 = memref.load %arg2[%360] : memref<16xi32, #tpu.memory_space<smem>>
      %362 = arith.index_cast %361 : i32 to index
      %c0_204 = arith.constant 0 : index
      %c0_205 = arith.constant 0 : index
      %363 = vector.load %arg7[%362, %c0_204, %c0_205] : memref<6x128x128xf32, #tpu.memory_space<vmem>>, vector<1x128x128xf32>
      %364 = vector.shape_cast %363 : vector<1x128x128xf32> to vector<128x128xf32>
      %cst_206 = arith.constant dense<0.000000e+00> : vector<1x128xf32>
      %365 = tpu.matmul %358, %364, %cst_206 {dimension_numbers = #tpu.dot_dimension_numbers<[1], [0], [0], [1], [0, 0, 1, 1], [], []>} : vector<1x128xf32>, vector<128x128xf32>, vector<1x128xf32> -> vector<1x128xf32>
      %366 = arith.index_cast %361 : i32 to index
      %c0_207 = arith.constant 0 : index
      %c0_208 = arith.constant 0 : index
      %367 = vector.load %arg8[%366, %c0_207, %c0_208] : memref<6x1x128xf32, #tpu.memory_space<vmem>>, vector<1x1x128xf32>
      %368 = vector.shape_cast %367 : vector<1x1x128xf32> to vector<1x128xf32>
      %369 = arith.addf %365, %368 : vector<1x128xf32>
      %cst_209 = arith.constant 0.000000e+00 : f32
      %370 = vector.broadcast %cst_209 : f32 to vector<1x128xf32>
      %371 = arith.maximumf %369, %370 : vector<1x128xf32>
      %c0_210 = arith.constant 0 : index
      %c0_211 = arith.constant 0 : index
      %372 = vector.load %arg11[%c0_210, %c0_211] : memref<1x128xf32, #tpu.memory_space<vmem>>, vector<1x128xf32>
      %373 = arith.maximumf %372, %371 : vector<1x128xf32>
      %c0_212 = arith.constant 0 : index
      %c0_213 = arith.constant 0 : index
      %374 = vector.load %arg11[%c0_212, %c0_213] : memref<1x128xf32, #tpu.memory_space<vmem>>, vector<1x128xf32>
      tpu.vector_store %arg11[%c0_212, %c0_213], %373 {strides = array<i32>} : memref<1x128xf32, #tpu.memory_space<vmem>>, vector<1x128xf32>,
    } else {
    }
    %342 = arith.addi %0, %c7_i32 : i32
    %c3_i32_191 = arith.constant 3 : i32
    %343 = arith.muli %342, %c3_i32_191 : i32
    %c2_i32_192 = arith.constant 2 : i32
    %344 = arith.addi %343, %c2_i32_192 : i32
    %345 = arith.index_cast %344 : i32 to index
    %346 = memref.load %arg3[%345] : memref<48xi32, #tpu.memory_space<smem>>
    %c0_i32_193 = arith.constant 0 : i32
    %347 = arith.cmpi sge, %346, %c0_i32_193 : i32
    %348 = arith.extui %347 : i1 to i32
    %c0_i32_194 = arith.constant 0 : i32
    %349 = arith.cmpi ne, %348, %c0_i32_194 : i32
    scf.if %349 {
      %357 = arith.index_cast %346 : i32 to index
      %c0_203 = arith.constant 0 : index
      %358 = vector.load %arg10[%357, %c0_203] : memref<8x128xf32, #tpu.memory_space<vmem>>, vector<1x128xf32>
      %359 = arith.addi %0, %346 : i32
      %360 = arith.index_cast %359 : i32 to index
      %361 = memref.load %arg2[%360] : memref<16xi32, #tpu.memory_space<smem>>
      %362 = arith.index_cast %361 : i32 to index
      %c0_204 = arith.constant 0 : index
      %c0_205 = arith.constant 0 : index
      %363 = vector.load %arg7[%362, %c0_204, %c0_205] : memref<6x128x128xf32, #tpu.memory_space<vmem>>, vector<1x128x128xf32>
      %364 = vector.shape_cast %363 : vector<1x128x128xf32> to vector<128x128xf32>
      %cst_206 = arith.constant dense<0.000000e+00> : vector<1x128xf32>
      %365 = tpu.matmul %358, %364, %cst_206 {dimension_numbers = #tpu.dot_dimension_numbers<[1], [0], [0], [1], [0, 0, 1, 1], [], []>} : vector<1x128xf32>, vector<128x128xf32>, vector<1x128xf32> -> vector<1x128xf32>
      %366 = arith.index_cast %361 : i32 to index
      %c0_207 = arith.constant 0 : index
      %c0_208 = arith.constant 0 : index
      %367 = vector.load %arg8[%366, %c0_207, %c0_208] : memref<6x1x128xf32, #tpu.memory_space<vmem>>, vector<1x1x128xf32>
      %368 = vector.shape_cast %367 : vector<1x1x128xf32> to vector<1x128xf32>
      %369 = arith.addf %365, %368 : vector<1x128xf32>
      %cst_209 = arith.constant 0.000000e+00 : f32
      %370 = vector.broadcast %cst_209 : f32 to vector<1x128xf32>
      %371 = arith.maximumf %369, %370 : vector<1x128xf32>
      %c0_210 = arith.constant 0 : index
      %c0_211 = arith.constant 0 : index
      %372 = vector.load %arg11[%c0_210, %c0_211] : memref<1x128xf32, #tpu.memory_space<vmem>>, vector<1x128xf32>
      %373 = arith.maximumf %372, %371 : vector<1x128xf32>
      %c0_212 = arith.constant 0 : index
      %c0_213 = arith.constant 0 : index
      %374 = vector.load %arg11[%c0_212, %c0_213] : memref<1x128xf32, #tpu.memory_space<vmem>>, vector<1x128xf32>
      tpu.vector_store %arg11[%c0_212, %c0_213], %373 {strides = array<i32>} : memref<1x128xf32, #tpu.memory_space<vmem>>, vector<1x128xf32>,
    } else {
    }
    %c0_195 = arith.constant 0 : index
    %c0_196 = arith.constant 0 : index
    %350 = vector.load %arg11[%c0_195, %c0_196] : memref<1x128xf32, #tpu.memory_space<vmem>>, vector<1x128xf32>
    %351 = arith.index_cast %c7_i32 : i32 to index
    %c0_197 = arith.constant 0 : index
    %352 = vector.load %arg10[%351, %c0_197] : memref<8x128xf32, #tpu.memory_space<vmem>>, vector<1x128xf32>
    tpu.vector_store %arg10[%351, %c0_197], %350 {strides = array<i32>} : memref<8x128xf32, #tpu.memory_space<vmem>>, vector<1x128xf32>,
    %c8_i32_198 = arith.constant 8 : i32
    %c7 = arith.constant 7 : index
    %c0_199 = arith.constant 0 : index
    %353 = vector.load %arg10[%c7, %c0_199] : memref<8x128xf32, #tpu.memory_space<vmem>>, vector<1x128xf32>
    %c0_200 = arith.constant 0 : index
    %c0_201 = arith.constant 0 : index
    %c0_202 = arith.constant 0 : index
    %354 = vector.load %arg9[%c0_200, %c0_201, %c0_202] : memref<1x1x128xf32, #tpu.memory_space<vmem>>, vector<1x1x128xf32>
    %355 = vector.shape_cast %354 : vector<1x1x128xf32> to vector<1x128xf32>
    %356 = vector.shape_cast %353 : vector<1x128xf32> to vector<1x1x128xf32>
    tpu.vector_store %arg9[%c0_200, %c0_201, %c0_202], %356 {strides = array<i32>} : memref<1x1x128xf32, #tpu.memory_space<vmem>>, vector<1x1x128xf32>,
    return
  }
  func.func @transform_0(%arg0: i32, %arg1: memref<16xi32, #tpu.memory_space<smem>>, %arg2: memref<16xi32, #tpu.memory_space<smem>>, %arg3: memref<48xi32, #tpu.memory_space<smem>>) -> (i32, i32, i32) {
    %c0_i32 = arith.constant 0 : i32
    %c0_i32_0 = arith.constant 0 : i32
    %c0_i32_1 = arith.constant 0 : i32
    return %arg0, %c0_i32, %c0_i32_0 : i32, i32, i32
  }
  func.func @transform_1(%arg0: i32, %arg1: memref<16xi32, #tpu.memory_space<smem>>, %arg2: memref<16xi32, #tpu.memory_space<smem>>, %arg3: memref<48xi32, #tpu.memory_space<smem>>) -> (i32, i32, i32) {
    %c0_i32 = arith.constant 0 : i32
    %c0_i32_0 = arith.constant 0 : i32
    %c0_i32_1 = arith.constant 0 : i32
    %c0_i32_2 = arith.constant 0 : i32
    return %c0_i32, %c0_i32_0, %c0_i32_1 : i32, i32, i32
  }
  func.func @transform_2(%arg0: i32, %arg1: memref<16xi32, #tpu.memory_space<smem>>, %arg2: memref<16xi32, #tpu.memory_space<smem>>, %arg3: memref<48xi32, #tpu.memory_space<smem>>) -> (i32, i32, i32) {
    %c0_i32 = arith.constant 0 : i32
    %c0_i32_0 = arith.constant 0 : i32
    %c0_i32_1 = arith.constant 0 : i32
    %c0_i32_2 = arith.constant 0 : i32
    return %c0_i32, %c0_i32_0, %c0_i32_1 : i32, i32, i32
  }
  func.func @transform_3(%arg0: i32, %arg1: memref<16xi32, #tpu.memory_space<smem>>, %arg2: memref<16xi32, #tpu.memory_space<smem>>, %arg3: memref<48xi32, #tpu.memory_space<smem>>) -> (i32, i32, i32) {
    %c0_i32 = arith.constant 0 : i32
    %c0_i32_0 = arith.constant 0 : i32
    %c0_i32_1 = arith.constant 0 : i32
    %c0_i32_2 = arith.constant 0 : i32
    return %c0_i32, %c0_i32_0, %c0_i32_1 : i32, i32, i32
  }
  func.func @transform_4(%arg0: i32, %arg1: memref<16xi32, #tpu.memory_space<smem>>, %arg2: memref<16xi32, #tpu.memory_space<smem>>, %arg3: memref<48xi32, #tpu.memory_space<smem>>) -> (i32, i32, i32) {
    %c0_i32 = arith.constant 0 : i32
    %c0_i32_0 = arith.constant 0 : i32
    %c0_i32_1 = arith.constant 0 : i32
    %c0_i32_2 = arith.constant 0 : i32
    return %c0_i32, %c0_i32_0, %c0_i32_1 : i32, i32, i32
  }
  func.func @transform_5(%arg0: i32, %arg1: memref<16xi32, #tpu.memory_space<smem>>, %arg2: memref<16xi32, #tpu.memory_space<smem>>, %arg3: memref<48xi32, #tpu.memory_space<smem>>) -> (i32, i32, i32) {
    %c0_i32 = arith.constant 0 : i32
    %c0_i32_0 = arith.constant 0 : i32
    %c0_i32_1 = arith.constant 0 : i32
    return %arg0, %c0_i32, %c0_i32_0 : i32, i32, i32
  }
}

</mosaic_0001>

<bundles_post_ra>
// kernel: tpu_custom_call.1
= control target key start
LH: loop header
LB: loop body
LE: loop exit
PB: predicated region body
PF: predicated region fallthrough
CT: control target
= control target key end

     0   :  { %s8096_s0 = inlined_call_operand.hbm [shape: s32[16], index: 0, kind: input, shape index: {}]   ;;  %s8097_s3 = inlined_call_operand.hbm [shape: f32[2,8,128], index: 3, kind: input, shape index: {}]   ;;  %s8098_s4 = inlined_call_operand.hbm [shape: f32[5,128,128], index: 4, kind: input, shape index: {}]   ;;  %s8099_s5 = inlined_call_operand.vmem [shape: f32[5,1,128], index: 5, kind: input, shape index: {}]   ;;  %s8100_s6 = inlined_call_operand.hbm [shape: f32[6,128,128], index: 6, kind: input, shape index: {}]   ;;  %s8101_s7 = inlined_call_operand.vmem [shape: f32[6,1,128], index: 7, kind: input, shape index: {}]   ;;  %s8102_s8 = inlined_call_operand.hbm [shape: f32[2,1,128], index: 8, kind: output, shape index: {}]   ;;  %s8103_s1 = inlined_call_operand.hbm [shape: s32[16], index: 1, kind: input, shape index: {}]   ;;  %s8104_s2 = inlined_call_operand.hbm [shape: s32[48], index: 2, kind: input, shape index: {}]  }
   0x1   :  { %s6421_s29 = scalar_lea.hbm %s8096_s0, 16 }
   0x2   :  { %p6422_p0 = scmp.ne.s32.totalorder %s8096_s0, %s6421_s29  ;;  %p6425_p1 = scmp.lt.u32.totalorder %s6421_s29, %s8096_s0 }
   0x4   :  { %p6427_p2 = pnand %p6425_p1, %p6422_p0 }
   0x6   :  { %6430 = shalt.err (!%p6427_p2)  }
   0x7   :  { %s6611_s12 = smov [#allocation5]   ;;  %s6431_s17 = scalar_lea.hbm %s8103_s1, 16 }
   0x8   :  { %14 = dma.hbm_to_smem %s8096_s0, 16, %s6611_s12, [#allocation4] }
   0x9   :  { %p6432_p3 = scmp.ne.s32.totalorder %s8103_s1, %s6431_s17  ;;  %p6435_p4 = scmp.lt.u32.totalorder %s6431_s17, %s8103_s1 }
   0xb   :  { %p6437_p5 = pnand %p6435_p4, %p6432_p3 }
   0xd   :  { %6440 = shalt.err (!%p6437_p5)  }
   0xe   :  { %s6612_s22 = smov [#allocation6]   ;;  %s6441_s26 = scalar_lea.hbm %s8104_s2, 16 }
   0xf   :  { %16 = dma.hbm_to_smem %s8103_s1, 16, %s6612_s22, [#allocation4] }
  0x10   :  { %p6442_p6 = scmp.ne.s32.totalorder %s8104_s2, %s6441_s26  ;;  %p6445_p7 = scmp.lt.u32.totalorder %s6441_s26, %s8104_s2 }
  0x12   :  { %p6447_p8 = pnand %p6445_p7, %p6442_p6 }
  0x14   :  { %6450 = shalt.err (!%p6447_p8)  }
  0x15   :  { %s6613_s9 = smov [#allocation7]  }
  0x16   :  { %18 = dma.hbm_to_smem %s8104_s2, 16, %s6613_s9, [#allocation4] }
  0x17   :  { %6581 = dma.done.wait [#allocation4], 48 }
  0x18   :  { %6582 = vsyncadd [#allocation4], 4294967248 }
  0x19   :  { %20 = sfence }
  0x1a   :  { %21 = vsyncpa [#allocation9], 0 }
  0x1b   :  { %23 = vsyncpa [#allocation9 + $0x1], 0 }
  0x1c   :  { %24 = vsyncpa [#allocation12], 0 }
  0x1d   :  { %25 = vsyncpa [#allocation10], 0 }
  0x1e   :  { %27 = vsyncpa [#allocation10 + $0x1], 0  ;;  %s6776_s1 = smov 0   ;;  %s6778_s12 = smov 0  }
  0x1f   :  { %s6780_s13 = smov 0   ;;  %s6782_s14 = smov 0  }
  0x20 LB: > { %s6797_s2 = sadd.s32 4294967295, %s6609_s14   ;;  %s3771_s15 = sadd.s32 4294967294, %s6609_s14   ;;  %s6609_s14 = sphi %s6782_s14, %s8124_s14   ;;  %s6605_s13 = sphi %s6780_s13, %s8123_s13   ;;  %s6601_s12 = sphi %s6778_s12, %s8122_s12   ;;  %s6597_s1 = sphi %s6776_s1, %s8121_s1  }
  0x21   : > { %p53_p9 = scmp.ne.s32.totalorder %s6601_s12, %s6597_s1  ;;  %p8105_p10 = scmp.eq.s32.totalorder %s6797_s2, 0 }
  0x22   : > { %p167_p12 = scmp.eq.s32.totalorder %s3771_s15, 1  ;;  %p3772_p0 = scmp.ge.s32.totalorder %s6609_s14, 1 }
  0x23   : > { %p6806_p13 = por %p8105_p10, %p53_p9  ;;  %p174_p2 = scmp.lt.s32.totalorder %s6609_s14, 3 }
  0x24   : > { %p6811_p1 = por %p167_p12, %p53_p9  ;;  %s6614_s19 = smov [#allocation11]  }
  0x25   : > { %s8108_s16 = scalar_select %p6806_p13, 1, 0 }
  0x26   : > { %s8109_s17 = scalar_select %p6811_p1, 1, 0 }
  0x27   : > { %p6816_p3 = pnand %p3772_p0, %p174_p2  ;;  %s186_s20 = sshll.u32 %s6614_s19, 4  ;;  %s6820_s20 = int_to_ptr.vmem [resolvable:$true] %s186_s20 }
  0x28   : > { %s6615_s22 = smov [#allocation13]   ;;  %s6451_s25 = scalar_lea.hbm %s8098_s4, 10240 }
  0x29   : > { %p6286_p4 = pneg %p6816_p3  ;;  %s202_s23 = sshll.u32 %s6615_s22, 4  ;;  %s6831_s23 = int_to_ptr.vmem [resolvable:$true] %s202_s23 }
  0x2a   : > { %p6452_p7 = scmp.ne.s32.totalorder %s8098_s4, %s6451_s25  ;;  %p6458_p0 = scmp.lt.u32.totalorder %s6451_s25, %s8098_s4 }
  0x2b   : > { %p6827_p6 = pnand %p6286_p4, %p8105_p10 }
  0x2d   : > { %p6453_p8 = pneg %p6827_p6 }
  0x2f   : > { %p6454_p9 = pnand %p6453_p8, %p6452_p7 }
  0x31   : > { %p6455_p12 = pneg %p6454_p9 }
  0x33   : > { %p6460_p2 = pnand %p6458_p0, %p6455_p12 }
  0x35   : > { %6463 = shalt.err (!%p6460_p2)
}
  0x36   : > { %s6464_s30 = scalar_lea.vmem %s6820_s20, 10240  ;;  %p6472_p11 = scmp.lt.s32.totalorder %s6820_s20, %s6820_s20 }
  0x37   : > { %p6465_p4 = scmp.ne.s32.totalorder %s6820_s20, %s6464_s30  ;;  %p6473_p7 = scmp.lt.s32.totalorder %s6464_s30, %s6464_s30 }
  0x39   : > { %p6467_p5 = pnand %p6465_p4, %p6453_p8  ;;  %p6474_p9 = por %p6473_p7, %p6472_p11 }
  0x3b   : > { %p6468_p10 = pneg %p6467_p5 }
  0x3d   : > { %p6475_p1 = pnand %p6474_p9, %p6468_p10 }
  0x3f   : > { %6478 = shalt.err (!%p6475_p1)
}
  0x40   : > { %s6616_s9 = smov 128   ;;  %s6617_s10 = smov 8  }
  0x41   : > { %6289 = dma.hbm_to_vmem [thread:$0]  (!%p6827_p6), %s8098_s4, 10240, %s6820_s20, [#allocation12], %s6616_s9, %s6616_s9, %s6617_s10  }
  0x42   : > { %s6479_s24 = scalar_lea.hbm %s8100_s6, 12288 }
  0x43   : > { %p6480_p11 = scmp.ne.s32.totalorder %s8100_s6, %s6479_s24  ;;  %p6486_p5 = scmp.lt.u32.totalorder %s6479_s24, %s8100_s6 }
  0x45   : > { %p6482_p10 = pnand %p6480_p11, %p6453_p8 }
  0x47   : > { %p6483_p1 = pneg %p6482_p10 }
  0x49   : > { %p6488_p12 = pnand %p6486_p5, %p6483_p1 }
  0x4b   : > { %6491 = shalt.err (!%p6488_p12)
}
  0x4c   : > { %s6492_s20 = scalar_lea.vmem %s6831_s23, 12288  ;;  %p6500_p7 = scmp.lt.s32.totalorder %s6831_s23, %s6831_s23 }
  0x4d   : > { %p6493_p0 = scmp.ne.s32.totalorder %s6831_s23, %s6492_s20  ;;  %p6501_p9 = scmp.lt.s32.totalorder %s6492_s20, %s6492_s20 }
  0x4f   : > { %p6495_p2 = pnand %p6493_p0, %p6453_p8  ;;  %p6502_p11 = por %p6501_p9, %p6500_p7 }
  0x51   : > { %p6496_p4 = pneg %p6495_p2 }
  0x53   : > { %p6503_p10 = pnand %p6502_p11, %p6496_p4 }
  0x55   : > { %6506 = shalt.err (!%p6503_p10)
}
  0x56   : > { %6292 = dma.hbm_to_vmem [thread:$0]  (!%p6827_p6), %s8100_s6, 12288, %s6831_s23, [#allocation12], %s6616_s9, %s6616_s9, %s6617_s10  }
  0x57   : > { %s6886_s30 = sadd.s32 1, %s6609_s14   ;;  %s40_s21 = sadd.s32 1, %s6605_s13 }
  0x58   : > { %s37_s11 = ssub.s32 %s6609_s14, %s6886_s30  ;;  %p47_p8 = scmp.ne.s32.totalorder %s6605_s13, %s6601_s12 }
  0x59   : > { %p38_p1 = scmp.eq.s32.totalorder %s37_s11, 0  ;;  %p48_p5 = scmp.eq.s32.totalorder %s6609_s14, 0 }
  0x5a   : > { %p8112_p12 = scmp.eq.s32.totalorder %s6797_s2, 1  ;;  %p6303_p2 = scmp.lt.s32.totalorder %s6609_s14, 2 }
  0x5b   : > { %s6902_s19 = scalar_select %p38_p1, %s6605_s13, %s40_s21  }
  0x5c   : > { %p6896_p0 = por %p8112_p12, %p47_p8  ;;  %p49_p4 = por %p48_p5, %p47_p8 }
  0x5d   : > { %s219_s22 = sand.u32 1, %s6605_s13   ;;  %s3777_s23 = sshll.u32 %s6609_s14, 7 }
  0x5e   : > { %s8113_s15 = scalar_select %p6896_p0, 1, 0 }
  0x5f   : > { %s3776_s24 = sshll.u32 %s219_s22, 3  ;;  %s6909_s0 = scalar_lea.hbm %s8097_s3, %s3777_s23 }
  0x60   : > { %s223_s25 = scalar_lea.vmem [#allocation8], %s3776_s24  ;;  %p6913_p6 = pnand %p6303_p2, %p49_p4 }
  0x61   : > { %s230_s26 = sshll.u32 %s223_s25, 4  ;;  %s220_s20 = scalar_lea.sflag [#allocation9], %s219_s22  ;;  %s6911_s26 = int_to_ptr.vmem [resolvable:$true] %s230_s26 }
  0x62   : > { %s6507_s28 = scalar_lea.hbm %s6909_s0, 128  ;;  %p6509_p9 = pneg %p6913_p6 }
  0x63   : > { %p6508_p7 = scmp.ne.s32.totalorder %s6909_s0, %s6507_s28  ;;  %s6512_s11 = scalar_lea.hbm %s8097_s3, 256 }
  0x64   : > { %p6513_p8 = scmp.lt.u32.totalorder %s6909_s0, %s8097_s3  ;;  %p6514_p1 = scmp.lt.u32.totalorder %s6512_s11, %s6507_s28 }
  0x65   : > { %p6510_p11 = pnand %p6509_p9, %p6508_p7  ;;  %p6516_p12 = scmp.lt.u32.totalorder %s6507_s28, %s6909_s0 }
  0x66   : > { %p6515_p5 = por %p6514_p1, %p6513_p8 }
  0x67   : > { %p6511_p10 = pneg %p6510_p11 }
  0x68   : > { %p6517_p2 = por %p6516_p12, %p6515_p5 }
  0x6a   : > { %p6518_p4 = pnand %p6517_p2, %p6511_p10 }
  0x6c   : > { %6521 = shalt.err (!%p6518_p4)
}
  0x6d   : > { %s6522_s22 = scalar_lea.vmem %s6911_s26, 128  ;;  %s6618_s9 = smov [#allocation8]  }
  0x6e   : > { %p6523_p7 = scmp.ne.s32.totalorder %s6911_s26, %s6522_s22  ;;  %s6527_s10 = sshll.u32 %s6618_s9, 4  ;;  %s6528_s10 = int_to_ptr.vmem [resolvable:$false] %s6527_s10 }
  0x6f   : > { %s6529_s25 = scalar_lea.vmem %s6528_s10, 256  ;;  %p6530_p13 = scmp.lt.s32.totalorder %s6911_s26, %s6528_s10 }
  0x70   : > { %p6525_p11 = pnand %p6523_p7, %p6509_p9  ;;  %p6531_p8 = scmp.lt.s32.totalorder %s6529_s25, %s6522_s22 }
  0x72   : > { %p6526_p0 = pneg %p6525_p11  ;;  %p6532_p1 = por %p6531_p8, %p6530_p13 }
  0x74   : > { %p6533_p5 = pnand %p6532_p1, %p6526_p0 }
  0x76   : > { %6536 = shalt.err (!%p6533_p5)
}
  0x77   : > { %6296 = dma.hbm_to_vmem [thread:$0]  (!%p6913_p6), %s6909_s0, 128, %s6911_s26, %s220_s20  }
  0x78   : > { %239 = sbr.rel (%p6816_p3) target bundleno = 8272 (0x2050), region = 40  ;;  %s6945_s28 = sand.u32 (!%p6816_p3), 1, %s6601_s12  }
  0x79   : > { %s3779_s29 = sshll.u32 (!%p6816_p3), %s6945_s28, 3  ;;  %s242_s21 = scalar_lea.sflag (!%p6816_p3), [#allocation9], %s6945_s28 }
  0x7a   : > { %s6949_s11 = scalar_lea.vmem (!%p6816_p3), [#allocation8], %s3779_s29  ;;  %p8115_p13 = scmp.ne.s32.totalorder (!%p6816_p3), %s8108_s16, 0 }
  0x7f   : > { %6584 = dma.done.wait (%p8115_p13), %s242_s21, 128  }
  0x80   : > { %6586 = vsyncadd (%p8115_p13), %s242_s21, 4294967168  ;;  %p8116_p0 = scmp.eq.s32.totalorder %s6797_s2, 0 }
  0x82   : > { %6588 = dma.done.wait (%p8116_p0), [#allocation12], 22528   ;;  %p8117_p3 = pmov %p8116_p0 }
  0x83   : > { %s6960_s18 = smul.u32 24, %s6797_s2  ;;  %v6619_v0 = vmov 0.0|0.0   ;;  %s6964_s0 = sshll.u32 %s6797_s2, 3  ;;  %vm6620_vm0 = vmmov 0   ;;  %v6621_v1 = vmov 0.0  }
  0x84   : > { %6590 = vsyncadd (%p8117_p3), [#allocation12], 4294944768  ;;  %5506 = vmatprep.subr.bf16.mxu0 %v6619_v0  ;;  %s6970_s16 = sld [smem:[#allocation5 + %s6964_s0]]  ;;  %4418 = vmatprep.mubr.msk.f32.mxu0 %vm6620_vm0, %v6621_v1  ;;  %v281_v26 = vld [vmem:[%s6949_s11] sm:$0x1]  ;;  %s278_s9 = scalar_lea.vmem [#allocation14], %s6945_s28 }
  0x85   : > { %s6967_s26 = sld [smem:[#allocation7 + %s6960_s18]] }
  0x8a   : > { %s3783_s27 = sshll.u32 %s6970_s16, 7  ;;  %s300_s22 = scalar_lea.vmem %s8099_s5, %s6970_s16 }
  0x8b   : > { %s6975_s20 = scalar_lea.vmem [#allocation11], %s3783_s27  ;;  %v301_v27 = vld [vmem:[%s300_s22] sm:$0x1]  ;;  %p3784_p6 = scmp.lt.s32.totalorder %s6967_s26, 0 }
  0x8c   : > { %v284_v2 = vld [vmem:[%s6975_s20] sm:$0xff]  ;;  %v285_v3 = vld [vmem:[%s6975_s20 + $0x8] sm:$0xff]  ;;  %v286_v4 = vld [vmem:[%s6975_s20 + $0x10] sm:$0xff]  ;;  %s382_s10 = sadd.s32 (!%p3784_p6), %s6964_s0, %s6967_s26  ;;  %v6622_v32 = vmov (!%p3784_p6), 0.0|0.0   ;;  %vm6623_vm1 = vmmov (!%p3784_p6), 0   ;;  %v6624_v33 = vmov (!%p3784_p6), 0.0  }
  0x8d   : > { %v5507_v5 = vpack.c.bf16 %v285_v3, %v284_v2  ;;  %v287_v6 = vld [vmem:[%s6975_s20 + $0x18] sm:$0xff]  ;;  %v288_v8 = vld [vmem:[%s6975_s20 + $0x20] sm:$0xff]  ;;  %v289_v9 = vld [vmem:[%s6975_s20 + $0x28] sm:$0xff]  ;;  %s7009_s25 = sld [smem:[#allocation6 + %s382_s10]] (!%p3784_p6)  ;;  %s380_s16 = scalar_lea.vmem (!%p3784_p6), [#allocation2], %s6967_s26 }
  0x8e   : > { %v5510_v7 = vpack.c.bf16 %v287_v6, %v286_v4  ;;  %v5513_v10 = vpack.c.bf16 %v289_v9, %v288_v8  ;;  %v290_v11 = vld [vmem:[%s6975_s20 + $0x30] sm:$0xff]  ;;  %v291_v12 = vld [vmem:[%s6975_s20 + $0x38] sm:$0xff]  ;;  %v292_v14 = vld [vmem:[%s6975_s20 + $0x40] sm:$0xff] }
  0x8f   : > { %5508 = vmatpush3.bf16.msra.mxu0 %v5507_v5  ;;  %v5516_v13 = vpack.c.bf16 %v291_v12, %v290_v11  ;;  %v293_v15 = vld [vmem:[%s6975_s20 + $0x48] sm:$0xff]  ;;  %v294_v17 = vld [vmem:[%s6975_s20 + $0x50] sm:$0xff]  ;;  %v295_v18 = vld [vmem:[%s6975_s20 + $0x58] sm:$0xff] }
  0x90   : > { %5509 = vmatprep.subr.bf16.mxu0 %v6619_v0  ;;  %v5519_v16 = vpack.c.bf16 %v293_v15, %v292_v14  ;;  %v5522_v19 = vpack.c.bf16 %v295_v18, %v294_v17  ;;  %v296_v20 = vld [vmem:[%s6975_s20 + $0x60] sm:$0xff]  ;;  %v297_v21 = vld [vmem:[%s6975_s20 + $0x68] sm:$0xff]  ;;  %v298_v23 = vld [vmem:[%s6975_s20 + $0x70] sm:$0xff] }
  0x91   : > { %v5525_v22 = vpack.c.bf16 %v297_v21, %v296_v20  ;;  %v299_v24 = vld [vmem:[%s6975_s20 + $0x78] sm:$0xff]  ;;  %v381_v58 = vld [vmem:[%s380_s16] sm:$0x1] (!%p3784_p6) }
  0x92   : > { %v5528_v25 = vpack.c.bf16 %v299_v24, %v298_v23 }
  0x93   : > { %5511 = vmatpush3.bf16.msra.mxu0 %v5510_v7  ;;  %s3785_s29 = sshll.u32 (!%p3784_p6), %s7009_s25, 7  ;;  %s402_s24 = scalar_lea.vmem (!%p3784_p6), %s8101_s7, %s7009_s25 }
  0x94   : > { %5512 = vmatprep.subr.bf16.mxu0 %v6619_v0  ;;  %s7012_s21 = scalar_lea.vmem (!%p3784_p6), [#allocation13], %s3785_s29  ;;  %v403_v59 = vld [vmem:[%s402_s24] sm:$0x1] (!%p3784_p6) }
  0x95   : > { %v386_v34 = vld [vmem:[%s7012_s21] sm:$0xff] (!%p3784_p6)  ;;  %v387_v35 = vld [vmem:[%s7012_s21 + $0x8] sm:$0xff] (!%p3784_p6)  ;;  %v388_v36 = vld [vmem:[%s7012_s21 + $0x10] sm:$0xff] (!%p3784_p6) }
  0x96   : > { %v5531_v37 = vpack.c.bf16 (!%p3784_p6), %v387_v35, %v386_v34  ;;  %v389_v38 = vld [vmem:[%s7012_s21 + $0x18] sm:$0xff] (!%p3784_p6)  ;;  %v390_v40 = vld [vmem:[%s7012_s21 + $0x20] sm:$0xff] (!%p3784_p6)  ;;  %v391_v41 = vld [vmem:[%s7012_s21 + $0x28] sm:$0xff] (!%p3784_p6) }
  0x97   : > { %5514 = vmatpush3.bf16.msra.mxu0 %v5513_v10  ;;  %v5534_v39 = vpack.c.bf16 (!%p3784_p6), %v389_v38, %v388_v36  ;;  %v5537_v42 = vpack.c.bf16 (!%p3784_p6), %v391_v41, %v390_v40  ;;  %v392_v43 = vld [vmem:[%s7012_s21 + $0x30] sm:$0xff] (!%p3784_p6)  ;;  %v393_v44 = vld [vmem:[%s7012_s21 + $0x38] sm:$0xff] (!%p3784_p6)  ;;  %v394_v46 = vld [vmem:[%s7012_s21 + $0x40] sm:$0xff] (!%p3784_p6) }
  0x98   : > { %5515 = vmatprep.subr.bf16.mxu0 %v6619_v0  ;;  %v5540_v45 = vpack.c.bf16 (!%p3784_p6), %v393_v44, %v392_v43  ;;  %v395_v47 = vld [vmem:[%s7012_s21 + $0x48] sm:$0xff] (!%p3784_p6)  ;;  %v396_v49 = vld [vmem:[%s7012_s21 + $0x50] sm:$0xff] (!%p3784_p6)  ;;  %v397_v50 = vld [vmem:[%s7012_s21 + $0x58] sm:$0xff] (!%p3784_p6) }
  0x99   : > { %v5543_v48 = vpack.c.bf16 (!%p3784_p6), %v395_v47, %v394_v46  ;;  %v5546_v51 = vpack.c.bf16 (!%p3784_p6), %v397_v50, %v396_v49  ;;  %v398_v52 = vld [vmem:[%s7012_s21 + $0x60] sm:$0xff] (!%p3784_p6)  ;;  %v399_v53 = vld [vmem:[%s7012_s21 + $0x68] sm:$0xff] (!%p3784_p6)  ;;  %v400_v55 = vld [vmem:[%s7012_s21 + $0x70] sm:$0xff] (!%p3784_p6) }
  0x9a   : > { %v5549_v54 = vpack.c.bf16 (!%p3784_p6), %v399_v53, %v398_v52  ;;  %v401_v56 = vld [vmem:[%s7012_s21 + $0x78] sm:$0xff] (!%p3784_p6) }
  0x9b   : > { %5517 = vmatpush3.bf16.msra.mxu0 %v5516_v13  ;;  %v5552_v57 = vpack.c.bf16 (!%p3784_p6), %v401_v56, %v400_v55 }
  0x9c   : > { %5518 = vmatprep.subr.bf16.mxu0 %v6619_v0 }
  0x9f   : > { %5520 = vmatpush3.bf16.msra.mxu0 %v5519_v16 }
  0xa0   : > { %5521 = vmatprep.subr.bf16.mxu0 %v6619_v0 }
  0xa3   : > { %5523 = vmatpush3.bf16.msra.mxu0 %v5522_v19 }
  0xa4   : > { %5524 = vmatprep.subr.bf16.mxu0 %v6619_v0 }
  0xa7   : > { %5526 = vmatpush3.bf16.msra.mxu0 %v5525_v22 }
  0xa8   : > { %5527 = vmatprep.subr.bf16.mxu0 %v6619_v0 }
  0xab   : > { %5529 = vmatpush3.bf16.msra.mxu0 %v5528_v25 }
  0xac   : > { %5530 = vmatprep.subr.bf16.mxu0 (!%p3784_p6), %v6622_v32 }
  0xae   : > { %4419 = vmatmul.mubr.f32.vlgmr.msra.gmra.mrb[0].mxu0 %v281_v26 }
  0xaf   : > { %4453 = vmatprep.mubr.msk.f32.mxu0 (!%p3784_p6), %vm6623_vm1, %v6624_v33  ;;  %5532 = vmatpush3.bf16.msra.mxu0 (!%p3784_p6), %v5531_v37 }
  0xb0   : > { %5533 = vmatprep.subr.bf16.mxu0 (!%p3784_p6), %v6622_v32 }
  0xb3   : > { %5535 = vmatpush3.bf16.msra.mxu0 (!%p3784_p6), %v5534_v39 }
  0xb4   : > { %5536 = vmatprep.subr.bf16.mxu0 (!%p3784_p6), %v6622_v32 }
  0xb7   : > { %5538 = vmatpush3.bf16.msra.mxu0 (!%p3784_p6), %v5537_v42 }
  0xb8   : > { %5539 = vmatprep.subr.bf16.mxu0 (!%p3784_p6), %v6622_v32 }
  0xbb   : > { %5541 = vmatpush3.bf16.msra.mxu0 (!%p3784_p6), %v5540_v45 }
  0xbc   : > { %5542 = vmatprep.subr.bf16.mxu0 (!%p3784_p6), %v6622_v32 }
  0xbf   : > { %5544 = vmatpush3.bf16.msra.mxu0 (!%p3784_p6), %v5543_v48 }
  0xc0   : > { %5545 = vmatprep.subr.bf16.mxu0 (!%p3784_p6), %v6622_v32 }
  0xc3   : > { %5547 = vmatpush3.bf16.msra.mxu0 (!%p3784_p6), %v5546_v51 }
  0xc4   : > { %5548 = vmatprep.subr.bf16.mxu0 (!%p3784_p6), %v6622_v32 }
  0xc7   : > { %5550 = vmatpush3.bf16.msra.mxu0 (!%p3784_p6), %v5549_v54 }
  0xc8   : > { %5551 = vmatprep.subr.bf16.mxu0 (!%p3784_p6), %v6622_v32 }
  0xcb   : > { %5553 = vmatpush3.bf16.msra.mxu0 (!%p3784_p6), %v5552_v57 }
 0x180   : > { %379 = sbr.rel (%p3784_p6) target bundleno = 605 (0x25d), region = 56 }
 0x181   : > { %v368_v28 = vpop.f32.mrb[0].mxu0 }
 0x182   : > { %v369_v29 = vadd.f32 %v368_v28, %v301_v27  ;;  %v4420_v30 = vpop.f32.mrb[1].mxu0  ;;  %4454 = vmatmul.mubr.f32.vlgmr.msra.gmra.mrb[0].mxu0 (!%p3784_p6), %v381_v58 }
 0x184   : > { %v372_v31 = vmax.f32 %v369_v29, 0.0 }
 0x186   : > { %373 = vst [vmem:[#allocation3] sm:$0x1] %v372_v31 }
 0x18d   : > { %v475_v63 = vld [vmem:[#allocation3] sm:$0x1] }
 0x255   : > { %v470_v60 = vpop.f32.mrb[0].mxu0 }
 0x256   : > { %v471_v61 = vadd.f32 %v470_v60, %v403_v59  ;;  %v4455_v62 = vpop.f32.mrb[1].mxu0 }
 0x258   : > { %v474_v2 = vmax.f32 %v471_v61, 0.0 }
 0x25a   : > { %v476_v3 = vmax.f32 %v475_v63, %v474_v2 }
 0x25c   : > { %477 = vst [vmem:[#allocation3] sm:$0x1] %v476_v3 }
 0x25d PF: > { %s478_s23 = sadd.s32 1, %s6960_s18 }
 0x25e   : > { %s7036_s22 = sld [smem:[#allocation7 + %s478_s23]] }
 0x264   : > { %p3786_p9 = scmp.lt.s32.totalorder %s7036_s22, 0 }
 0x265   : > { %s486_s26 = sadd.s32 (!%p3786_p9), %s6964_s0, %s7036_s22  ;;  %v6625_v4 = vmov (!%p3786_p9), 0.0|0.0   ;;  %vm6626_vm2 = vmmov (!%p3786_p9), 0   ;;  %v6627_v5 = vmov (!%p3786_p9), 0.0   ;;  %s484_s21 = scalar_lea.vmem (!%p3786_p9), [#allocation2], %s7036_s22  ;;  %v579_v35 = vld [vmem:[#allocation3] sm:$0x1] (!%p3786_p9) }
 0x266   : > { %483 = sbr.rel (%p3786_p9) target bundleno = 875 (0x36b), region = 60  ;;  %5554 = vmatprep.subr.bf16.mxu0 (!%p3786_p9), %v6625_v4  ;;  %s7041_s10 = sld [smem:[#allocation6 + %s486_s26]] (!%p3786_p9)  ;;  %4488 = vmatprep.mubr.msk.f32.mxu0 (!%p3786_p9), %vm6626_vm2, %v6627_v5  ;;  %v485_v30 = vld [vmem:[%s484_s21] sm:$0x1] (!%p3786_p9) }
 0x26c   : > { %s3787_s25 = sshll.u32 (!%p3786_p9), %s7041_s10, 7  ;;  %s506_s20 = scalar_lea.vmem (!%p3786_p9), %s8101_s7, %s7041_s10 }
 0x26d   : > { %s7044_s29 = scalar_lea.vmem [#allocation13], %s3787_s25  ;;  %v507_v31 = vld [vmem:[%s506_s20] sm:$0x1] }
 0x26e   : > { %v490_v6 = vld [vmem:[%s7044_s29] sm:$0xff]  ;;  %v491_v7 = vld [vmem:[%s7044_s29 + $0x8] sm:$0xff]  ;;  %v492_v8 = vld [vmem:[%s7044_s29 + $0x10] sm:$0xff] }
 0x26f   : > { %v5555_v9 = vpack.c.bf16 %v491_v7, %v490_v6  ;;  %v493_v10 = vld [vmem:[%s7044_s29 + $0x18] sm:$0xff]  ;;  %v494_v12 = vld [vmem:[%s7044_s29 + $0x20] sm:$0xff]  ;;  %v495_v13 = vld [vmem:[%s7044_s29 + $0x28] sm:$0xff] }
 0x270   : > { %v5558_v11 = vpack.c.bf16 %v493_v10, %v492_v8  ;;  %v5561_v14 = vpack.c.bf16 %v495_v13, %v494_v12  ;;  %v496_v15 = vld [vmem:[%s7044_s29 + $0x30] sm:$0xff]  ;;  %v497_v16 = vld [vmem:[%s7044_s29 + $0x38] sm:$0xff]  ;;  %v498_v18 = vld [vmem:[%s7044_s29 + $0x40] sm:$0xff] }
 0x271   : > { %5556 = vmatpush3.bf16.msra.mxu0 %v5555_v9  ;;  %v5564_v17 = vpack.c.bf16 %v497_v16, %v496_v15  ;;  %v499_v19 = vld [vmem:[%s7044_s29 + $0x48] sm:$0xff]  ;;  %v500_v21 = vld [vmem:[%s7044_s29 + $0x50] sm:$0xff]  ;;  %v501_v22 = vld [vmem:[%s7044_s29 + $0x58] sm:$0xff] }
 0x272   : > { %5557 = vmatprep.subr.bf16.mxu0 %v6625_v4  ;;  %v5567_v20 = vpack.c.bf16 %v499_v19, %v498_v18  ;;  %v5570_v23 = vpack.c.bf16 %v501_v22, %v500_v21  ;;  %v502_v24 = vld [vmem:[%s7044_s29 + $0x60] sm:$0xff]  ;;  %v503_v25 = vld [vmem:[%s7044_s29 + $0x68] sm:$0xff]  ;;  %v504_v27 = vld [vmem:[%s7044_s29 + $0x70] sm:$0xff] }
 0x273   : > { %v5573_v26 = vpack.c.bf16 %v503_v25, %v502_v24  ;;  %v505_v28 = vld [vmem:[%s7044_s29 + $0x78] sm:$0xff] }
 0x274   : > { %v5576_v29 = vpack.c.bf16 %v505_v28, %v504_v27 }
 0x275   : > { %5559 = vmatpush3.bf16.msra.mxu0 %v5558_v11 }
 0x276   : > { %5560 = vmatprep.subr.bf16.mxu0 %v6625_v4 }
 0x279   : > { %5562 = vmatpush3.bf16.msra.mxu0 %v5561_v14 }
 0x27a   : > { %5563 = vmatprep.subr.bf16.mxu0 %v6625_v4 }
 0x27d   : > { %5565 = vmatpush3.bf16.msra.mxu0 %v5564_v17 }
 0x27e   : > { %5566 = vmatprep.subr.bf16.mxu0 %v6625_v4 }
 0x281   : > { %5568 = vmatpush3.bf16.msra.mxu0 %v5567_v20 }
 0x282   : > { %5569 = vmatprep.subr.bf16.mxu0 %v6625_v4 }
 0x285   : > { %5571 = vmatpush3.bf16.msra.mxu0 %v5570_v23 }
 0x286   : > { %5572 = vmatprep.subr.bf16.mxu0 %v6625_v4 }
 0x289   : > { %5574 = vmatpush3.bf16.msra.mxu0 %v5573_v26 }
 0x28a   : > { %5575 = vmatprep.subr.bf16.mxu0 %v6625_v4 }
 0x28d   : > { %5577 = vmatpush3.bf16.msra.mxu0 %v5576_v29 }
 0x290   : > { %4489 = vmatmul.mubr.f32.vlgmr.msra.gmra.mrb[0].mxu0 %v485_v30 }
 0x363   : > { %v574_v32 = vpop.f32.mrb[0].mxu0 }
 0x364   : > { %v575_v33 = vadd.f32 %v574_v32, %v507_v31  ;;  %v4490_v34 = vpop.f32.mrb[1].mxu0 }
 0x366   : > { %v578_v36 = vmax.f32 %v575_v33, 0.0 }
 0x368   : > { %v580_v37 = vmax.f32 %v579_v35, %v578_v36 }
 0x36a   : > { %581 = vst [vmem:[#allocation3] sm:$0x1] %v580_v37 }
 0x36b PF: > { %s582_s24 = sadd.s32 2, %s6960_s18 }
 0x36c   : > { %s7068_s23 = sld [smem:[#allocation7 + %s582_s24]] }
 0x372   : > { %p3788_p10 = scmp.lt.s32.totalorder %s7068_s23, 0 }
 0x373   : > { %s590_s22 = sadd.s32 (!%p3788_p10), %s6964_s0, %s7068_s23  ;;  %v6628_v38 = vmov (!%p3788_p10), 0.0|0.0   ;;  %vm6629_vm3 = vmmov (!%p3788_p10), 0   ;;  %v6630_v39 = vmov (!%p3788_p10), 0.0   ;;  %s588_s18 = scalar_lea.vmem (!%p3788_p10), [#allocation2], %s7068_s23  ;;  %v683_v7 = vld [vmem:[#allocation3] sm:$0x1] (!%p3788_p10) }
 0x374   : > { %587 = sbr.rel (%p3788_p10) target bundleno = 1145 (0x479), region = 64  ;;  %5578 = vmatprep.subr.bf16.mxu0 (!%p3788_p10), %v6628_v38  ;;  %s7073_s26 = sld [smem:[#allocation6 + %s590_s22]] (!%p3788_p10)  ;;  %4523 = vmatprep.mubr.msk.f32.mxu0 (!%p3788_p10), %vm6629_vm3, %v6630_v39  ;;  %v589_v2 = vld [vmem:[%s588_s18] sm:$0x1] (!%p3788_p10) }
 0x37a   : > { %s3789_s10 = sshll.u32 (!%p3788_p10), %s7073_s26, 7  ;;  %s610_s16 = scalar_lea.vmem (!%p3788_p10), %s8101_s7, %s7073_s26 }
 0x37b   : > { %s7076_s25 = scalar_lea.vmem [#allocation13], %s3789_s10  ;;  %v611_v3 = vld [vmem:[%s610_s16] sm:$0x1] }
 0x37c   : > { %v594_v40 = vld [vmem:[%s7076_s25] sm:$0xff]  ;;  %v595_v41 = vld [vmem:[%s7076_s25 + $0x8] sm:$0xff]  ;;  %v596_v42 = vld [vmem:[%s7076_s25 + $0x10] sm:$0xff] }
 0x37d   : > { %v5579_v43 = vpack.c.bf16 %v595_v41, %v594_v40  ;;  %v597_v44 = vld [vmem:[%s7076_s25 + $0x18] sm:$0xff]  ;;  %v598_v46 = vld [vmem:[%s7076_s25 + $0x20] sm:$0xff]  ;;  %v599_v47 = vld [vmem:[%s7076_s25 + $0x28] sm:$0xff] }
 0x37e   : > { %v5582_v45 = vpack.c.bf16 %v597_v44, %v596_v42  ;;  %v5585_v48 = vpack.c.bf16 %v599_v47, %v598_v46  ;;  %v600_v49 = vld [vmem:[%s7076_s25 + $0x30] sm:$0xff]  ;;  %v601_v50 = vld [vmem:[%s7076_s25 + $0x38] sm:$0xff]  ;;  %v602_v52 = vld [vmem:[%s7076_s25 + $0x40] sm:$0xff] }
 0x37f   : > { %5580 = vmatpush3.bf16.msra.mxu0 %v5579_v43  ;;  %v5588_v51 = vpack.c.bf16 %v601_v50, %v600_v49  ;;  %v603_v53 = vld [vmem:[%s7076_s25 + $0x48] sm:$0xff]  ;;  %v604_v55 = vld [vmem:[%s7076_s25 + $0x50] sm:$0xff]  ;;  %v605_v56 = vld [vmem:[%s7076_s25 + $0x58] sm:$0xff] }
 0x380   : > { %5581 = vmatprep.subr.bf16.mxu0 %v6628_v38  ;;  %v5591_v54 = vpack.c.bf16 %v603_v53, %v602_v52  ;;  %v5594_v57 = vpack.c.bf16 %v605_v56, %v604_v55  ;;  %v606_v58 = vld [vmem:[%s7076_s25 + $0x60] sm:$0xff]  ;;  %v607_v59 = vld [vmem:[%s7076_s25 + $0x68] sm:$0xff]  ;;  %v608_v61 = vld [vmem:[%s7076_s25 + $0x70] sm:$0xff] }
 0x381   : > { %v5597_v60 = vpack.c.bf16 %v607_v59, %v606_v58  ;;  %v609_v62 = vld [vmem:[%s7076_s25 + $0x78] sm:$0xff] }
 0x382   : > { %v5600_v63 = vpack.c.bf16 %v609_v62, %v608_v61 }
 0x383   : > { %5583 = vmatpush3.bf16.msra.mxu0 %v5582_v45 }
 0x384   : > { %5584 = vmatprep.subr.bf16.mxu0 %v6628_v38 }
 0x387   : > { %5586 = vmatpush3.bf16.msra.mxu0 %v5585_v48 }
 0x388   : > { %5587 = vmatprep.subr.bf16.mxu0 %v6628_v38 }
 0x38b   : > { %5589 = vmatpush3.bf16.msra.mxu0 %v5588_v51 }
 0x38c   : > { %5590 = vmatprep.subr.bf16.mxu0 %v6628_v38 }
 0x38f   : > { %5592 = vmatpush3.bf16.msra.mxu0 %v5591_v54 }
 0x390   : > { %5593 = vmatprep.subr.bf16.mxu0 %v6628_v38 }
 0x393   : > { %5595 = vmatpush3.bf16.msra.mxu0 %v5594_v57 }
 0x394   : > { %5596 = vmatprep.subr.bf16.mxu0 %v6628_v38 }
 0x397   : > { %5598 = vmatpush3.bf16.msra.mxu0 %v5597_v60 }
 0x398   : > { %5599 = vmatprep.subr.bf16.mxu0 %v6628_v38 }
 0x39b   : > { %5601 = vmatpush3.bf16.msra.mxu0 %v5600_v63 }
 0x39e   : > { %4524 = vmatmul.mubr.f32.vlgmr.msra.gmra.mrb[0].mxu0 %v589_v2 }
 0x471   : > { %v678_v4 = vpop.f32.mrb[0].mxu0 }
 0x472   : > { %v679_v5 = vadd.f32 %v678_v4, %v611_v3  ;;  %v4525_v6 = vpop.f32.mrb[1].mxu0 }
 0x474   : > { %v682_v8 = vmax.f32 %v679_v5, 0.0 }
 0x476   : > { %v684_v9 = vmax.f32 %v683_v7, %v682_v8 }
 0x478   : > { %685 = vst [vmem:[#allocation3] sm:$0x1] %v684_v9 }
 0x479 PF: > { %5602 = vmatprep.subr.bf16.mxu0 %v6619_v0  ;;  %s688_s27 = sadd.s32 1, %s6964_s0  ;;  %4558 = vmatprep.mubr.msk.f32.mxu0 %vm6620_vm0, %v6621_v1  ;;  %v690_v35 = vld [vmem:[%s6949_s11 + $0x1] sm:$0x1] }
 0x47a   : > { %s7103_s20 = sld [smem:[#allocation5 + %s688_s27]]  ;;  %s7105_s24 = smul.u32 3, %s688_s27 }
 0x47c   : > { %s7108_s23 = sld [smem:[#allocation7 + %s7105_s24]] }
 0x47f   : > { %v686_v10 = vld [vmem:[#allocation3] sm:$0x1] }
 0x480   : > { %687 = vst [vmem:[#allocation2] sm:$0x1] %v686_v10  ;;  %s3790_s22 = sshll.u32 %s7103_s20, 7  ;;  %s709_s18 = scalar_lea.vmem %s8099_s5, %s7103_s20 }
 0x481   : > { %s7111_s26 = scalar_lea.vmem [#allocation11], %s3790_s22  ;;  %v710_v36 = vld [vmem:[%s709_s18] sm:$0x1] }
 0x482   : > { %v693_v11 = vld [vmem:[%s7111_s26] sm:$0xff]  ;;  %v694_v12 = vld [vmem:[%s7111_s26 + $0x8] sm:$0xff]  ;;  %v695_v13 = vld [vmem:[%s7111_s26 + $0x10] sm:$0xff]  ;;  %p3791_p12 = scmp.lt.s32.totalorder %s7108_s23, 0 }
 0x483   : > { %v5603_v14 = vpack.c.bf16 %v694_v12, %v693_v11  ;;  %v696_v15 = vld [vmem:[%s7111_s26 + $0x18] sm:$0xff]  ;;  %v697_v17 = vld [vmem:[%s7111_s26 + $0x20] sm:$0xff]  ;;  %v698_v18 = vld [vmem:[%s7111_s26 + $0x28] sm:$0xff]  ;;  %s791_s29 = sadd.s32 (!%p3791_p12), %s6964_s0, %s7108_s23  ;;  %v6631_v41 = vmov (!%p3791_p12), 0.0|0.0   ;;  %vm6632_vm4 = vmmov (!%p3791_p12), 0   ;;  %v6633_v42 = vmov (!%p3791_p12), 0.0  }
 0x484   : > { %v5606_v16 = vpack.c.bf16 %v696_v15, %v695_v13  ;;  %v5609_v19 = vpack.c.bf16 %v698_v18, %v697_v17  ;;  %v699_v20 = vld [vmem:[%s7111_s26 + $0x30] sm:$0xff]  ;;  %v700_v21 = vld [vmem:[%s7111_s26 + $0x38] sm:$0xff]  ;;  %v701_v23 = vld [vmem:[%s7111_s26 + $0x40] sm:$0xff]  ;;  %s7144_s21 = sld [smem:[#allocation6 + %s791_s29]] (!%p3791_p12)  ;;  %s789_s20 = scalar_lea.vmem (!%p3791_p12), [#allocation2], %s7108_s23 }
 0x485   : > { %5604 = vmatpush3.bf16.msra.mxu0 %v5603_v14  ;;  %v5612_v22 = vpack.c.bf16 %v700_v21, %v699_v20  ;;  %v702_v24 = vld [vmem:[%s7111_s26 + $0x48] sm:$0xff]  ;;  %v703_v26 = vld [vmem:[%s7111_s26 + $0x50] sm:$0xff]  ;;  %v704_v27 = vld [vmem:[%s7111_s26 + $0x58] sm:$0xff] }
 0x486   : > { %5605 = vmatprep.subr.bf16.mxu0 %v6619_v0  ;;  %v5615_v25 = vpack.c.bf16 %v702_v24, %v701_v23  ;;  %v5618_v28 = vpack.c.bf16 %v704_v27, %v703_v26  ;;  %v705_v29 = vld [vmem:[%s7111_s26 + $0x60] sm:$0xff]  ;;  %v706_v30 = vld [vmem:[%s7111_s26 + $0x68] sm:$0xff]  ;;  %v707_v32 = vld [vmem:[%s7111_s26 + $0x70] sm:$0xff] }
 0x487   : > { %v5621_v31 = vpack.c.bf16 %v706_v30, %v705_v29  ;;  %v708_v33 = vld [vmem:[%s7111_s26 + $0x78] sm:$0xff]  ;;  %v790_v5 = vld [vmem:[%s789_s20] sm:$0x1] (!%p3791_p12) }
 0x488   : > { %v5624_v34 = vpack.c.bf16 %v708_v33, %v707_v32 }
 0x489   : > { %5607 = vmatpush3.bf16.msra.mxu0 %v5606_v16 }
 0x48a   : > { %5608 = vmatprep.subr.bf16.mxu0 %v6619_v0  ;;  %s3792_s16 = sshll.u32 (!%p3791_p12), %s7144_s21, 7  ;;  %s811_s10 = scalar_lea.vmem (!%p3791_p12), %s8101_s7, %s7144_s21 }
 0x48b   : > { %s7147_s27 = scalar_lea.vmem (!%p3791_p12), [#allocation13], %s3792_s16  ;;  %v812_v6 = vld [vmem:[%s811_s10] sm:$0x1] (!%p3791_p12) }
 0x48c   : > { %v795_v43 = vld [vmem:[%s7147_s27] sm:$0xff] (!%p3791_p12)  ;;  %v796_v44 = vld [vmem:[%s7147_s27 + $0x8] sm:$0xff] (!%p3791_p12)  ;;  %v797_v45 = vld [vmem:[%s7147_s27 + $0x10] sm:$0xff] (!%p3791_p12) }
 0x48d   : > { %5610 = vmatpush3.bf16.msra.mxu0 %v5609_v19  ;;  %v5627_v46 = vpack.c.bf16 (!%p3791_p12), %v796_v44, %v795_v43  ;;  %v798_v47 = vld [vmem:[%s7147_s27 + $0x18] sm:$0xff] (!%p3791_p12)  ;;  %v799_v49 = vld [vmem:[%s7147_s27 + $0x20] sm:$0xff] (!%p3791_p12)  ;;  %v800_v50 = vld [vmem:[%s7147_s27 + $0x28] sm:$0xff] (!%p3791_p12) }
 0x48e   : > { %5611 = vmatprep.subr.bf16.mxu0 %v6619_v0  ;;  %v5630_v48 = vpack.c.bf16 (!%p3791_p12), %v798_v47, %v797_v45  ;;  %v5633_v51 = vpack.c.bf16 (!%p3791_p12), %v800_v50, %v799_v49  ;;  %v801_v52 = vld [vmem:[%s7147_s27 + $0x30] sm:$0xff] (!%p3791_p12)  ;;  %v802_v53 = vld [vmem:[%s7147_s27 + $0x38] sm:$0xff] (!%p3791_p12)  ;;  %v803_v55 = vld [vmem:[%s7147_s27 + $0x40] sm:$0xff] (!%p3791_p12) }
 0x48f   : > { %v5636_v54 = vpack.c.bf16 (!%p3791_p12), %v802_v53, %v801_v52  ;;  %v804_v56 = vld [vmem:[%s7147_s27 + $0x48] sm:$0xff] (!%p3791_p12)  ;;  %v805_v58 = vld [vmem:[%s7147_s27 + $0x50] sm:$0xff] (!%p3791_p12)  ;;  %v806_v59 = vld [vmem:[%s7147_s27 + $0x58] sm:$0xff] (!%p3791_p12) }
 0x490   : > { %v5639_v57 = vpack.c.bf16 (!%p3791_p12), %v804_v56, %v803_v55  ;;  %v5642_v60 = vpack.c.bf16 (!%p3791_p12), %v806_v59, %v805_v58  ;;  %v807_v61 = vld [vmem:[%s7147_s27 + $0x60] sm:$0xff] (!%p3791_p12)  ;;  %v808_v62 = vld [vmem:[%s7147_s27 + $0x68] sm:$0xff] (!%p3791_p12)  ;;  %v809_v2 = vld [vmem:[%s7147_s27 + $0x70] sm:$0xff] (!%p3791_p12) }
 0x491   : > { %5613 = vmatpush3.bf16.msra.mxu0 %v5612_v22  ;;  %v5645_v63 = vpack.c.bf16 (!%p3791_p12), %v808_v62, %v807_v61  ;;  %v810_v3 = vld [vmem:[%s7147_s27 + $0x78] sm:$0xff] (!%p3791_p12) }
 0x492   : > { %5614 = vmatprep.subr.bf16.mxu0 %v6619_v0  ;;  %v5648_v4 = vpack.c.bf16 (!%p3791_p12), %v810_v3, %v809_v2 }
 0x495   : > { %5616 = vmatpush3.bf16.msra.mxu0 %v5615_v25 }
 0x496   : > { %5617 = vmatprep.subr.bf16.mxu0 %v6619_v0 }
 0x499   : > { %5619 = vmatpush3.bf16.msra.mxu0 %v5618_v28 }
 0x49a   : > { %5620 = vmatprep.subr.bf16.mxu0 %v6619_v0 }
 0x49d   : > { %5622 = vmatpush3.bf16.msra.mxu0 %v5621_v31 }
 0x49e   : > { %5623 = vmatprep.subr.bf16.mxu0 %v6619_v0 }
 0x4a1   : > { %5625 = vmatpush3.bf16.msra.mxu0 %v5624_v34 }
 0x4a2   : > { %5626 = vmatprep.subr.bf16.mxu0 (!%p3791_p12), %v6631_v41 }
 0x4a4   : > { %4559 = vmatmul.mubr.f32.vlgmr.msra.gmra.mrb[0].mxu0 %v690_v35 }
 0x4a5   : > { %4593 = vmatprep.mubr.msk.f32.mxu0 (!%p3791_p12), %vm6632_vm4, %v6633_v42  ;;  %5628 = vmatpush3.bf16.msra.mxu0 (!%p3791_p12), %v5627_v46 }
 0x4a6   : > { %5629 = vmatprep.subr.bf16.mxu0 (!%p3791_p12), %v6631_v41 }
 0x4a9   : > { %5631 = vmatpush3.bf16.msra.mxu0 (!%p3791_p12), %v5630_v48 }
 0x4aa   : > { %5632 = vmatprep.subr.bf16.mxu0 (!%p3791_p12), %v6631_v41 }
 0x4ad   : > { %5634 = vmatpush3.bf16.msra.mxu0 (!%p3791_p12), %v5633_v51 }
 0x4ae   : > { %5635 = vmatprep.subr.bf16.mxu0 (!%p3791_p12), %v6631_v41 }
 0x4b1   : > { %5637 = vmatpush3.bf16.msra.mxu0 (!%p3791_p12), %v5636_v54 }
 0x4b2   : > { %5638 = vmatprep.subr.bf16.mxu0 (!%p3791_p12), %v6631_v41 }
 0x4b5   : > { %5640 = vmatpush3.bf16.msra.mxu0 (!%p3791_p12), %v5639_v57 }
 0x4b6   : > { %5641 = vmatprep.subr.bf16.mxu0 (!%p3791_p12), %v6631_v41 }
 0x4b9   : > { %5643 = vmatpush3.bf16.msra.mxu0 (!%p3791_p12), %v5642_v60 }
 0x4ba   : > { %5644 = vmatprep.subr.bf16.mxu0 (!%p3791_p12), %v6631_v41 }
 0x4bd   : > { %5646 = vmatpush3.bf16.msra.mxu0 (!%p3791_p12), %v5645_v63 }
 0x4be   : > { %5647 = vmatprep.subr.bf16.mxu0 (!%p3791_p12), %v6631_v41 }
 0x4c1   : > { %5649 = vmatpush3.bf16.msra.mxu0 (!%p3791_p12), %v5648_v4 }
 0x576   : > { %788 = sbr.rel (%p3791_p12) target bundleno = 1619 (0x653), region = 68 }
 0x577   : > { %v777_v37 = vpop.f32.mrb[0].mxu0 }
 0x578   : > { %v778_v38 = vadd.f32 %v777_v37, %v710_v36  ;;  %v4560_v39 = vpop.f32.mrb[1].mxu0  ;;  %4594 = vmatmul.mubr.f32.vlgmr.msra.gmra.mrb[0].mxu0 (!%p3791_p12), %v790_v5 }
 0x57a   : > { %v781_v40 = vmax.f32 %v778_v38, 0.0 }
 0x57c   : > { %782 = vst [vmem:[#allocation3] sm:$0x1] %v781_v40 }
 0x583   : > { %v884_v10 = vld [vmem:[#allocation3] sm:$0x1] }
 0x64b   : > { %v879_v7 = vpop.f32.mrb[0].mxu0 }
 0x64c   : > { %v880_v8 = vadd.f32 %v879_v7, %v812_v6  ;;  %v4595_v9 = vpop.f32.mrb[1].mxu0 }
 0x64e   : > { %v883_v11 = vmax.f32 %v880_v8, 0.0 }
 0x650   : > { %v885_v12 = vmax.f32 %v884_v10, %v883_v11 }
 0x652   : > { %886 = vst [vmem:[#allocation3] sm:$0x1] %v885_v12 }
 0x653 PF: > { %s887_s25 = sadd.s32 1, %s7105_s24 }
 0x654   : > { %s7171_s18 = sld [smem:[#allocation7 + %s887_s25]] }
 0x65a   : > { %p3793_p2 = scmp.lt.s32.totalorder %s7171_s18, 0 }
 0x65b   : > { %s895_s23 = sadd.s32 (!%p3793_p2), %s6964_s0, %s7171_s18  ;;  %v6634_v13 = vmov (!%p3793_p2), 0.0|0.0   ;;  %vm6635_vm5 = vmmov (!%p3793_p2), 0   ;;  %v6636_v14 = vmov (!%p3793_p2), 0.0   ;;  %s893_s27 = scalar_lea.vmem (!%p3793_p2), [#allocation2], %s7171_s18  ;;  %v988_v44 = vld [vmem:[#allocation3] sm:$0x1] (!%p3793_p2) }
 0x65c   : > { %892 = sbr.rel (%p3793_p2) target bundleno = 1889 (0x761), region = 72  ;;  %5650 = vmatprep.subr.bf16.mxu0 (!%p3793_p2), %v6634_v13  ;;  %s7176_s29 = sld [smem:[#allocation6 + %s895_s23]] (!%p3793_p2)  ;;  %4628 = vmatprep.mubr.msk.f32.mxu0 (!%p3793_p2), %vm6635_vm5, %v6636_v14  ;;  %v894_v39 = vld [vmem:[%s893_s27] sm:$0x1] (!%p3793_p2) }
 0x662   : > { %s3794_s21 = sshll.u32 (!%p3793_p2), %s7176_s29, 7  ;;  %s915_s26 = scalar_lea.vmem (!%p3793_p2), %s8101_s7, %s7176_s29 }
 0x663   : > { %s7179_s16 = scalar_lea.vmem [#allocation13], %s3794_s21  ;;  %v916_v40 = vld [vmem:[%s915_s26] sm:$0x1] }
 0x664   : > { %v899_v15 = vld [vmem:[%s7179_s16] sm:$0xff]  ;;  %v900_v16 = vld [vmem:[%s7179_s16 + $0x8] sm:$0xff]  ;;  %v901_v17 = vld [vmem:[%s7179_s16 + $0x10] sm:$0xff] }
 0x665   : > { %v5651_v18 = vpack.c.bf16 %v900_v16, %v899_v15  ;;  %v902_v19 = vld [vmem:[%s7179_s16 + $0x18] sm:$0xff]  ;;  %v903_v21 = vld [vmem:[%s7179_s16 + $0x20] sm:$0xff]  ;;  %v904_v22 = vld [vmem:[%s7179_s16 + $0x28] sm:$0xff] }
 0x666   : > { %v5654_v20 = vpack.c.bf16 %v902_v19, %v901_v17  ;;  %v5657_v23 = vpack.c.bf16 %v904_v22, %v903_v21  ;;  %v905_v24 = vld [vmem:[%s7179_s16 + $0x30] sm:$0xff]  ;;  %v906_v25 = vld [vmem:[%s7179_s16 + $0x38] sm:$0xff]  ;;  %v907_v27 = vld [vmem:[%s7179_s16 + $0x40] sm:$0xff] }
 0x667   : > { %5652 = vmatpush3.bf16.msra.mxu0 %v5651_v18  ;;  %v5660_v26 = vpack.c.bf16 %v906_v25, %v905_v24  ;;  %v908_v28 = vld [vmem:[%s7179_s16 + $0x48] sm:$0xff]  ;;  %v909_v30 = vld [vmem:[%s7179_s16 + $0x50] sm:$0xff]  ;;  %v910_v31 = vld [vmem:[%s7179_s16 + $0x58] sm:$0xff] }
 0x668   : > { %5653 = vmatprep.subr.bf16.mxu0 %v6634_v13  ;;  %v5663_v29 = vpack.c.bf16 %v908_v28, %v907_v27  ;;  %v5666_v32 = vpack.c.bf16 %v910_v31, %v909_v30  ;;  %v911_v33 = vld [vmem:[%s7179_s16 + $0x60] sm:$0xff]  ;;  %v912_v34 = vld [vmem:[%s7179_s16 + $0x68] sm:$0xff]  ;;  %v913_v36 = vld [vmem:[%s7179_s16 + $0x70] sm:$0xff] }
 0x669   : > { %v5669_v35 = vpack.c.bf16 %v912_v34, %v911_v33  ;;  %v914_v37 = vld [vmem:[%s7179_s16 + $0x78] sm:$0xff] }
 0x66a   : > { %v5672_v38 = vpack.c.bf16 %v914_v37, %v913_v36 }
 0x66b   : > { %5655 = vmatpush3.bf16.msra.mxu0 %v5654_v20 }
 0x66c   : > { %5656 = vmatprep.subr.bf16.mxu0 %v6634_v13 }
 0x66f   : > { %5658 = vmatpush3.bf16.msra.mxu0 %v5657_v23 }
 0x670   : > { %5659 = vmatprep.subr.bf16.mxu0 %v6634_v13 }
 0x673   : > { %5661 = vmatpush3.bf16.msra.mxu0 %v5660_v26 }
 0x674   : > { %5662 = vmatprep.subr.bf16.mxu0 %v6634_v13 }
 0x677   : > { %5664 = vmatpush3.bf16.msra.mxu0 %v5663_v29 }
 0x678   : > { %5665 = vmatprep.subr.bf16.mxu0 %v6634_v13 }
 0x67b   : > { %5667 = vmatpush3.bf16.msra.mxu0 %v5666_v32 }
 0x67c   : > { %5668 = vmatprep.subr.bf16.mxu0 %v6634_v13 }
 0x67f   : > { %5670 = vmatpush3.bf16.msra.mxu0 %v5669_v35 }
 0x680   : > { %5671 = vmatprep.subr.bf16.mxu0 %v6634_v13 }
 0x683   : > { %5673 = vmatpush3.bf16.msra.mxu0 %v5672_v38 }
 0x686   : > { %4629 = vmatmul.mubr.f32.vlgmr.msra.gmra.mrb[0].mxu0 %v894_v39 }
 0x759   : > { %v983_v41 = vpop.f32.mrb[0].mxu0 }
 0x75a   : > { %v984_v42 = vadd.f32 %v983_v41, %v916_v40  ;;  %v4630_v43 = vpop.f32.mrb[1].mxu0 }
 0x75c   : > { %v987_v45 = vmax.f32 %v984_v42, 0.0 }
 0x75e   : > { %v989_v46 = vmax.f32 %v988_v44, %v987_v45 }
 0x760   : > { %990 = vst [vmem:[#allocation3] sm:$0x1] %v989_v46 }
 0x761 PF: > { %s991_s10 = sadd.s32 2, %s7105_s24 }
 0x762   : > { %s7203_s25 = sld [smem:[#allocation7 + %s991_s10]] }
 0x768   : > { %p3795_p4 = scmp.lt.s32.totalorder %s7203_s25, 0 }
 0x769   : > { %s999_s18 = sadd.s32 (!%p3795_p4), %s6964_s0, %s7203_s25  ;;  %v6637_v47 = vmov (!%p3795_p4), 0.0|0.0   ;;  %vm6638_vm6 = vmmov (!%p3795_p4), 0   ;;  %v6639_v48 = vmov (!%p3795_p4), 0.0   ;;  %s997_s24 = scalar_lea.vmem (!%p3795_p4), [#allocation2], %s7203_s25  ;;  %v1092_v16 = vld [vmem:[#allocation3] sm:$0x1] (!%p3795_p4) }
 0x76a   : > { %996 = sbr.rel (%p3795_p4) target bundleno = 2159 (0x86f), region = 76  ;;  %5674 = vmatprep.subr.bf16.mxu0 (!%p3795_p4), %v6637_v47  ;;  %s7208_s23 = sld [smem:[#allocation6 + %s999_s18]] (!%p3795_p4)  ;;  %4663 = vmatprep.mubr.msk.f32.mxu0 (!%p3795_p4), %vm6638_vm6, %v6639_v48  ;;  %v998_v11 = vld [vmem:[%s997_s24] sm:$0x1] (!%p3795_p4) }
 0x770   : > { %s3796_s29 = sshll.u32 (!%p3795_p4), %s7208_s23, 7  ;;  %s1019_s20 = scalar_lea.vmem (!%p3795_p4), %s8101_s7, %s7208_s23 }
 0x771   : > { %s7211_s21 = scalar_lea.vmem [#allocation13], %s3796_s29  ;;  %v1020_v12 = vld [vmem:[%s1019_s20] sm:$0x1] }
 0x772   : > { %v1003_v49 = vld [vmem:[%s7211_s21] sm:$0xff]  ;;  %v1004_v50 = vld [vmem:[%s7211_s21 + $0x8] sm:$0xff]  ;;  %v1005_v51 = vld [vmem:[%s7211_s21 + $0x10] sm:$0xff] }
 0x773   : > { %v5675_v52 = vpack.c.bf16 %v1004_v50, %v1003_v49  ;;  %v1006_v53 = vld [vmem:[%s7211_s21 + $0x18] sm:$0xff]  ;;  %v1007_v55 = vld [vmem:[%s7211_s21 + $0x20] sm:$0xff]  ;;  %v1008_v56 = vld [vmem:[%s7211_s21 + $0x28] sm:$0xff] }
 0x774   : > { %v5678_v54 = vpack.c.bf16 %v1006_v53, %v1005_v51  ;;  %v5681_v57 = vpack.c.bf16 %v1008_v56, %v1007_v55  ;;  %v1009_v58 = vld [vmem:[%s7211_s21 + $0x30] sm:$0xff]  ;;  %v1010_v59 = vld [vmem:[%s7211_s21 + $0x38] sm:$0xff]  ;;  %v1011_v61 = vld [vmem:[%s7211_s21 + $0x40] sm:$0xff] }
 0x775   : > { %5676 = vmatpush3.bf16.msra.mxu0 %v5675_v52  ;;  %v5684_v60 = vpack.c.bf16 %v1010_v59, %v1009_v58  ;;  %v1012_v62 = vld [vmem:[%s7211_s21 + $0x48] sm:$0xff]  ;;  %v1013_v2 = vld [vmem:[%s7211_s21 + $0x50] sm:$0xff]  ;;  %v1014_v3 = vld [vmem:[%s7211_s21 + $0x58] sm:$0xff] }
 0x776   : > { %5677 = vmatprep.subr.bf16.mxu0 %v6637_v47  ;;  %v5687_v63 = vpack.c.bf16 %v1012_v62, %v1011_v61  ;;  %v5690_v4 = vpack.c.bf16 %v1014_v3, %v1013_v2  ;;  %v1015_v5 = vld [vmem:[%s7211_s21 + $0x60] sm:$0xff]  ;;  %v1016_v6 = vld [vmem:[%s7211_s21 + $0x68] sm:$0xff]  ;;  %v1017_v8 = vld [vmem:[%s7211_s21 + $0x70] sm:$0xff] }
 0x777   : > { %v5693_v7 = vpack.c.bf16 %v1016_v6, %v1015_v5  ;;  %v1018_v9 = vld [vmem:[%s7211_s21 + $0x78] sm:$0xff] }
 0x778   : > { %v5696_v10 = vpack.c.bf16 %v1018_v9, %v1017_v8 }
 0x779   : > { %5679 = vmatpush3.bf16.msra.mxu0 %v5678_v54 }
 0x77a   : > { %5680 = vmatprep.subr.bf16.mxu0 %v6637_v47 }
 0x77d   : > { %5682 = vmatpush3.bf16.msra.mxu0 %v5681_v57 }
 0x77e   : > { %5683 = vmatprep.subr.bf16.mxu0 %v6637_v47 }
 0x781   : > { %5685 = vmatpush3.bf16.msra.mxu0 %v5684_v60 }
 0x782   : > { %5686 = vmatprep.subr.bf16.mxu0 %v6637_v47 }
 0x785   : > { %5688 = vmatpush3.bf16.msra.mxu0 %v5687_v63 }
 0x786   : > { %5689 = vmatprep.subr.bf16.mxu0 %v6637_v47 }
 0x789   : > { %5691 = vmatpush3.bf16.msra.mxu0 %v5690_v4 }
 0x78a   : > { %5692 = vmatprep.subr.bf16.mxu0 %v6637_v47 }
 0x78d   : > { %5694 = vmatpush3.bf16.msra.mxu0 %v5693_v7 }
 0x78e   : > { %5695 = vmatprep.subr.bf16.mxu0 %v6637_v47 }
 0x791   : > { %5697 = vmatpush3.bf16.msra.mxu0 %v5696_v10 }
 0x794   : > { %4664 = vmatmul.mubr.f32.vlgmr.msra.gmra.mrb[0].mxu0 %v998_v11 }
 0x867   : > { %v1087_v13 = vpop.f32.mrb[0].mxu0 }
 0x868   : > { %v1088_v14 = vadd.f32 %v1087_v13, %v1020_v12  ;;  %v4665_v15 = vpop.f32.mrb[1].mxu0 }
 0x86a   : > { %v1091_v17 = vmax.f32 %v1088_v14, 0.0 }
 0x86c   : > { %v1093_v18 = vmax.f32 %v1092_v16, %v1091_v17 }
 0x86e   : > { %1094 = vst [vmem:[#allocation3] sm:$0x1] %v1093_v18 }
 0x86f PF: > { %5698 = vmatprep.subr.bf16.mxu0 %v6619_v0  ;;  %s1097_s22 = sadd.s32 2, %s6964_s0  ;;  %4698 = vmatprep.mubr.msk.f32.mxu0 %vm6620_vm0, %v6621_v1  ;;  %v1099_v44 = vld [vmem:[%s6949_s11 + $0x2] sm:$0x1] }
 0x870   : > { %s7238_s26 = sld [smem:[#allocation5 + %s1097_s22]]  ;;  %s7240_s10 = smul.u32 3, %s1097_s22 }
 0x872   : > { %s7243_s25 = sld [smem:[#allocation7 + %s7240_s10]] }
 0x875   : > { %v1095_v19 = vld [vmem:[#allocation3] sm:$0x1] }
 0x876   : > { %1096 = vst [vmem:[#allocation2 + $0x1] sm:$0x1] %v1095_v19  ;;  %s3797_s18 = sshll.u32 %s7238_s26, 7  ;;  %s1118_s24 = scalar_lea.vmem %s8099_s5, %s7238_s26 }
 0x877   : > { %s7246_s23 = scalar_lea.vmem [#allocation11], %s3797_s18  ;;  %v1119_v45 = vld [vmem:[%s1118_s24] sm:$0x1] }
 0x878   : > { %v1102_v20 = vld [vmem:[%s7246_s23] sm:$0xff]  ;;  %v1103_v21 = vld [vmem:[%s7246_s23 + $0x8] sm:$0xff]  ;;  %v1104_v22 = vld [vmem:[%s7246_s23 + $0x10] sm:$0xff]  ;;  %p3798_p7 = scmp.lt.s32.totalorder %s7243_s25, 0 }
 0x879   : > { %v5699_v23 = vpack.c.bf16 %v1103_v21, %v1102_v20  ;;  %v1105_v24 = vld [vmem:[%s7246_s23 + $0x18] sm:$0xff]  ;;  %v1106_v26 = vld [vmem:[%s7246_s23 + $0x20] sm:$0xff]  ;;  %v1107_v27 = vld [vmem:[%s7246_s23 + $0x28] sm:$0xff]  ;;  %s1200_s16 = sadd.s32 (!%p3798_p7), %s6964_s0, %s7243_s25  ;;  %v6640_v50 = vmov (!%p3798_p7), 0.0|0.0   ;;  %vm6641_vm7 = vmmov (!%p3798_p7), 0   ;;  %v6642_v51 = vmov (!%p3798_p7), 0.0  }
 0x87a   : > { %v5702_v25 = vpack.c.bf16 %v1105_v24, %v1104_v22  ;;  %v5705_v28 = vpack.c.bf16 %v1107_v27, %v1106_v26  ;;  %v1108_v29 = vld [vmem:[%s7246_s23 + $0x30] sm:$0xff]  ;;  %v1109_v30 = vld [vmem:[%s7246_s23 + $0x38] sm:$0xff]  ;;  %v1110_v32 = vld [vmem:[%s7246_s23 + $0x40] sm:$0xff]  ;;  %s7279_s27 = sld [smem:[#allocation6 + %s1200_s16]] (!%p3798_p7)  ;;  %s1198_s26 = scalar_lea.vmem (!%p3798_p7), [#allocation2], %s7243_s25 }
 0x87b   : > { %5700 = vmatpush3.bf16.msra.mxu0 %v5699_v23  ;;  %v5708_v31 = vpack.c.bf16 %v1109_v30, %v1108_v29  ;;  %v1111_v33 = vld [vmem:[%s7246_s23 + $0x48] sm:$0xff]  ;;  %v1112_v35 = vld [vmem:[%s7246_s23 + $0x50] sm:$0xff]  ;;  %v1113_v36 = vld [vmem:[%s7246_s23 + $0x58] sm:$0xff] }
 0x87c   : > { %5701 = vmatprep.subr.bf16.mxu0 %v6619_v0  ;;  %v5711_v34 = vpack.c.bf16 %v1111_v33, %v1110_v32  ;;  %v5714_v37 = vpack.c.bf16 %v1113_v36, %v1112_v35  ;;  %v1114_v38 = vld [vmem:[%s7246_s23 + $0x60] sm:$0xff]  ;;  %v1115_v39 = vld [vmem:[%s7246_s23 + $0x68] sm:$0xff]  ;;  %v1116_v41 = vld [vmem:[%s7246_s23 + $0x70] sm:$0xff] }
 0x87d   : > { %v5717_v40 = vpack.c.bf16 %v1115_v39, %v1114_v38  ;;  %v1117_v42 = vld [vmem:[%s7246_s23 + $0x78] sm:$0xff]  ;;  %v1199_v14 = vld [vmem:[%s1198_s26] sm:$0x1] (!%p3798_p7) }
 0x87e   : > { %v5720_v43 = vpack.c.bf16 %v1117_v42, %v1116_v41 }
 0x87f   : > { %5703 = vmatpush3.bf16.msra.mxu0 %v5702_v25 }
 0x880   : > { %5704 = vmatprep.subr.bf16.mxu0 %v6619_v0  ;;  %s3799_s20 = sshll.u32 (!%p3798_p7), %s7279_s27, 7  ;;  %s1220_s29 = scalar_lea.vmem (!%p3798_p7), %s8101_s7, %s7279_s27 }
 0x881   : > { %s7282_s22 = scalar_lea.vmem (!%p3798_p7), [#allocation13], %s3799_s20  ;;  %v1221_v15 = vld [vmem:[%s1220_s29] sm:$0x1] (!%p3798_p7) }
 0x882   : > { %v1204_v52 = vld [vmem:[%s7282_s22] sm:$0xff] (!%p3798_p7)  ;;  %v1205_v53 = vld [vmem:[%s7282_s22 + $0x8] sm:$0xff] (!%p3798_p7)  ;;  %v1206_v54 = vld [vmem:[%s7282_s22 + $0x10] sm:$0xff] (!%p3798_p7) }
 0x883   : > { %5706 = vmatpush3.bf16.msra.mxu0 %v5705_v28  ;;  %v5723_v55 = vpack.c.bf16 (!%p3798_p7), %v1205_v53, %v1204_v52  ;;  %v1207_v56 = vld [vmem:[%s7282_s22 + $0x18] sm:$0xff] (!%p3798_p7)  ;;  %v1208_v58 = vld [vmem:[%s7282_s22 + $0x20] sm:$0xff] (!%p3798_p7)  ;;  %v1209_v59 = vld [vmem:[%s7282_s22 + $0x28] sm:$0xff] (!%p3798_p7) }
 0x884   : > { %5707 = vmatprep.subr.bf16.mxu0 %v6619_v0  ;;  %v5726_v57 = vpack.c.bf16 (!%p3798_p7), %v1207_v56, %v1206_v54  ;;  %v5729_v60 = vpack.c.bf16 (!%p3798_p7), %v1209_v59, %v1208_v58  ;;  %v1210_v61 = vld [vmem:[%s7282_s22 + $0x30] sm:$0xff] (!%p3798_p7)  ;;  %v1211_v62 = vld [vmem:[%s7282_s22 + $0x38] sm:$0xff] (!%p3798_p7)  ;;  %v1212_v2 = vld [vmem:[%s7282_s22 + $0x40] sm:$0xff] (!%p3798_p7) }
 0x885   : > { %v5732_v63 = vpack.c.bf16 (!%p3798_p7), %v1211_v62, %v1210_v61  ;;  %v1213_v3 = vld [vmem:[%s7282_s22 + $0x48] sm:$0xff] (!%p3798_p7)  ;;  %v1214_v5 = vld [vmem:[%s7282_s22 + $0x50] sm:$0xff] (!%p3798_p7)  ;;  %v1215_v6 = vld [vmem:[%s7282_s22 + $0x58] sm:$0xff] (!%p3798_p7) }
 0x886   : > { %v5735_v4 = vpack.c.bf16 (!%p3798_p7), %v1213_v3, %v1212_v2  ;;  %v5738_v7 = vpack.c.bf16 (!%p3798_p7), %v1215_v6, %v1214_v5  ;;  %v1216_v8 = vld [vmem:[%s7282_s22 + $0x60] sm:$0xff] (!%p3798_p7)  ;;  %v1217_v9 = vld [vmem:[%s7282_s22 + $0x68] sm:$0xff] (!%p3798_p7)  ;;  %v1218_v11 = vld [vmem:[%s7282_s22 + $0x70] sm:$0xff] (!%p3798_p7) }
 0x887   : > { %5709 = vmatpush3.bf16.msra.mxu0 %v5708_v31  ;;  %v5741_v10 = vpack.c.bf16 (!%p3798_p7), %v1217_v9, %v1216_v8  ;;  %v1219_v12 = vld [vmem:[%s7282_s22 + $0x78] sm:$0xff] (!%p3798_p7) }
 0x888   : > { %5710 = vmatprep.subr.bf16.mxu0 %v6619_v0  ;;  %v5744_v13 = vpack.c.bf16 (!%p3798_p7), %v1219_v12, %v1218_v11 }
 0x88b   : > { %5712 = vmatpush3.bf16.msra.mxu0 %v5711_v34 }
 0x88c   : > { %5713 = vmatprep.subr.bf16.mxu0 %v6619_v0 }
 0x88f   : > { %5715 = vmatpush3.bf16.msra.mxu0 %v5714_v37 }
 0x890   : > { %5716 = vmatprep.subr.bf16.mxu0 %v6619_v0 }
 0x893   : > { %5718 = vmatpush3.bf16.msra.mxu0 %v5717_v40 }
 0x894   : > { %5719 = vmatprep.subr.bf16.mxu0 %v6619_v0 }
 0x897   : > { %5721 = vmatpush3.bf16.msra.mxu0 %v5720_v43 }
 0x898   : > { %5722 = vmatprep.subr.bf16.mxu0 (!%p3798_p7), %v6640_v50 }
 0x89a   : > { %4699 = vmatmul.mubr.f32.vlgmr.msra.gmra.mrb[0].mxu0 %v1099_v44 }
 0x89b   : > { %4733 = vmatprep.mubr.msk.f32.mxu0 (!%p3798_p7), %vm6641_vm7, %v6642_v51  ;;  %5724 = vmatpush3.bf16.msra.mxu0 (!%p3798_p7), %v5723_v55 }
 0x89c   : > { %5725 = vmatprep.subr.bf16.mxu0 (!%p3798_p7), %v6640_v50 }
 0x89f   : > { %5727 = vmatpush3.bf16.msra.mxu0 (!%p3798_p7), %v5726_v57 }
 0x8a0   : > { %5728 = vmatprep.subr.bf16.mxu0 (!%p3798_p7), %v6640_v50 }
 0x8a3   : > { %5730 = vmatpush3.bf16.msra.mxu0 (!%p3798_p7), %v5729_v60 }
 0x8a4   : > { %5731 = vmatprep.subr.bf16.mxu0 (!%p3798_p7), %v6640_v50 }
 0x8a7   : > { %5733 = vmatpush3.bf16.msra.mxu0 (!%p3798_p7), %v5732_v63 }
 0x8a8   : > { %5734 = vmatprep.subr.bf16.mxu0 (!%p3798_p7), %v6640_v50 }
 0x8ab   : > { %5736 = vmatpush3.bf16.msra.mxu0 (!%p3798_p7), %v5735_v4 }
 0x8ac   : > { %5737 = vmatprep.subr.bf16.mxu0 (!%p3798_p7), %v6640_v50 }
 0x8af   : > { %5739 = vmatpush3.bf16.msra.mxu0 (!%p3798_p7), %v5738_v7 }
 0x8b0   : > { %5740 = vmatprep.subr.bf16.mxu0 (!%p3798_p7), %v6640_v50 }
 0x8b3   : > { %5742 = vmatpush3.bf16.msra.mxu0 (!%p3798_p7), %v5741_v10 }
 0x8b4   : > { %5743 = vmatprep.subr.bf16.mxu0 (!%p3798_p7), %v6640_v50 }
 0x8b7   : > { %5745 = vmatpush3.bf16.msra.mxu0 (!%p3798_p7), %v5744_v13 }
 0x96c   : > { %1197 = sbr.rel (%p3798_p7) target bundleno = 2633 (0xa49), region = 80 }
 0x96d   : > { %v1186_v46 = vpop.f32.mrb[0].mxu0 }
 0x96e   : > { %v1187_v47 = vadd.f32 %v1186_v46, %v1119_v45  ;;  %v4700_v48 = vpop.f32.mrb[1].mxu0  ;;  %4734 = vmatmul.mubr.f32.vlgmr.msra.gmra.mrb[0].mxu0 (!%p3798_p7), %v1199_v14 }
 0x970   : > { %v1190_v49 = vmax.f32 %v1187_v47, 0.0 }
 0x972   : > { %1191 = vst [vmem:[#allocation3] sm:$0x1] %v1190_v49 }
 0x979   : > { %v1293_v19 = vld [vmem:[#allocation3] sm:$0x1] }
 0xa41   : > { %v1288_v16 = vpop.f32.mrb[0].mxu0 }
 0xa42   : > { %v1289_v17 = vadd.f32 %v1288_v16, %v1221_v15  ;;  %v4735_v18 = vpop.f32.mrb[1].mxu0 }
 0xa44   : > { %v1292_v20 = vmax.f32 %v1289_v17, 0.0 }
 0xa46   : > { %v1294_v21 = vmax.f32 %v1293_v19, %v1292_v20 }
 0xa48   : > { %1295 = vst [vmem:[#allocation3] sm:$0x1] %v1294_v21 }
 0xa49 PF: > { %s1296_s21 = sadd.s32 1, %s7240_s10 }
 0xa4a   : > { %s7306_s24 = sld [smem:[#allocation7 + %s1296_s21]] }
 0xa50   : > { %p3800_p11 = scmp.lt.s32.totalorder %s7306_s24, 0 }
 0xa51   : > { %s1304_s25 = sadd.s32 (!%p3800_p11), %s6964_s0, %s7306_s24  ;;  %v6643_v22 = vmov (!%p3800_p11), 0.0|0.0   ;;  %vm6644_vm8 = vmmov (!%p3800_p11), 0   ;;  %v6645_v23 = vmov (!%p3800_p11), 0.0   ;;  %s1302_s22 = scalar_lea.vmem (!%p3800_p11), [#allocation2], %s7306_s24  ;;  %v1397_v53 = vld [vmem:[#allocation3] sm:$0x1] (!%p3800_p11) }
 0xa52   : > { %1301 = sbr.rel (%p3800_p11) target bundleno = 2903 (0xb57), region = 84  ;;  %5746 = vmatprep.subr.bf16.mxu0 (!%p3800_p11), %v6643_v22  ;;  %s7311_s16 = sld [smem:[#allocation6 + %s1304_s25]] (!%p3800_p11)  ;;  %4768 = vmatprep.mubr.msk.f32.mxu0 (!%p3800_p11), %vm6644_vm8, %v6645_v23  ;;  %v1303_v48 = vld [vmem:[%s1302_s22] sm:$0x1] (!%p3800_p11) }
 0xa58   : > { %s3801_s27 = sshll.u32 (!%p3800_p11), %s7311_s16, 7  ;;  %s1324_s23 = scalar_lea.vmem (!%p3800_p11), %s8101_s7, %s7311_s16 }
 0xa59   : > { %s7314_s20 = scalar_lea.vmem [#allocation13], %s3801_s27  ;;  %v1325_v49 = vld [vmem:[%s1324_s23] sm:$0x1] }
 0xa5a   : > { %v1308_v24 = vld [vmem:[%s7314_s20] sm:$0xff]  ;;  %v1309_v25 = vld [vmem:[%s7314_s20 + $0x8] sm:$0xff]  ;;  %v1310_v26 = vld [vmem:[%s7314_s20 + $0x10] sm:$0xff] }
 0xa5b   : > { %v5747_v27 = vpack.c.bf16 %v1309_v25, %v1308_v24  ;;  %v1311_v28 = vld [vmem:[%s7314_s20 + $0x18] sm:$0xff]  ;;  %v1312_v30 = vld [vmem:[%s7314_s20 + $0x20] sm:$0xff]  ;;  %v1313_v31 = vld [vmem:[%s7314_s20 + $0x28] sm:$0xff] }
 0xa5c   : > { %v5750_v29 = vpack.c.bf16 %v1311_v28, %v1310_v26  ;;  %v5753_v32 = vpack.c.bf16 %v1313_v31, %v1312_v30  ;;  %v1314_v33 = vld [vmem:[%s7314_s20 + $0x30] sm:$0xff]  ;;  %v1315_v34 = vld [vmem:[%s7314_s20 + $0x38] sm:$0xff]  ;;  %v1316_v36 = vld [vmem:[%s7314_s20 + $0x40] sm:$0xff] }
 0xa5d   : > { %5748 = vmatpush3.bf16.msra.mxu0 %v5747_v27  ;;  %v5756_v35 = vpack.c.bf16 %v1315_v34, %v1314_v33  ;;  %v1317_v37 = vld [vmem:[%s7314_s20 + $0x48] sm:$0xff]  ;;  %v1318_v39 = vld [vmem:[%s7314_s20 + $0x50] sm:$0xff]  ;;  %v1319_v40 = vld [vmem:[%s7314_s20 + $0x58] sm:$0xff] }
 0xa5e   : > { %5749 = vmatprep.subr.bf16.mxu0 %v6643_v22  ;;  %v5759_v38 = vpack.c.bf16 %v1317_v37, %v1316_v36  ;;  %v5762_v41 = vpack.c.bf16 %v1319_v40, %v1318_v39  ;;  %v1320_v42 = vld [vmem:[%s7314_s20 + $0x60] sm:$0xff]  ;;  %v1321_v43 = vld [vmem:[%s7314_s20 + $0x68] sm:$0xff]  ;;  %v1322_v45 = vld [vmem:[%s7314_s20 + $0x70] sm:$0xff] }
 0xa5f   : > { %v5765_v44 = vpack.c.bf16 %v1321_v43, %v1320_v42  ;;  %v1323_v46 = vld [vmem:[%s7314_s20 + $0x78] sm:$0xff] }
 0xa60   : > { %v5768_v47 = vpack.c.bf16 %v1323_v46, %v1322_v45 }
 0xa61   : > { %5751 = vmatpush3.bf16.msra.mxu0 %v5750_v29 }
 0xa62   : > { %5752 = vmatprep.subr.bf16.mxu0 %v6643_v22 }
 0xa65   : > { %5754 = vmatpush3.bf16.msra.mxu0 %v5753_v32 }
 0xa66   : > { %5755 = vmatprep.subr.bf16.mxu0 %v6643_v22 }
 0xa69   : > { %5757 = vmatpush3.bf16.msra.mxu0 %v5756_v35 }
 0xa6a   : > { %5758 = vmatprep.subr.bf16.mxu0 %v6643_v22 }
 0xa6d   : > { %5760 = vmatpush3.bf16.msra.mxu0 %v5759_v38 }
 0xa6e   : > { %5761 = vmatprep.subr.bf16.mxu0 %v6643_v22 }
 0xa71   : > { %5763 = vmatpush3.bf16.msra.mxu0 %v5762_v41 }
 0xa72   : > { %5764 = vmatprep.subr.bf16.mxu0 %v6643_v22 }
 0xa75   : > { %5766 = vmatpush3.bf16.msra.mxu0 %v5765_v44 }
 0xa76   : > { %5767 = vmatprep.subr.bf16.mxu0 %v6643_v22 }
 0xa79   : > { %5769 = vmatpush3.bf16.msra.mxu0 %v5768_v47 }
 0xa7c   : > { %4769 = vmatmul.mubr.f32.vlgmr.msra.gmra.mrb[0].mxu0 %v1303_v48 }
 0xb4f   : > { %v1392_v50 = vpop.f32.mrb[0].mxu0 }
 0xb50   : > { %v1393_v51 = vadd.f32 %v1392_v50, %v1325_v49  ;;  %v4770_v52 = vpop.f32.mrb[1].mxu0 }
 0xb52   : > { %v1396_v54 = vmax.f32 %v1393_v51, 0.0 }
 0xb54   : > { %v1398_v55 = vmax.f32 %v1397_v53, %v1396_v54 }
 0xb56   : > { %1399 = vst [vmem:[#allocation3] sm:$0x1] %v1398_v55 }
 0xb57 PF: > { %s1400_s29 = sadd.s32 2, %s7240_s10 }
 0xb58   : > { %s7338_s21 = sld [smem:[#allocation7 + %s1400_s29]] }
 0xb5e   : > { %p3802_p8 = scmp.lt.s32.totalorder %s7338_s21, 0 }
 0xb5f   : > { %s1408_s24 = sadd.s32 (!%p3802_p8), %s6964_s0, %s7338_s21  ;;  %v6646_v56 = vmov (!%p3802_p8), 0.0|0.0   ;;  %vm6647_vm9 = vmmov (!%p3802_p8), 0   ;;  %v6648_v57 = vmov (!%p3802_p8), 0.0   ;;  %s1406_s10 = scalar_lea.vmem (!%p3802_p8), [#allocation2], %s7338_s21  ;;  %v1501_v25 = vld [vmem:[#allocation3] sm:$0x1] (!%p3802_p8) }
 0xb60   : > { %1405 = sbr.rel (%p3802_p8) target bundleno = 3173 (0xc65), region = 88  ;;  %5770 = vmatprep.subr.bf16.mxu0 (!%p3802_p8), %v6646_v56  ;;  %s7343_s25 = sld [smem:[#allocation6 + %s1408_s24]] (!%p3802_p8)  ;;  %4803 = vmatprep.mubr.msk.f32.mxu0 (!%p3802_p8), %vm6647_vm9, %v6648_v57  ;;  %v1407_v20 = vld [vmem:[%s1406_s10] sm:$0x1] (!%p3802_p8) }
 0xb66   : > { %s3803_s16 = sshll.u32 (!%p3802_p8), %s7343_s25, 7  ;;  %s1428_s26 = scalar_lea.vmem (!%p3802_p8), %s8101_s7, %s7343_s25 }
 0xb67   : > { %s7346_s27 = scalar_lea.vmem [#allocation13], %s3803_s16  ;;  %v1429_v21 = vld [vmem:[%s1428_s26] sm:$0x1] }
 0xb68   : > { %v1412_v58 = vld [vmem:[%s7346_s27] sm:$0xff]  ;;  %v1413_v59 = vld [vmem:[%s7346_s27 + $0x8] sm:$0xff]  ;;  %v1414_v60 = vld [vmem:[%s7346_s27 + $0x10] sm:$0xff] }
 0xb69   : > { %v5771_v61 = vpack.c.bf16 %v1413_v59, %v1412_v58  ;;  %v1415_v62 = vld [vmem:[%s7346_s27 + $0x18] sm:$0xff]  ;;  %v1416_v2 = vld [vmem:[%s7346_s27 + $0x20] sm:$0xff]  ;;  %v1417_v3 = vld [vmem:[%s7346_s27 + $0x28] sm:$0xff] }
 0xb6a   : > { %v5774_v63 = vpack.c.bf16 %v1415_v62, %v1414_v60  ;;  %v5777_v4 = vpack.c.bf16 %v1417_v3, %v1416_v2  ;;  %v1418_v5 = vld [vmem:[%s7346_s27 + $0x30] sm:$0xff]  ;;  %v1419_v6 = vld [vmem:[%s7346_s27 + $0x38] sm:$0xff]  ;;  %v1420_v8 = vld [vmem:[%s7346_s27 + $0x40] sm:$0xff] }
 0xb6b   : > { %5772 = vmatpush3.bf16.msra.mxu0 %v5771_v61  ;;  %v5780_v7 = vpack.c.bf16 %v1419_v6, %v1418_v5  ;;  %v1421_v9 = vld [vmem:[%s7346_s27 + $0x48] sm:$0xff]  ;;  %v1422_v11 = vld [vmem:[%s7346_s27 + $0x50] sm:$0xff]  ;;  %v1423_v12 = vld [vmem:[%s7346_s27 + $0x58] sm:$0xff] }
 0xb6c   : > { %5773 = vmatprep.subr.bf16.mxu0 %v6646_v56  ;;  %v5783_v10 = vpack.c.bf16 %v1421_v9, %v1420_v8  ;;  %v5786_v13 = vpack.c.bf16 %v1423_v12, %v1422_v11  ;;  %v1424_v14 = vld [vmem:[%s7346_s27 + $0x60] sm:$0xff]  ;;  %v1425_v15 = vld [vmem:[%s7346_s27 + $0x68] sm:$0xff]  ;;  %v1426_v17 = vld [vmem:[%s7346_s27 + $0x70] sm:$0xff] }
 0xb6d   : > { %v5789_v16 = vpack.c.bf16 %v1425_v15, %v1424_v14  ;;  %v1427_v18 = vld [vmem:[%s7346_s27 + $0x78] sm:$0xff] }
 0xb6e   : > { %v5792_v19 = vpack.c.bf16 %v1427_v18, %v1426_v17 }
 0xb6f   : > { %5775 = vmatpush3.bf16.msra.mxu0 %v5774_v63 }
 0xb70   : > { %5776 = vmatprep.subr.bf16.mxu0 %v6646_v56 }
 0xb73   : > { %5778 = vmatpush3.bf16.msra.mxu0 %v5777_v4 }
 0xb74   : > { %5779 = vmatprep.subr.bf16.mxu0 %v6646_v56 }
 0xb77   : > { %5781 = vmatpush3.bf16.msra.mxu0 %v5780_v7 }
 0xb78   : > { %5782 = vmatprep.subr.bf16.mxu0 %v6646_v56 }
 0xb7b   : > { %5784 = vmatpush3.bf16.msra.mxu0 %v5783_v10 }
 0xb7c   : > { %5785 = vmatprep.subr.bf16.mxu0 %v6646_v56 }
 0xb7f   : > { %5787 = vmatpush3.bf16.msra.mxu0 %v5786_v13 }
 0xb80   : > { %5788 = vmatprep.subr.bf16.mxu0 %v6646_v56 }
 0xb83   : > { %5790 = vmatpush3.bf16.msra.mxu0 %v5789_v16 }
 0xb84   : > { %5791 = vmatprep.subr.bf16.mxu0 %v6646_v56 }
 0xb87   : > { %5793 = vmatpush3.bf16.msra.mxu0 %v5792_v19 }
 0xb8a   : > { %4804 = vmatmul.mubr.f32.vlgmr.msra.gmra.mrb[0].mxu0 %v1407_v20 }
 0xc5d   : > { %v1496_v22 = vpop.f32.mrb[0].mxu0 }
 0xc5e   : > { %v1497_v23 = vadd.f32 %v1496_v22, %v1429_v21  ;;  %v4805_v24 = vpop.f32.mrb[1].mxu0 }
 0xc60   : > { %v1500_v26 = vmax.f32 %v1497_v23, 0.0 }
 0xc62   : > { %v1502_v27 = vmax.f32 %v1501_v25, %v1500_v26 }
 0xc64   : > { %1503 = vst [vmem:[#allocation3] sm:$0x1] %v1502_v27 }
 0xc65 PF: > { %5794 = vmatprep.subr.bf16.mxu0 %v6619_v0  ;;  %s1506_s18 = sadd.s32 3, %s6964_s0  ;;  %4838 = vmatprep.mubr.msk.f32.mxu0 %vm6620_vm0, %v6621_v1  ;;  %v1508_v53 = vld [vmem:[%s6949_s11 + $0x3] sm:$0x1] }
 0xc66   : > { %s7373_s23 = sld [smem:[#allocation5 + %s1506_s18]]  ;;  %s7375_s29 = smul.u32 3, %s1506_s18 }
 0xc68   : > { %s7378_s21 = sld [smem:[#allocation7 + %s7375_s29]] }
 0xc6b   : > { %v1504_v28 = vld [vmem:[#allocation3] sm:$0x1] }
 0xc6c   : > { %1505 = vst [vmem:[#allocation2 + $0x2] sm:$0x1] %v1504_v28  ;;  %s3804_s24 = sshll.u32 %s7373_s23, 7  ;;  %s1527_s10 = scalar_lea.vmem %s8099_s5, %s7373_s23 }
 0xc6d   : > { %s7381_s25 = scalar_lea.vmem [#allocation11], %s3804_s24  ;;  %v1528_v54 = vld [vmem:[%s1527_s10] sm:$0x1] }
 0xc6e   : > { %v1511_v29 = vld [vmem:[%s7381_s25] sm:$0xff]  ;;  %v1512_v30 = vld [vmem:[%s7381_s25 + $0x8] sm:$0xff]  ;;  %v1513_v31 = vld [vmem:[%s7381_s25 + $0x10] sm:$0xff]  ;;  %p3805_p1 = scmp.lt.s32.totalorder %s7378_s21, 0 }
 0xc6f   : > { %v5795_v32 = vpack.c.bf16 %v1512_v30, %v1511_v29  ;;  %v1514_v33 = vld [vmem:[%s7381_s25 + $0x18] sm:$0xff]  ;;  %v1515_v35 = vld [vmem:[%s7381_s25 + $0x20] sm:$0xff]  ;;  %v1516_v36 = vld [vmem:[%s7381_s25 + $0x28] sm:$0xff]  ;;  %s1609_s20 = sadd.s32 (!%p3805_p1), %s6964_s0, %s7378_s21  ;;  %v6649_v59 = vmov (!%p3805_p1), 0.0|0.0   ;;  %vm6650_vm10 = vmmov (!%p3805_p1), 0   ;;  %v6651_v60 = vmov (!%p3805_p1), 0.0  }
 0xc70   : > { %v5798_v34 = vpack.c.bf16 %v1514_v33, %v1513_v31  ;;  %v5801_v37 = vpack.c.bf16 %v1516_v36, %v1515_v35  ;;  %v1517_v38 = vld [vmem:[%s7381_s25 + $0x30] sm:$0xff]  ;;  %v1518_v39 = vld [vmem:[%s7381_s25 + $0x38] sm:$0xff]  ;;  %v1519_v41 = vld [vmem:[%s7381_s25 + $0x40] sm:$0xff]  ;;  %s7414_s22 = sld [smem:[#allocation6 + %s1609_s20]] (!%p3805_p1)  ;;  %s1607_s23 = scalar_lea.vmem (!%p3805_p1), [#allocation2], %s7378_s21 }
 0xc71   : > { %5796 = vmatpush3.bf16.msra.mxu0 %v5795_v32  ;;  %v5804_v40 = vpack.c.bf16 %v1518_v39, %v1517_v38  ;;  %v1520_v42 = vld [vmem:[%s7381_s25 + $0x48] sm:$0xff]  ;;  %v1521_v44 = vld [vmem:[%s7381_s25 + $0x50] sm:$0xff]  ;;  %v1522_v45 = vld [vmem:[%s7381_s25 + $0x58] sm:$0xff] }
 0xc72   : > { %5797 = vmatprep.subr.bf16.mxu0 %v6619_v0  ;;  %v5807_v43 = vpack.c.bf16 %v1520_v42, %v1519_v41  ;;  %v5810_v46 = vpack.c.bf16 %v1522_v45, %v1521_v44  ;;  %v1523_v47 = vld [vmem:[%s7381_s25 + $0x60] sm:$0xff]  ;;  %v1524_v48 = vld [vmem:[%s7381_s25 + $0x68] sm:$0xff]  ;;  %v1525_v50 = vld [vmem:[%s7381_s25 + $0x70] sm:$0xff] }
 0xc73   : > { %v5813_v49 = vpack.c.bf16 %v1524_v48, %v1523_v47  ;;  %v1526_v51 = vld [vmem:[%s7381_s25 + $0x78] sm:$0xff]  ;;  %v1608_v23 = vld [vmem:[%s1607_s23] sm:$0x1] (!%p3805_p1) }
 0xc74   : > { %v5816_v52 = vpack.c.bf16 %v1526_v51, %v1525_v50 }
 0xc75   : > { %5799 = vmatpush3.bf16.msra.mxu0 %v5798_v34 }
 0xc76   : > { %5800 = vmatprep.subr.bf16.mxu0 %v6619_v0  ;;  %s3806_s26 = sshll.u32 (!%p3805_p1), %s7414_s22, 7  ;;  %s1629_s16 = scalar_lea.vmem (!%p3805_p1), %s8101_s7, %s7414_s22 }
 0xc77   : > { %s7417_s18 = scalar_lea.vmem (!%p3805_p1), [#allocation13], %s3806_s26  ;;  %v1630_v24 = vld [vmem:[%s1629_s16] sm:$0x1] (!%p3805_p1) }
 0xc78   : > { %v1613_v61 = vld [vmem:[%s7417_s18] sm:$0xff] (!%p3805_p1)  ;;  %v1614_v62 = vld [vmem:[%s7417_s18 + $0x8] sm:$0xff] (!%p3805_p1)  ;;  %v1615_v63 = vld [vmem:[%s7417_s18 + $0x10] sm:$0xff] (!%p3805_p1) }
 0xc79   : > { %5802 = vmatpush3.bf16.msra.mxu0 %v5801_v37  ;;  %v5819_v2 = vpack.c.bf16 (!%p3805_p1), %v1614_v62, %v1613_v61  ;;  %v1616_v3 = vld [vmem:[%s7417_s18 + $0x18] sm:$0xff] (!%p3805_p1)  ;;  %v1617_v5 = vld [vmem:[%s7417_s18 + $0x20] sm:$0xff] (!%p3805_p1)  ;;  %v1618_v6 = vld [vmem:[%s7417_s18 + $0x28] sm:$0xff] (!%p3805_p1) }
 0xc7a   : > { %5803 = vmatprep.subr.bf16.mxu0 %v6619_v0  ;;  %v5822_v4 = vpack.c.bf16 (!%p3805_p1), %v1616_v3, %v1615_v63  ;;  %v5825_v7 = vpack.c.bf16 (!%p3805_p1), %v1618_v6, %v1617_v5  ;;  %v1619_v8 = vld [vmem:[%s7417_s18 + $0x30] sm:$0xff] (!%p3805_p1)  ;;  %v1620_v9 = vld [vmem:[%s7417_s18 + $0x38] sm:$0xff] (!%p3805_p1)  ;;  %v1621_v11 = vld [vmem:[%s7417_s18 + $0x40] sm:$0xff] (!%p3805_p1) }
 0xc7b   : > { %v5828_v10 = vpack.c.bf16 (!%p3805_p1), %v1620_v9, %v1619_v8  ;;  %v1622_v12 = vld [vmem:[%s7417_s18 + $0x48] sm:$0xff] (!%p3805_p1)  ;;  %v1623_v14 = vld [vmem:[%s7417_s18 + $0x50] sm:$0xff] (!%p3805_p1)  ;;  %v1624_v15 = vld [vmem:[%s7417_s18 + $0x58] sm:$0xff] (!%p3805_p1) }
 0xc7c   : > { %v5831_v13 = vpack.c.bf16 (!%p3805_p1), %v1622_v12, %v1621_v11  ;;  %v5834_v16 = vpack.c.bf16 (!%p3805_p1), %v1624_v15, %v1623_v14  ;;  %v1625_v17 = vld [vmem:[%s7417_s18 + $0x60] sm:$0xff] (!%p3805_p1)  ;;  %v1626_v18 = vld [vmem:[%s7417_s18 + $0x68] sm:$0xff] (!%p3805_p1)  ;;  %v1627_v20 = vld [vmem:[%s7417_s18 + $0x70] sm:$0xff] (!%p3805_p1) }
 0xc7d   : > { %5805 = vmatpush3.bf16.msra.mxu0 %v5804_v40  ;;  %v5837_v19 = vpack.c.bf16 (!%p3805_p1), %v1626_v18, %v1625_v17  ;;  %v1628_v21 = vld [vmem:[%s7417_s18 + $0x78] sm:$0xff] (!%p3805_p1) }
 0xc7e   : > { %5806 = vmatprep.subr.bf16.mxu0 %v6619_v0  ;;  %v5840_v22 = vpack.c.bf16 (!%p3805_p1), %v1628_v21, %v1627_v20 }
 0xc81   : > { %5808 = vmatpush3.bf16.msra.mxu0 %v5807_v43 }
 0xc82   : > { %5809 = vmatprep.subr.bf16.mxu0 %v6619_v0 }
 0xc85   : > { %5811 = vmatpush3.bf16.msra.mxu0 %v5810_v46 }
 0xc86   : > { %5812 = vmatprep.subr.bf16.mxu0 %v6619_v0 }
 0xc89   : > { %5814 = vmatpush3.bf16.msra.mxu0 %v5813_v49 }
 0xc8a   : > { %5815 = vmatprep.subr.bf16.mxu0 %v6619_v0 }
 0xc8d   : > { %5817 = vmatpush3.bf16.msra.mxu0 %v5816_v52 }
 0xc8e   : > { %5818 = vmatprep.subr.bf16.mxu0 (!%p3805_p1), %v6649_v59 }
 0xc90   : > { %4839 = vmatmul.mubr.f32.vlgmr.msra.gmra.mrb[0].mxu0 %v1508_v53 }
 0xc91   : > { %4873 = vmatprep.mubr.msk.f32.mxu0 (!%p3805_p1), %vm6650_vm10, %v6651_v60  ;;  %5820 = vmatpush3.bf16.msra.mxu0 (!%p3805_p1), %v5819_v2 }
 0xc92   : > { %5821 = vmatprep.subr.bf16.mxu0 (!%p3805_p1), %v6649_v59 }
 0xc95   : > { %5823 = vmatpush3.bf16.msra.mxu0 (!%p3805_p1), %v5822_v4 }
 0xc96   : > { %5824 = vmatprep.subr.bf16.mxu0 (!%p3805_p1), %v6649_v59 }
 0xc99   : > { %5826 = vmatpush3.bf16.msra.mxu0 (!%p3805_p1), %v5825_v7 }
 0xc9a   : > { %5827 = vmatprep.subr.bf16.mxu0 (!%p3805_p1), %v6649_v59 }
 0xc9d   : > { %5829 = vmatpush3.bf16.msra.mxu0 (!%p3805_p1), %v5828_v10 }
 0xc9e   : > { %5830 = vmatprep.subr.bf16.mxu0 (!%p3805_p1), %v6649_v59 }
 0xca1   : > { %5832 = vmatpush3.bf16.msra.mxu0 (!%p3805_p1), %v5831_v13 }
 0xca2   : > { %5833 = vmatprep.subr.bf16.mxu0 (!%p3805_p1), %v6649_v59 }
 0xca5   : > { %5835 = vmatpush3.bf16.msra.mxu0 (!%p3805_p1), %v5834_v16 }
 0xca6   : > { %5836 = vmatprep.subr.bf16.mxu0 (!%p3805_p1), %v6649_v59 }
 0xca9   : > { %5838 = vmatpush3.bf16.msra.mxu0 (!%p3805_p1), %v5837_v19 }
 0xcaa   : > { %5839 = vmatprep.subr.bf16.mxu0 (!%p3805_p1), %v6649_v59 }
 0xcad   : > { %5841 = vmatpush3.bf16.msra.mxu0 (!%p3805_p1), %v5840_v22 }
 0xd62   : > { %1606 = sbr.rel (%p3805_p1) target bundleno = 3647 (0xe3f), region = 92 }
 0xd63   : > { %v1595_v55 = vpop.f32.mrb[0].mxu0 }
 0xd64   : > { %v1596_v56 = vadd.f32 %v1595_v55, %v1528_v54  ;;  %v4840_v57 = vpop.f32.mrb[1].mxu0  ;;  %4874 = vmatmul.mubr.f32.vlgmr.msra.gmra.mrb[0].mxu0 (!%p3805_p1), %v1608_v23 }
 0xd66   : > { %v1599_v58 = vmax.f32 %v1596_v56, 0.0 }
 0xd68   : > { %1600 = vst [vmem:[#allocation3] sm:$0x1] %v1599_v58 }
 0xd6f   : > { %v1702_v28 = vld [vmem:[#allocation3] sm:$0x1] }
 0xe37   : > { %v1697_v25 = vpop.f32.mrb[0].mxu0 }
 0xe38   : > { %v1698_v26 = vadd.f32 %v1697_v25, %v1630_v24  ;;  %v4875_v27 = vpop.f32.mrb[1].mxu0 }
 0xe3a   : > { %v1701_v29 = vmax.f32 %v1698_v26, 0.0 }
 0xe3c   : > { %v1703_v30 = vmax.f32 %v1702_v28, %v1701_v29 }
 0xe3e   : > { %1704 = vst [vmem:[#allocation3] sm:$0x1] %v1703_v30 }
 0xe3f PF: > { %s1705_s27 = sadd.s32 1, %s7375_s29 }
 0xe40   : > { %s7441_s10 = sld [smem:[#allocation7 + %s1705_s27]] }
 0xe46   : > { %p3807_p5 = scmp.lt.s32.totalorder %s7441_s10, 0 }
 0xe47   : > { %s1713_s21 = sadd.s32 (!%p3807_p5), %s6964_s0, %s7441_s10  ;;  %v6652_v31 = vmov (!%p3807_p5), 0.0|0.0   ;;  %vm6653_vm11 = vmmov (!%p3807_p5), 0   ;;  %v6654_v32 = vmov (!%p3807_p5), 0.0   ;;  %s1711_s18 = scalar_lea.vmem (!%p3807_p5), [#allocation2], %s7441_s10  ;;  %v1806_v62 = vld [vmem:[#allocation3] sm:$0x1] (!%p3807_p5) }
 0xe48   : > { %1710 = sbr.rel (%p3807_p5) target bundleno = 3917 (0xf4d), region = 96  ;;  %5842 = vmatprep.subr.bf16.mxu0 (!%p3807_p5), %v6652_v31  ;;  %s7446_s20 = sld [smem:[#allocation6 + %s1713_s21]] (!%p3807_p5)  ;;  %4908 = vmatprep.mubr.msk.f32.mxu0 (!%p3807_p5), %vm6653_vm11, %v6654_v32  ;;  %v1712_v57 = vld [vmem:[%s1711_s18] sm:$0x1] (!%p3807_p5) }
 0xe4e   : > { %s3808_s22 = sshll.u32 (!%p3807_p5), %s7446_s20, 7  ;;  %s1733_s25 = scalar_lea.vmem (!%p3807_p5), %s8101_s7, %s7446_s20 }
 0xe4f   : > { %s7449_s26 = scalar_lea.vmem [#allocation13], %s3808_s22  ;;  %v1734_v58 = vld [vmem:[%s1733_s25] sm:$0x1] }
 0xe50   : > { %v1717_v33 = vld [vmem:[%s7449_s26] sm:$0xff]  ;;  %v1718_v34 = vld [vmem:[%s7449_s26 + $0x8] sm:$0xff]  ;;  %v1719_v35 = vld [vmem:[%s7449_s26 + $0x10] sm:$0xff] }
 0xe51   : > { %v5843_v36 = vpack.c.bf16 %v1718_v34, %v1717_v33  ;;  %v1720_v37 = vld [vmem:[%s7449_s26 + $0x18] sm:$0xff]  ;;  %v1721_v39 = vld [vmem:[%s7449_s26 + $0x20] sm:$0xff]  ;;  %v1722_v40 = vld [vmem:[%s7449_s26 + $0x28] sm:$0xff] }
 0xe52   : > { %v5846_v38 = vpack.c.bf16 %v1720_v37, %v1719_v35  ;;  %v5849_v41 = vpack.c.bf16 %v1722_v40, %v1721_v39  ;;  %v1723_v42 = vld [vmem:[%s7449_s26 + $0x30] sm:$0xff]  ;;  %v1724_v43 = vld [vmem:[%s7449_s26 + $0x38] sm:$0xff]  ;;  %v1725_v45 = vld [vmem:[%s7449_s26 + $0x40] sm:$0xff] }
 0xe53   : > { %5844 = vmatpush3.bf16.msra.mxu0 %v5843_v36  ;;  %v5852_v44 = vpack.c.bf16 %v1724_v43, %v1723_v42  ;;  %v1726_v46 = vld [vmem:[%s7449_s26 + $0x48] sm:$0xff]  ;;  %v1727_v48 = vld [vmem:[%s7449_s26 + $0x50] sm:$0xff]  ;;  %v1728_v49 = vld [vmem:[%s7449_s26 + $0x58] sm:$0xff] }
 0xe54   : > { %5845 = vmatprep.subr.bf16.mxu0 %v6652_v31  ;;  %v5855_v47 = vpack.c.bf16 %v1726_v46, %v1725_v45  ;;  %v5858_v50 = vpack.c.bf16 %v1728_v49, %v1727_v48  ;;  %v1729_v51 = vld [vmem:[%s7449_s26 + $0x60] sm:$0xff]  ;;  %v1730_v52 = vld [vmem:[%s7449_s26 + $0x68] sm:$0xff]  ;;  %v1731_v54 = vld [vmem:[%s7449_s26 + $0x70] sm:$0xff] }
 0xe55   : > { %v5861_v53 = vpack.c.bf16 %v1730_v52, %v1729_v51  ;;  %v1732_v55 = vld [vmem:[%s7449_s26 + $0x78] sm:$0xff] }
 0xe56   : > { %v5864_v56 = vpack.c.bf16 %v1732_v55, %v1731_v54 }
 0xe57   : > { %5847 = vmatpush3.bf16.msra.mxu0 %v5846_v38 }
 0xe58   : > { %5848 = vmatprep.subr.bf16.mxu0 %v6652_v31 }
 0xe5b   : > { %5850 = vmatpush3.bf16.msra.mxu0 %v5849_v41 }
 0xe5c   : > { %5851 = vmatprep.subr.bf16.mxu0 %v6652_v31 }
 0xe5f   : > { %5853 = vmatpush3.bf16.msra.mxu0 %v5852_v44 }
 0xe60   : > { %5854 = vmatprep.subr.bf16.mxu0 %v6652_v31 }
 0xe63   : > { %5856 = vmatpush3.bf16.msra.mxu0 %v5855_v47 }
 0xe64   : > { %5857 = vmatprep.subr.bf16.mxu0 %v6652_v31 }
 0xe67   : > { %5859 = vmatpush3.bf16.msra.mxu0 %v5858_v50 }
 0xe68   : > { %5860 = vmatprep.subr.bf16.mxu0 %v6652_v31 }
 0xe6b   : > { %5862 = vmatpush3.bf16.msra.mxu0 %v5861_v53 }
 0xe6c   : > { %5863 = vmatprep.subr.bf16.mxu0 %v6652_v31 }
 0xe6f   : > { %5865 = vmatpush3.bf16.msra.mxu0 %v5864_v56 }
 0xe72   : > { %4909 = vmatmul.mubr.f32.vlgmr.msra.gmra.mrb[0].mxu0 %v1712_v57 }
 0xf45   : > { %v1801_v59 = vpop.f32.mrb[0].mxu0 }
 0xf46   : > { %v1802_v60 = vadd.f32 %v1801_v59, %v1734_v58  ;;  %v4910_v61 = vpop.f32.mrb[1].mxu0 }
 0xf48   : > { %v1805_v63 = vmax.f32 %v1802_v60, 0.0 }
 0xf4a   : > { %v1807_v2 = vmax.f32 %v1806_v62, %v1805_v63 }
 0xf4c   : > { %1808 = vst [vmem:[#allocation3] sm:$0x1] %v1807_v2 }
 0xf4d PF: > { %s1809_s16 = sadd.s32 2, %s7375_s29 }
 0xf4e   : > { %s7473_s27 = sld [smem:[#allocation7 + %s1809_s16]] }
 0xf54   : > { %p3809_p13 = scmp.lt.s32.totalorder %s7473_s27, 0 }
 0xf55   : > { %s1817_s10 = sadd.s32 (!%p3809_p13), %s6964_s0, %s7473_s27  ;;  %v6655_v3 = vmov (!%p3809_p13), 0.0|0.0   ;;  %vm6656_vm12 = vmmov (!%p3809_p13), 0   ;;  %v6657_v4 = vmov (!%p3809_p13), 0.0   ;;  %s1815_s29 = scalar_lea.vmem (!%p3809_p13), [#allocation2], %s7473_s27  ;;  %v1910_v34 = vld [vmem:[#allocation3] sm:$0x1] (!%p3809_p13) }
 0xf56   : > { %1814 = sbr.rel (%p3809_p13) target bundleno = 4187 (0x105b), region = 100  ;;  %5866 = vmatprep.subr.bf16.mxu0 (!%p3809_p13), %v6655_v3  ;;  %s7478_s21 = sld [smem:[#allocation6 + %s1817_s10]] (!%p3809_p13)  ;;  %4943 = vmatprep.mubr.msk.f32.mxu0 (!%p3809_p13), %vm6656_vm12, %v6657_v4  ;;  %v1816_v29 = vld [vmem:[%s1815_s29] sm:$0x1] (!%p3809_p13) }
 0xf5c   : > { %s3810_s20 = sshll.u32 (!%p3809_p13), %s7478_s21, 7  ;;  %s1837_s23 = scalar_lea.vmem (!%p3809_p13), %s8101_s7, %s7478_s21 }
 0xf5d   : > { %s7481_s22 = scalar_lea.vmem [#allocation13], %s3810_s20  ;;  %v1838_v30 = vld [vmem:[%s1837_s23] sm:$0x1] }
 0xf5e   : > { %v1821_v5 = vld [vmem:[%s7481_s22] sm:$0xff]  ;;  %v1822_v6 = vld [vmem:[%s7481_s22 + $0x8] sm:$0xff]  ;;  %v1823_v7 = vld [vmem:[%s7481_s22 + $0x10] sm:$0xff] }
 0xf5f   : > { %v5867_v8 = vpack.c.bf16 %v1822_v6, %v1821_v5  ;;  %v1824_v9 = vld [vmem:[%s7481_s22 + $0x18] sm:$0xff]  ;;  %v1825_v11 = vld [vmem:[%s7481_s22 + $0x20] sm:$0xff]  ;;  %v1826_v12 = vld [vmem:[%s7481_s22 + $0x28] sm:$0xff] }
 0xf60   : > { %v5870_v10 = vpack.c.bf16 %v1824_v9, %v1823_v7  ;;  %v5873_v13 = vpack.c.bf16 %v1826_v12, %v1825_v11  ;;  %v1827_v14 = vld [vmem:[%s7481_s22 + $0x30] sm:$0xff]  ;;  %v1828_v15 = vld [vmem:[%s7481_s22 + $0x38] sm:$0xff]  ;;  %v1829_v17 = vld [vmem:[%s7481_s22 + $0x40] sm:$0xff] }
 0xf61   : > { %5868 = vmatpush3.bf16.msra.mxu0 %v5867_v8  ;;  %v5876_v16 = vpack.c.bf16 %v1828_v15, %v1827_v14  ;;  %v1830_v18 = vld [vmem:[%s7481_s22 + $0x48] sm:$0xff]  ;;  %v1831_v20 = vld [vmem:[%s7481_s22 + $0x50] sm:$0xff]  ;;  %v1832_v21 = vld [vmem:[%s7481_s22 + $0x58] sm:$0xff] }
 0xf62   : > { %5869 = vmatprep.subr.bf16.mxu0 %v6655_v3  ;;  %v5879_v19 = vpack.c.bf16 %v1830_v18, %v1829_v17  ;;  %v5882_v22 = vpack.c.bf16 %v1832_v21, %v1831_v20  ;;  %v1833_v23 = vld [vmem:[%s7481_s22 + $0x60] sm:$0xff]  ;;  %v1834_v24 = vld [vmem:[%s7481_s22 + $0x68] sm:$0xff]  ;;  %v1835_v26 = vld [vmem:[%s7481_s22 + $0x70] sm:$0xff] }
 0xf63   : > { %v5885_v25 = vpack.c.bf16 %v1834_v24, %v1833_v23  ;;  %v1836_v27 = vld [vmem:[%s7481_s22 + $0x78] sm:$0xff] }
 0xf64   : > { %v5888_v28 = vpack.c.bf16 %v1836_v27, %v1835_v26 }
 0xf65   : > { %5871 = vmatpush3.bf16.msra.mxu0 %v5870_v10 }
 0xf66   : > { %5872 = vmatprep.subr.bf16.mxu0 %v6655_v3 }
 0xf69   : > { %5874 = vmatpush3.bf16.msra.mxu0 %v5873_v13 }
 0xf6a   : > { %5875 = vmatprep.subr.bf16.mxu0 %v6655_v3 }
 0xf6d   : > { %5877 = vmatpush3.bf16.msra.mxu0 %v5876_v16 }
 0xf6e   : > { %5878 = vmatprep.subr.bf16.mxu0 %v6655_v3 }
 0xf71   : > { %5880 = vmatpush3.bf16.msra.mxu0 %v5879_v19 }
 0xf72   : > { %5881 = vmatprep.subr.bf16.mxu0 %v6655_v3 }
 0xf75   : > { %5883 = vmatpush3.bf16.msra.mxu0 %v5882_v22 }
 0xf76   : > { %5884 = vmatprep.subr.bf16.mxu0 %v6655_v3 }
 0xf79   : > { %5886 = vmatpush3.bf16.msra.mxu0 %v5885_v25 }
 0xf7a   : > { %5887 = vmatprep.subr.bf16.mxu0 %v6655_v3 }
 0xf7d   : > { %5889 = vmatpush3.bf16.msra.mxu0 %v5888_v28 }
 0xf80   : > { %4944 = vmatmul.mubr.f32.vlgmr.msra.gmra.mrb[0].mxu0 %v1816_v29 }
0x1053   : > { %v1905_v31 = vpop.f32.mrb[0].mxu0 }
0x1054   : > { %v1906_v32 = vadd.f32 %v1905_v31, %v1838_v30  ;;  %v4945_v33 = vpop.f32.mrb[1].mxu0 }
0x1056   : > { %v1909_v35 = vmax.f32 %v1906_v32, 0.0 }
0x1058   : > { %v1911_v36 = vmax.f32 %v1910_v34, %v1909_v35 }
0x105a   : > { %1912 = vst [vmem:[#allocation3] sm:$0x1] %v1911_v36 }
0x105b PF: > { %5890 = vmatprep.subr.bf16.mxu0 %v6619_v0  ;;  %s1915_s24 = sadd.s32 4, %s6964_s0  ;;  %4978 = vmatprep.mubr.msk.f32.mxu0 %vm6620_vm0, %v6621_v1  ;;  %v1917_v62 = vld [vmem:[%s6949_s11 + $0x4] sm:$0x1] }
0x105c   : > { %s7508_s25 = sld [smem:[#allocation5 + %s1915_s24]]  ;;  %s7510_s16 = smul.u32 3, %s1915_s24 }
0x105e   : > { %s7513_s27 = sld [smem:[#allocation7 + %s7510_s16]] }
0x1061   : > { %v1913_v37 = vld [vmem:[#allocation3] sm:$0x1] }
0x1062   : > { %1914 = vst [vmem:[#allocation2 + $0x3] sm:$0x1] %v1913_v37  ;;  %s3811_s10 = sshll.u32 %s7508_s25, 7  ;;  %s1936_s29 = scalar_lea.vmem %s8099_s5, %s7508_s25 }
0x1063   : > { %s7516_s21 = scalar_lea.vmem [#allocation11], %s3811_s10  ;;  %v1937_v63 = vld [vmem:[%s1936_s29] sm:$0x1] }
0x1064   : > { %v1920_v38 = vld [vmem:[%s7516_s21] sm:$0xff]  ;;  %v1921_v39 = vld [vmem:[%s7516_s21 + $0x8] sm:$0xff]  ;;  %v1922_v40 = vld [vmem:[%s7516_s21 + $0x10] sm:$0xff]  ;;  %p3812_p0 = scmp.lt.s32.totalorder %s7513_s27, 0 }
0x1065   : > { %v5891_v41 = vpack.c.bf16 %v1921_v39, %v1920_v38  ;;  %v1923_v42 = vld [vmem:[%s7516_s21 + $0x18] sm:$0xff]  ;;  %v1924_v44 = vld [vmem:[%s7516_s21 + $0x20] sm:$0xff]  ;;  %v1925_v45 = vld [vmem:[%s7516_s21 + $0x28] sm:$0xff]  ;;  %s2018_s26 = sadd.s32 (!%p3812_p0), %s6964_s0, %s7513_s27  ;;  %v6658_v6 = vmov (!%p3812_p0), 0.0|0.0   ;;  %vm6659_vm13 = vmmov (!%p3812_p0), 0   ;;  %v6660_v7 = vmov (!%p3812_p0), 0.0  }
0x1066   : > { %v5894_v43 = vpack.c.bf16 %v1923_v42, %v1922_v40  ;;  %v5897_v46 = vpack.c.bf16 %v1925_v45, %v1924_v44  ;;  %v1926_v47 = vld [vmem:[%s7516_s21 + $0x30] sm:$0xff]  ;;  %v1927_v48 = vld [vmem:[%s7516_s21 + $0x38] sm:$0xff]  ;;  %v1928_v50 = vld [vmem:[%s7516_s21 + $0x40] sm:$0xff]  ;;  %s7549_s18 = sld [smem:[#allocation6 + %s2018_s26]] (!%p3812_p0)  ;;  %s2016_s25 = scalar_lea.vmem (!%p3812_p0), [#allocation2], %s7513_s27 }
0x1067   : > { %5892 = vmatpush3.bf16.msra.mxu0 %v5891_v41  ;;  %v5900_v49 = vpack.c.bf16 %v1927_v48, %v1926_v47  ;;  %v1929_v51 = vld [vmem:[%s7516_s21 + $0x48] sm:$0xff]  ;;  %v1930_v53 = vld [vmem:[%s7516_s21 + $0x50] sm:$0xff]  ;;  %v1931_v54 = vld [vmem:[%s7516_s21 + $0x58] sm:$0xff] }
0x1068   : > { %5893 = vmatprep.subr.bf16.mxu0 %v6619_v0  ;;  %v5903_v52 = vpack.c.bf16 %v1929_v51, %v1928_v50  ;;  %v5906_v55 = vpack.c.bf16 %v1931_v54, %v1930_v53  ;;  %v1932_v56 = vld [vmem:[%s7516_s21 + $0x60] sm:$0xff]  ;;  %v1933_v57 = vld [vmem:[%s7516_s21 + $0x68] sm:$0xff]  ;;  %v1934_v59 = vld [vmem:[%s7516_s21 + $0x70] sm:$0xff] }
0x1069   : > { %v5909_v58 = vpack.c.bf16 %v1933_v57, %v1932_v56  ;;  %v1935_v60 = vld [vmem:[%s7516_s21 + $0x78] sm:$0xff]  ;;  %v2017_v32 = vld [vmem:[%s2016_s25] sm:$0x1] (!%p3812_p0) }
0x106a   : > { %v5912_v61 = vpack.c.bf16 %v1935_v60, %v1934_v59 }
0x106b   : > { %5895 = vmatpush3.bf16.msra.mxu0 %v5894_v43 }
0x106c   : > { %5896 = vmatprep.subr.bf16.mxu0 %v6619_v0  ;;  %s3813_s23 = sshll.u32 (!%p3812_p0), %s7549_s18, 7  ;;  %s2038_s20 = scalar_lea.vmem (!%p3812_p0), %s8101_s7, %s7549_s18 }
0x106d   : > { %s7552_s24 = scalar_lea.vmem (!%p3812_p0), [#allocation13], %s3813_s23  ;;  %v2039_v33 = vld [vmem:[%s2038_s20] sm:$0x1] (!%p3812_p0) }
0x106e   : > { %v2022_v8 = vld [vmem:[%s7552_s24] sm:$0xff] (!%p3812_p0)  ;;  %v2023_v9 = vld [vmem:[%s7552_s24 + $0x8] sm:$0xff] (!%p3812_p0)  ;;  %v2024_v10 = vld [vmem:[%s7552_s24 + $0x10] sm:$0xff] (!%p3812_p0) }
0x106f   : > { %5898 = vmatpush3.bf16.msra.mxu0 %v5897_v46  ;;  %v5915_v11 = vpack.c.bf16 (!%p3812_p0), %v2023_v9, %v2022_v8  ;;  %v2025_v12 = vld [vmem:[%s7552_s24 + $0x18] sm:$0xff] (!%p3812_p0)  ;;  %v2026_v14 = vld [vmem:[%s7552_s24 + $0x20] sm:$0xff] (!%p3812_p0)  ;;  %v2027_v15 = vld [vmem:[%s7552_s24 + $0x28] sm:$0xff] (!%p3812_p0) }
0x1070   : > { %5899 = vmatprep.subr.bf16.mxu0 %v6619_v0  ;;  %v5918_v13 = vpack.c.bf16 (!%p3812_p0), %v2025_v12, %v2024_v10  ;;  %v5921_v16 = vpack.c.bf16 (!%p3812_p0), %v2027_v15, %v2026_v14  ;;  %v2028_v17 = vld [vmem:[%s7552_s24 + $0x30] sm:$0xff] (!%p3812_p0)  ;;  %v2029_v18 = vld [vmem:[%s7552_s24 + $0x38] sm:$0xff] (!%p3812_p0)  ;;  %v2030_v20 = vld [vmem:[%s7552_s24 + $0x40] sm:$0xff] (!%p3812_p0) }
0x1071   : > { %v5924_v19 = vpack.c.bf16 (!%p3812_p0), %v2029_v18, %v2028_v17  ;;  %v2031_v21 = vld [vmem:[%s7552_s24 + $0x48] sm:$0xff] (!%p3812_p0)  ;;  %v2032_v23 = vld [vmem:[%s7552_s24 + $0x50] sm:$0xff] (!%p3812_p0)  ;;  %v2033_v24 = vld [vmem:[%s7552_s24 + $0x58] sm:$0xff] (!%p3812_p0) }
0x1072   : > { %v5927_v22 = vpack.c.bf16 (!%p3812_p0), %v2031_v21, %v2030_v20  ;;  %v5930_v25 = vpack.c.bf16 (!%p3812_p0), %v2033_v24, %v2032_v23  ;;  %v2034_v26 = vld [vmem:[%s7552_s24 + $0x60] sm:$0xff] (!%p3812_p0)  ;;  %v2035_v27 = vld [vmem:[%s7552_s24 + $0x68] sm:$0xff] (!%p3812_p0)  ;;  %v2036_v29 = vld [vmem:[%s7552_s24 + $0x70] sm:$0xff] (!%p3812_p0) }
0x1073   : > { %5901 = vmatpush3.bf16.msra.mxu0 %v5900_v49  ;;  %v5933_v28 = vpack.c.bf16 (!%p3812_p0), %v2035_v27, %v2034_v26  ;;  %v2037_v30 = vld [vmem:[%s7552_s24 + $0x78] sm:$0xff] (!%p3812_p0) }
0x1074   : > { %5902 = vmatprep.subr.bf16.mxu0 %v6619_v0  ;;  %v5936_v31 = vpack.c.bf16 (!%p3812_p0), %v2037_v30, %v2036_v29 }
0x1077   : > { %5904 = vmatpush3.bf16.msra.mxu0 %v5903_v52 }
0x1078   : > { %5905 = vmatprep.subr.bf16.mxu0 %v6619_v0 }
0x107b   : > { %5907 = vmatpush3.bf16.msra.mxu0 %v5906_v55 }
0x107c   : > { %5908 = vmatprep.subr.bf16.mxu0 %v6619_v0 }
0x107f   : > { %5910 = vmatpush3.bf16.msra.mxu0 %v5909_v58 }
0x1080   : > { %5911 = vmatprep.subr.bf16.mxu0 %v6619_v0 }
0x1083   : > { %5913 = vmatpush3.bf16.msra.mxu0 %v5912_v61 }
0x1084   : > { %5914 = vmatprep.subr.bf16.mxu0 (!%p3812_p0), %v6658_v6 }
0x1086   : > { %4979 = vmatmul.mubr.f32.vlgmr.msra.gmra.mrb[0].mxu0 %v1917_v62 }
0x1087   : > { %5013 = vmatprep.mubr.msk.f32.mxu0 (!%p3812_p0), %vm6659_vm13, %v6660_v7  ;;  %5916 = vmatpush3.bf16.msra.mxu0 (!%p3812_p0), %v5915_v11 }
0x1088   : > { %5917 = vmatprep.subr.bf16.mxu0 (!%p3812_p0), %v6658_v6 }
0x108b   : > { %5919 = vmatpush3.bf16.msra.mxu0 (!%p3812_p0), %v5918_v13 }
0x108c   : > { %5920 = vmatprep.subr.bf16.mxu0 (!%p3812_p0), %v6658_v6 }
0x108f   : > { %5922 = vmatpush3.bf16.msra.mxu0 (!%p3812_p0), %v5921_v16 }
0x1090   : > { %5923 = vmatprep.subr.bf16.mxu0 (!%p3812_p0), %v6658_v6 }
0x1093   : > { %5925 = vmatpush3.bf16.msra.mxu0 (!%p3812_p0), %v5924_v19 }
0x1094   : > { %5926 = vmatprep.subr.bf16.mxu0 (!%p3812_p0), %v6658_v6 }
0x1097   : > { %5928 = vmatpush3.bf16.msra.mxu0 (!%p3812_p0), %v5927_v22 }
0x1098   : > { %5929 = vmatprep.subr.bf16.mxu0 (!%p3812_p0), %v6658_v6 }
0x109b   : > { %5931 = vmatpush3.bf16.msra.mxu0 (!%p3812_p0), %v5930_v25 }
0x109c   : > { %5932 = vmatprep.subr.bf16.mxu0 (!%p3812_p0), %v6658_v6 }
0x109f   : > { %5934 = vmatpush3.bf16.msra.mxu0 (!%p3812_p0), %v5933_v28 }
0x10a0   : > { %5935 = vmatprep.subr.bf16.mxu0 (!%p3812_p0), %v6658_v6 }
0x10a3   : > { %5937 = vmatpush3.bf16.msra.mxu0 (!%p3812_p0), %v5936_v31 }
0x1158   : > { %2015 = sbr.rel (%p3812_p0) target bundleno = 4661 (0x1235), region = 104 }
0x1159   : > { %v2004_v2 = vpop.f32.mrb[0].mxu0 }
0x115a   : > { %v2005_v3 = vadd.f32 %v2004_v2, %v1937_v63  ;;  %v4980_v4 = vpop.f32.mrb[1].mxu0  ;;  %5014 = vmatmul.mubr.f32.vlgmr.msra.gmra.mrb[0].mxu0 (!%p3812_p0), %v2017_v32 }
0x115c   : > { %v2008_v5 = vmax.f32 %v2005_v3, 0.0 }
0x115e   : > { %2009 = vst [vmem:[#allocation3] sm:$0x1] %v2008_v5 }
0x1165   : > { %v2111_v37 = vld [vmem:[#allocation3] sm:$0x1] }
0x122d   : > { %v2106_v34 = vpop.f32.mrb[0].mxu0 }
0x122e   : > { %v2107_v35 = vadd.f32 %v2106_v34, %v2039_v33  ;;  %v5015_v36 = vpop.f32.mrb[1].mxu0 }
0x1230   : > { %v2110_v38 = vmax.f32 %v2107_v35, 0.0 }
0x1232   : > { %v2112_v39 = vmax.f32 %v2111_v37, %v2110_v38 }
0x1234   : > { %2113 = vst [vmem:[#allocation3] sm:$0x1] %v2112_v39 }
0x1235 PF: > { %s2114_s22 = sadd.s32 1, %s7510_s16 }
0x1236   : > { %s7576_s29 = sld [smem:[#allocation7 + %s2114_s22]] }
0x123c   : > { %p3814_p3 = scmp.lt.s32.totalorder %s7576_s29, 0 }
0x123d   : > { %s2122_s27 = sadd.s32 (!%p3814_p3), %s6964_s0, %s7576_s29  ;;  %v6661_v40 = vmov (!%p3814_p3), 0.0|0.0   ;;  %vm6662_vm14 = vmmov (!%p3814_p3), 0   ;;  %v6663_v41 = vmov (!%p3814_p3), 0.0   ;;  %s2120_s24 = scalar_lea.vmem (!%p3814_p3), [#allocation2], %s7576_s29  ;;  %v2215_v9 = vld [vmem:[#allocation3] sm:$0x1] (!%p3814_p3) }
0x123e   : > { %2119 = sbr.rel (%p3814_p3) target bundleno = 4931 (0x1343), region = 108  ;;  %5938 = vmatprep.subr.bf16.mxu0 (!%p3814_p3), %v6661_v40  ;;  %s7581_s26 = sld [smem:[#allocation6 + %s2122_s27]] (!%p3814_p3)  ;;  %5048 = vmatprep.mubr.msk.f32.mxu0 (!%p3814_p3), %vm6662_vm14, %v6663_v41  ;;  %v2121_v4 = vld [vmem:[%s2120_s24] sm:$0x1] (!%p3814_p3) }
0x1244   : > { %s3815_s18 = sshll.u32 (!%p3814_p3), %s7581_s26, 7  ;;  %s2142_s21 = scalar_lea.vmem (!%p3814_p3), %s8101_s7, %s7581_s26 }
0x1245   : > { %s7584_s23 = scalar_lea.vmem [#allocation13], %s3815_s18  ;;  %v2143_v5 = vld [vmem:[%s2142_s21] sm:$0x1] }
0x1246   : > { %v2126_v42 = vld [vmem:[%s7584_s23] sm:$0xff]  ;;  %v2127_v43 = vld [vmem:[%s7584_s23 + $0x8] sm:$0xff]  ;;  %v2128_v44 = vld [vmem:[%s7584_s23 + $0x10] sm:$0xff] }
0x1247   : > { %v5939_v45 = vpack.c.bf16 %v2127_v43, %v2126_v42  ;;  %v2129_v46 = vld [vmem:[%s7584_s23 + $0x18] sm:$0xff]  ;;  %v2130_v48 = vld [vmem:[%s7584_s23 + $0x20] sm:$0xff]  ;;  %v2131_v49 = vld [vmem:[%s7584_s23 + $0x28] sm:$0xff] }
0x1248   : > { %v5942_v47 = vpack.c.bf16 %v2129_v46, %v2128_v44  ;;  %v5945_v50 = vpack.c.bf16 %v2131_v49, %v2130_v48  ;;  %v2132_v51 = vld [vmem:[%s7584_s23 + $0x30] sm:$0xff]  ;;  %v2133_v52 = vld [vmem:[%s7584_s23 + $0x38] sm:$0xff]  ;;  %v2134_v54 = vld [vmem:[%s7584_s23 + $0x40] sm:$0xff] }
0x1249   : > { %5940 = vmatpush3.bf16.msra.mxu0 %v5939_v45  ;;  %v5948_v53 = vpack.c.bf16 %v2133_v52, %v2132_v51  ;;  %v2135_v55 = vld [vmem:[%s7584_s23 + $0x48] sm:$0xff]  ;;  %v2136_v57 = vld [vmem:[%s7584_s23 + $0x50] sm:$0xff]  ;;  %v2137_v58 = vld [vmem:[%s7584_s23 + $0x58] sm:$0xff] }
0x124a   : > { %5941 = vmatprep.subr.bf16.mxu0 %v6661_v40  ;;  %v5951_v56 = vpack.c.bf16 %v2135_v55, %v2134_v54  ;;  %v5954_v59 = vpack.c.bf16 %v2137_v58, %v2136_v57  ;;  %v2138_v60 = vld [vmem:[%s7584_s23 + $0x60] sm:$0xff]  ;;  %v2139_v61 = vld [vmem:[%s7584_s23 + $0x68] sm:$0xff]  ;;  %v2140_v63 = vld [vmem:[%s7584_s23 + $0x70] sm:$0xff] }
0x124b   : > { %v5957_v62 = vpack.c.bf16 %v2139_v61, %v2138_v60  ;;  %v2141_v2 = vld [vmem:[%s7584_s23 + $0x78] sm:$0xff] }
0x124c   : > { %v5960_v3 = vpack.c.bf16 %v2141_v2, %v2140_v63 }
0x124d   : > { %5943 = vmatpush3.bf16.msra.mxu0 %v5942_v47 }
0x124e   : > { %5944 = vmatprep.subr.bf16.mxu0 %v6661_v40 }
0x1251   : > { %5946 = vmatpush3.bf16.msra.mxu0 %v5945_v50 }
0x1252   : > { %5947 = vmatprep.subr.bf16.mxu0 %v6661_v40 }
0x1255   : > { %5949 = vmatpush3.bf16.msra.mxu0 %v5948_v53 }
0x1256   : > { %5950 = vmatprep.subr.bf16.mxu0 %v6661_v40 }
0x1259   : > { %5952 = vmatpush3.bf16.msra.mxu0 %v5951_v56 }
0x125a   : > { %5953 = vmatprep.subr.bf16.mxu0 %v6661_v40 }
0x125d   : > { %5955 = vmatpush3.bf16.msra.mxu0 %v5954_v59 }
0x125e   : > { %5956 = vmatprep.subr.bf16.mxu0 %v6661_v40 }
0x1261   : > { %5958 = vmatpush3.bf16.msra.mxu0 %v5957_v62 }
0x1262   : > { %5959 = vmatprep.subr.bf16.mxu0 %v6661_v40 }
0x1265   : > { %5961 = vmatpush3.bf16.msra.mxu0 %v5960_v3 }
0x1268   : > { %5049 = vmatmul.mubr.f32.vlgmr.msra.gmra.mrb[0].mxu0 %v2121_v4 }
0x133b   : > { %v2210_v6 = vpop.f32.mrb[0].mxu0 }
0x133c   : > { %v2211_v7 = vadd.f32 %v2210_v6, %v2143_v5  ;;  %v5050_v8 = vpop.f32.mrb[1].mxu0 }
0x133e   : > { %v2214_v10 = vmax.f32 %v2211_v7, 0.0 }
0x1340   : > { %v2216_v11 = vmax.f32 %v2215_v9, %v2214_v10 }
0x1342   : > { %2217 = vst [vmem:[#allocation3] sm:$0x1] %v2216_v11 }
0x1343 PF: > { %s2218_s20 = sadd.s32 2, %s7510_s16 }
0x1344   : > { %s7608_s22 = sld [smem:[#allocation7 + %s2218_s20]] }
0x134a   : > { %p3816_p6 = scmp.lt.s32.totalorder %s7608_s22, 0 }
0x134b   : > { %s2226_s29 = sadd.s32 (!%p3816_p6), %s6964_s0, %s7608_s22  ;;  %v6664_v12 = vmov (!%p3816_p6), 0.0|0.0   ;;  %vm6665_vm15 = vmmov (!%p3816_p6), 0   ;;  %v6666_v13 = vmov (!%p3816_p6), 0.0   ;;  %s2224_s16 = scalar_lea.vmem (!%p3816_p6), [#allocation2], %s7608_s22  ;;  %v2319_v43 = vld [vmem:[#allocation3] sm:$0x1] (!%p3816_p6) }
0x134c   : > { %2223 = sbr.rel (%p3816_p6) target bundleno = 5201 (0x1451), region = 112  ;;  %5962 = vmatprep.subr.bf16.mxu0 (!%p3816_p6), %v6664_v12  ;;  %s7613_s27 = sld [smem:[#allocation6 + %s2226_s29]] (!%p3816_p6)  ;;  %5083 = vmatprep.mubr.msk.f32.mxu0 (!%p3816_p6), %vm6665_vm15, %v6666_v13  ;;  %v2225_v38 = vld [vmem:[%s2224_s16] sm:$0x1] (!%p3816_p6) }
0x1352   : > { %s3817_s26 = sshll.u32 (!%p3816_p6), %s7613_s27, 7  ;;  %s2246_s25 = scalar_lea.vmem (!%p3816_p6), %s8101_s7, %s7613_s27 }
0x1353   : > { %s7616_s18 = scalar_lea.vmem [#allocation13], %s3817_s26  ;;  %v2247_v39 = vld [vmem:[%s2246_s25] sm:$0x1] }
0x1354   : > { %v2230_v14 = vld [vmem:[%s7616_s18] sm:$0xff]  ;;  %v2231_v15 = vld [vmem:[%s7616_s18 + $0x8] sm:$0xff]  ;;  %v2232_v16 = vld [vmem:[%s7616_s18 + $0x10] sm:$0xff] }
0x1355   : > { %v5963_v17 = vpack.c.bf16 %v2231_v15, %v2230_v14  ;;  %v2233_v18 = vld [vmem:[%s7616_s18 + $0x18] sm:$0xff]  ;;  %v2234_v20 = vld [vmem:[%s7616_s18 + $0x20] sm:$0xff]  ;;  %v2235_v21 = vld [vmem:[%s7616_s18 + $0x28] sm:$0xff] }
0x1356   : > { %v5966_v19 = vpack.c.bf16 %v2233_v18, %v2232_v16  ;;  %v5969_v22 = vpack.c.bf16 %v2235_v21, %v2234_v20  ;;  %v2236_v23 = vld [vmem:[%s7616_s18 + $0x30] sm:$0xff]  ;;  %v2237_v24 = vld [vmem:[%s7616_s18 + $0x38] sm:$0xff]  ;;  %v2238_v26 = vld [vmem:[%s7616_s18 + $0x40] sm:$0xff] }
0x1357   : > { %5964 = vmatpush3.bf16.msra.mxu0 %v5963_v17  ;;  %v5972_v25 = vpack.c.bf16 %v2237_v24, %v2236_v23  ;;  %v2239_v27 = vld [vmem:[%s7616_s18 + $0x48] sm:$0xff]  ;;  %v2240_v29 = vld [vmem:[%s7616_s18 + $0x50] sm:$0xff]  ;;  %v2241_v30 = vld [vmem:[%s7616_s18 + $0x58] sm:$0xff] }
0x1358   : > { %5965 = vmatprep.subr.bf16.mxu0 %v6664_v12  ;;  %v5975_v28 = vpack.c.bf16 %v2239_v27, %v2238_v26  ;;  %v5978_v31 = vpack.c.bf16 %v2241_v30, %v2240_v29  ;;  %v2242_v32 = vld [vmem:[%s7616_s18 + $0x60] sm:$0xff]  ;;  %v2243_v33 = vld [vmem:[%s7616_s18 + $0x68] sm:$0xff]  ;;  %v2244_v35 = vld [vmem:[%s7616_s18 + $0x70] sm:$0xff] }
0x1359   : > { %v5981_v34 = vpack.c.bf16 %v2243_v33, %v2242_v32  ;;  %v2245_v36 = vld [vmem:[%s7616_s18 + $0x78] sm:$0xff] }
0x135a   : > { %v5984_v37 = vpack.c.bf16 %v2245_v36, %v2244_v35 }
0x135b   : > { %5967 = vmatpush3.bf16.msra.mxu0 %v5966_v19 }
0x135c   : > { %5968 = vmatprep.subr.bf16.mxu0 %v6664_v12 }
0x135f   : > { %5970 = vmatpush3.bf16.msra.mxu0 %v5969_v22 }
0x1360   : > { %5971 = vmatprep.subr.bf16.mxu0 %v6664_v12 }
0x1363   : > { %5973 = vmatpush3.bf16.msra.mxu0 %v5972_v25 }
0x1364   : > { %5974 = vmatprep.subr.bf16.mxu0 %v6664_v12 }
0x1367   : > { %5976 = vmatpush3.bf16.msra.mxu0 %v5975_v28 }
0x1368   : > { %5977 = vmatprep.subr.bf16.mxu0 %v6664_v12 }
0x136b   : > { %5979 = vmatpush3.bf16.msra.mxu0 %v5978_v31 }
0x136c   : > { %5980 = vmatprep.subr.bf16.mxu0 %v6664_v12 }
0x136f   : > { %5982 = vmatpush3.bf16.msra.mxu0 %v5981_v34 }
0x1370   : > { %5983 = vmatprep.subr.bf16.mxu0 %v6664_v12 }
0x1373   : > { %5985 = vmatpush3.bf16.msra.mxu0 %v5984_v37 }
0x1376   : > { %5084 = vmatmul.mubr.f32.vlgmr.msra.gmra.mrb[0].mxu0 %v2225_v38 }
0x1449   : > { %v2314_v40 = vpop.f32.mrb[0].mxu0 }
0x144a   : > { %v2315_v41 = vadd.f32 %v2314_v40, %v2247_v39  ;;  %v5085_v42 = vpop.f32.mrb[1].mxu0 }
0x144c   : > { %v2318_v44 = vmax.f32 %v2315_v41, 0.0 }
0x144e   : > { %v2320_v45 = vmax.f32 %v2319_v43, %v2318_v44 }
0x1450   : > { %2321 = vst [vmem:[#allocation3] sm:$0x1] %v2320_v45 }
0x1451 PF: > { %5986 = vmatprep.subr.bf16.mxu0 %v6619_v0  ;;  %s2324_s10 = sadd.s32 5, %s6964_s0  ;;  %5118 = vmatprep.mubr.msk.f32.mxu0 %vm6620_vm0, %v6621_v1  ;;  %v2326_v9 = vld [vmem:[%s6949_s11 + $0x5] sm:$0x1] }
0x1452   : > { %s7643_s21 = sld [smem:[#allocation5 + %s2324_s10]]  ;;  %s7645_s20 = smul.u32 3, %s2324_s10 }
0x1454   : > { %s7648_s22 = sld [smem:[#allocation7 + %s7645_s20]] }
0x1457   : > { %v2322_v46 = vld [vmem:[#allocation3] sm:$0x1] }
0x1458   : > { %2323 = vst [vmem:[#allocation2 + $0x4] sm:$0x1] %v2322_v46  ;;  %s3818_s29 = sshll.u32 %s7643_s21, 7  ;;  %s2345_s16 = scalar_lea.vmem %s8099_s5, %s7643_s21 }
0x1459   : > { %s7651_s27 = scalar_lea.vmem [#allocation11], %s3818_s29  ;;  %v2346_v10 = vld [vmem:[%s2345_s16] sm:$0x1] }
0x145a   : > { %v2329_v47 = vld [vmem:[%s7651_s27] sm:$0xff]  ;;  %v2330_v48 = vld [vmem:[%s7651_s27 + $0x8] sm:$0xff]  ;;  %v2331_v49 = vld [vmem:[%s7651_s27 + $0x10] sm:$0xff]  ;;  %p3819_p9 = scmp.lt.s32.totalorder %s7648_s22, 0 }
0x145b   : > { %v5987_v50 = vpack.c.bf16 %v2330_v48, %v2329_v47  ;;  %v2332_v51 = vld [vmem:[%s7651_s27 + $0x18] sm:$0xff]  ;;  %v2333_v53 = vld [vmem:[%s7651_s27 + $0x20] sm:$0xff]  ;;  %v2334_v54 = vld [vmem:[%s7651_s27 + $0x28] sm:$0xff]  ;;  %s2427_s23 = sadd.s32 (!%p3819_p9), %s6964_s0, %s7648_s22  ;;  %v6667_v15 = vmov (!%p3819_p9), 0.0|0.0   ;;  %vm6668_vm1 = vmmov (!%p3819_p9), 0   ;;  %v6669_v16 = vmov (!%p3819_p9), 0.0  }
0x145c   : > { %v5990_v52 = vpack.c.bf16 %v2332_v51, %v2331_v49  ;;  %v5993_v55 = vpack.c.bf16 %v2334_v54, %v2333_v53  ;;  %v2335_v56 = vld [vmem:[%s7651_s27 + $0x30] sm:$0xff]  ;;  %v2336_v57 = vld [vmem:[%s7651_s27 + $0x38] sm:$0xff]  ;;  %v2337_v59 = vld [vmem:[%s7651_s27 + $0x40] sm:$0xff]  ;;  %s7684_s24 = sld [smem:[#allocation6 + %s2427_s23]] (!%p3819_p9)  ;;  %s2425_s21 = scalar_lea.vmem (!%p3819_p9), [#allocation2], %s7648_s22 }
0x145d   : > { %5988 = vmatpush3.bf16.msra.mxu0 %v5987_v50  ;;  %v5996_v58 = vpack.c.bf16 %v2336_v57, %v2335_v56  ;;  %v2338_v60 = vld [vmem:[%s7651_s27 + $0x48] sm:$0xff]  ;;  %v2339_v62 = vld [vmem:[%s7651_s27 + $0x50] sm:$0xff]  ;;  %v2340_v63 = vld [vmem:[%s7651_s27 + $0x58] sm:$0xff] }
0x145e   : > { %5989 = vmatprep.subr.bf16.mxu0 %v6619_v0  ;;  %v5999_v61 = vpack.c.bf16 %v2338_v60, %v2337_v59  ;;  %v6002_v2 = vpack.c.bf16 %v2340_v63, %v2339_v62  ;;  %v2341_v3 = vld [vmem:[%s7651_s27 + $0x60] sm:$0xff]  ;;  %v2342_v4 = vld [vmem:[%s7651_s27 + $0x68] sm:$0xff]  ;;  %v2343_v6 = vld [vmem:[%s7651_s27 + $0x70] sm:$0xff] }
0x145f   : > { %v6005_v5 = vpack.c.bf16 %v2342_v4, %v2341_v3  ;;  %v2344_v7 = vld [vmem:[%s7651_s27 + $0x78] sm:$0xff]  ;;  %v2426_v41 = vld [vmem:[%s2425_s21] sm:$0x1] (!%p3819_p9) }
0x1460   : > { %v6008_v8 = vpack.c.bf16 %v2344_v7, %v2343_v6 }
0x1461   : > { %5991 = vmatpush3.bf16.msra.mxu0 %v5990_v52 }
0x1462   : > { %5992 = vmatprep.subr.bf16.mxu0 %v6619_v0  ;;  %s3820_s25 = sshll.u32 (!%p3819_p9), %s7684_s24, 7  ;;  %s2447_s26 = scalar_lea.vmem (!%p3819_p9), %s8101_s7, %s7684_s24 }
0x1463   : > { %s7687_s10 = scalar_lea.vmem (!%p3819_p9), [#allocation13], %s3820_s25  ;;  %v2448_v42 = vld [vmem:[%s2447_s26] sm:$0x1] (!%p3819_p9) }
0x1464   : > { %v2431_v17 = vld [vmem:[%s7687_s10] sm:$0xff] (!%p3819_p9)  ;;  %v2432_v18 = vld [vmem:[%s7687_s10 + $0x8] sm:$0xff] (!%p3819_p9)  ;;  %v2433_v19 = vld [vmem:[%s7687_s10 + $0x10] sm:$0xff] (!%p3819_p9) }
0x1465   : > { %5994 = vmatpush3.bf16.msra.mxu0 %v5993_v55  ;;  %v6011_v20 = vpack.c.bf16 (!%p3819_p9), %v2432_v18, %v2431_v17  ;;  %v2434_v21 = vld [vmem:[%s7687_s10 + $0x18] sm:$0xff] (!%p3819_p9)  ;;  %v2435_v23 = vld [vmem:[%s7687_s10 + $0x20] sm:$0xff] (!%p3819_p9)  ;;  %v2436_v24 = vld [vmem:[%s7687_s10 + $0x28] sm:$0xff] (!%p3819_p9) }
0x1466   : > { %5995 = vmatprep.subr.bf16.mxu0 %v6619_v0  ;;  %v6014_v22 = vpack.c.bf16 (!%p3819_p9), %v2434_v21, %v2433_v19  ;;  %v6017_v25 = vpack.c.bf16 (!%p3819_p9), %v2436_v24, %v2435_v23  ;;  %v2437_v26 = vld [vmem:[%s7687_s10 + $0x30] sm:$0xff] (!%p3819_p9)  ;;  %v2438_v27 = vld [vmem:[%s7687_s10 + $0x38] sm:$0xff] (!%p3819_p9)  ;;  %v2439_v29 = vld [vmem:[%s7687_s10 + $0x40] sm:$0xff] (!%p3819_p9) }
0x1467   : > { %v6020_v28 = vpack.c.bf16 (!%p3819_p9), %v2438_v27, %v2437_v26  ;;  %v2440_v30 = vld [vmem:[%s7687_s10 + $0x48] sm:$0xff] (!%p3819_p9)  ;;  %v2441_v32 = vld [vmem:[%s7687_s10 + $0x50] sm:$0xff] (!%p3819_p9)  ;;  %v2442_v33 = vld [vmem:[%s7687_s10 + $0x58] sm:$0xff] (!%p3819_p9) }
0x1468   : > { %v6023_v31 = vpack.c.bf16 (!%p3819_p9), %v2440_v30, %v2439_v29  ;;  %v6026_v34 = vpack.c.bf16 (!%p3819_p9), %v2442_v33, %v2441_v32  ;;  %v2443_v35 = vld [vmem:[%s7687_s10 + $0x60] sm:$0xff] (!%p3819_p9)  ;;  %v2444_v36 = vld [vmem:[%s7687_s10 + $0x68] sm:$0xff] (!%p3819_p9)  ;;  %v2445_v38 = vld [vmem:[%s7687_s10 + $0x70] sm:$0xff] (!%p3819_p9) }
0x1469   : > { %5997 = vmatpush3.bf16.msra.mxu0 %v5996_v58  ;;  %v6029_v37 = vpack.c.bf16 (!%p3819_p9), %v2444_v36, %v2443_v35  ;;  %v2446_v39 = vld [vmem:[%s7687_s10 + $0x78] sm:$0xff] (!%p3819_p9) }
0x146a   : > { %5998 = vmatprep.subr.bf16.mxu0 %v6619_v0  ;;  %v6032_v40 = vpack.c.bf16 (!%p3819_p9), %v2446_v39, %v2445_v38 }
0x146d   : > { %6000 = vmatpush3.bf16.msra.mxu0 %v5999_v61 }
0x146e   : > { %6001 = vmatprep.subr.bf16.mxu0 %v6619_v0 }
0x1471   : > { %6003 = vmatpush3.bf16.msra.mxu0 %v6002_v2 }
0x1472   : > { %6004 = vmatprep.subr.bf16.mxu0 %v6619_v0 }
0x1475   : > { %6006 = vmatpush3.bf16.msra.mxu0 %v6005_v5 }
0x1476   : > { %6007 = vmatprep.subr.bf16.mxu0 %v6619_v0 }
0x1479   : > { %6009 = vmatpush3.bf16.msra.mxu0 %v6008_v8 }
0x147a   : > { %6010 = vmatprep.subr.bf16.mxu0 (!%p3819_p9), %v6667_v15 }
0x147c   : > { %5119 = vmatmul.mubr.f32.vlgmr.msra.gmra.mrb[0].mxu0 %v2326_v9 }
0x147d   : > { %5153 = vmatprep.mubr.msk.f32.mxu0 (!%p3819_p9), %vm6668_vm1, %v6669_v16  ;;  %6012 = vmatpush3.bf16.msra.mxu0 (!%p3819_p9), %v6011_v20 }
0x147e   : > { %6013 = vmatprep.subr.bf16.mxu0 (!%p3819_p9), %v6667_v15 }
0x1481   : > { %6015 = vmatpush3.bf16.msra.mxu0 (!%p3819_p9), %v6014_v22 }
0x1482   : > { %6016 = vmatprep.subr.bf16.mxu0 (!%p3819_p9), %v6667_v15 }
0x1485   : > { %6018 = vmatpush3.bf16.msra.mxu0 (!%p3819_p9), %v6017_v25 }
0x1486   : > { %6019 = vmatprep.subr.bf16.mxu0 (!%p3819_p9), %v6667_v15 }
0x1489   : > { %6021 = vmatpush3.bf16.msra.mxu0 (!%p3819_p9), %v6020_v28 }
0x148a   : > { %6022 = vmatprep.subr.bf16.mxu0 (!%p3819_p9), %v6667_v15 }
0x148d   : > { %6024 = vmatpush3.bf16.msra.mxu0 (!%p3819_p9), %v6023_v31 }
0x148e   : > { %6025 = vmatprep.subr.bf16.mxu0 (!%p3819_p9), %v6667_v15 }
0x1491   : > { %6027 = vmatpush3.bf16.msra.mxu0 (!%p3819_p9), %v6026_v34 }
0x1492   : > { %6028 = vmatprep.subr.bf16.mxu0 (!%p3819_p9), %v6667_v15 }
0x1495   : > { %6030 = vmatpush3.bf16.msra.mxu0 (!%p3819_p9), %v6029_v37 }
0x1496   : > { %6031 = vmatprep.subr.bf16.mxu0 (!%p3819_p9), %v6667_v15 }
0x1499   : > { %6033 = vmatpush3.bf16.msra.mxu0 (!%p3819_p9), %v6032_v40 }
0x154e   : > { %2424 = sbr.rel (%p3819_p9) target bundleno = 5675 (0x162b), region = 116 }
0x154f   : > { %v2413_v11 = vpop.f32.mrb[0].mxu0 }
0x1550   : > { %v2414_v12 = vadd.f32 %v2413_v11, %v2346_v10  ;;  %v5120_v13 = vpop.f32.mrb[1].mxu0  ;;  %5154 = vmatmul.mubr.f32.vlgmr.msra.gmra.mrb[0].mxu0 (!%p3819_p9), %v2426_v41 }
0x1552   : > { %v2417_v14 = vmax.f32 %v2414_v12, 0.0 }
0x1554   : > { %2418 = vst [vmem:[#allocation3] sm:$0x1] %v2417_v14 }
0x155b   : > { %v2520_v46 = vld [vmem:[#allocation3] sm:$0x1] }
0x1623   : > { %v2515_v43 = vpop.f32.mrb[0].mxu0 }
0x1624   : > { %v2516_v44 = vadd.f32 %v2515_v43, %v2448_v42  ;;  %v5155_v45 = vpop.f32.mrb[1].mxu0 }
0x1626   : > { %v2519_v47 = vmax.f32 %v2516_v44, 0.0 }
0x1628   : > { %v2521_v48 = vmax.f32 %v2520_v46, %v2519_v47 }
0x162a   : > { %2522 = vst [vmem:[#allocation3] sm:$0x1] %v2521_v48 }
0x162b PF: > { %s2523_s18 = sadd.s32 1, %s7645_s20 }
0x162c   : > { %s7711_s16 = sld [smem:[#allocation7 + %s2523_s18]] }
0x1632   : > { %p3821_p10 = scmp.lt.s32.totalorder %s7711_s16, 0 }
0x1633   : > { %s2531_s22 = sadd.s32 (!%p3821_p10), %s6964_s0, %s7711_s16  ;;  %v6670_v49 = vmov (!%p3821_p10), 0.0|0.0   ;;  %vm6671_vm2 = vmmov (!%p3821_p10), 0   ;;  %v6672_v50 = vmov (!%p3821_p10), 0.0   ;;  %s2529_s10 = scalar_lea.vmem (!%p3821_p10), [#allocation2], %s7711_s16  ;;  %v2624_v18 = vld [vmem:[#allocation3] sm:$0x1] (!%p3821_p10) }
0x1634   : > { %2528 = sbr.rel (%p3821_p10) target bundleno = 5945 (0x1739), region = 120  ;;  %6034 = vmatprep.subr.bf16.mxu0 (!%p3821_p10), %v6670_v49  ;;  %s7716_s23 = sld [smem:[#allocation6 + %s2531_s22]] (!%p3821_p10)  ;;  %5188 = vmatprep.mubr.msk.f32.mxu0 (!%p3821_p10), %vm6671_vm2, %v6672_v50  ;;  %v2530_v13 = vld [vmem:[%s2529_s10] sm:$0x1] (!%p3821_p10) }
0x163a   : > { %s3822_s24 = sshll.u32 (!%p3821_p10), %s7716_s23, 7  ;;  %s2551_s27 = scalar_lea.vmem (!%p3821_p10), %s8101_s7, %s7716_s23 }
0x163b   : > { %s7719_s25 = scalar_lea.vmem [#allocation13], %s3822_s24  ;;  %v2552_v14 = vld [vmem:[%s2551_s27] sm:$0x1] }
0x163c   : > { %v2535_v51 = vld [vmem:[%s7719_s25] sm:$0xff]  ;;  %v2536_v52 = vld [vmem:[%s7719_s25 + $0x8] sm:$0xff]  ;;  %v2537_v53 = vld [vmem:[%s7719_s25 + $0x10] sm:$0xff] }
0x163d   : > { %v6035_v54 = vpack.c.bf16 %v2536_v52, %v2535_v51  ;;  %v2538_v55 = vld [vmem:[%s7719_s25 + $0x18] sm:$0xff]  ;;  %v2539_v57 = vld [vmem:[%s7719_s25 + $0x20] sm:$0xff]  ;;  %v2540_v58 = vld [vmem:[%s7719_s25 + $0x28] sm:$0xff] }
0x163e   : > { %v6038_v56 = vpack.c.bf16 %v2538_v55, %v2537_v53  ;;  %v6041_v59 = vpack.c.bf16 %v2540_v58, %v2539_v57  ;;  %v2541_v60 = vld [vmem:[%s7719_s25 + $0x30] sm:$0xff]  ;;  %v2542_v61 = vld [vmem:[%s7719_s25 + $0x38] sm:$0xff]  ;;  %v2543_v63 = vld [vmem:[%s7719_s25 + $0x40] sm:$0xff] }
0x163f   : > { %6036 = vmatpush3.bf16.msra.mxu0 %v6035_v54  ;;  %v6044_v62 = vpack.c.bf16 %v2542_v61, %v2541_v60  ;;  %v2544_v2 = vld [vmem:[%s7719_s25 + $0x48] sm:$0xff]  ;;  %v2545_v4 = vld [vmem:[%s7719_s25 + $0x50] sm:$0xff]  ;;  %v2546_v5 = vld [vmem:[%s7719_s25 + $0x58] sm:$0xff] }
0x1640   : > { %6037 = vmatprep.subr.bf16.mxu0 %v6670_v49  ;;  %v6047_v3 = vpack.c.bf16 %v2544_v2, %v2543_v63  ;;  %v6050_v6 = vpack.c.bf16 %v2546_v5, %v2545_v4  ;;  %v2547_v7 = vld [vmem:[%s7719_s25 + $0x60] sm:$0xff]  ;;  %v2548_v8 = vld [vmem:[%s7719_s25 + $0x68] sm:$0xff]  ;;  %v2549_v10 = vld [vmem:[%s7719_s25 + $0x70] sm:$0xff] }
0x1641   : > { %v6053_v9 = vpack.c.bf16 %v2548_v8, %v2547_v7  ;;  %v2550_v11 = vld [vmem:[%s7719_s25 + $0x78] sm:$0xff] }
0x1642   : > { %v6056_v12 = vpack.c.bf16 %v2550_v11, %v2549_v10 }
0x1643   : > { %6039 = vmatpush3.bf16.msra.mxu0 %v6038_v56 }
0x1644   : > { %6040 = vmatprep.subr.bf16.mxu0 %v6670_v49 }
0x1647   : > { %6042 = vmatpush3.bf16.msra.mxu0 %v6041_v59 }
0x1648   : > { %6043 = vmatprep.subr.bf16.mxu0 %v6670_v49 }
0x164b   : > { %6045 = vmatpush3.bf16.msra.mxu0 %v6044_v62 }
0x164c   : > { %6046 = vmatprep.subr.bf16.mxu0 %v6670_v49 }
0x164f   : > { %6048 = vmatpush3.bf16.msra.mxu0 %v6047_v3 }
0x1650   : > { %6049 = vmatprep.subr.bf16.mxu0 %v6670_v49 }
0x1653   : > { %6051 = vmatpush3.bf16.msra.mxu0 %v6050_v6 }
0x1654   : > { %6052 = vmatprep.subr.bf16.mxu0 %v6670_v49 }
0x1657   : > { %6054 = vmatpush3.bf16.msra.mxu0 %v6053_v9 }
0x1658   : > { %6055 = vmatprep.subr.bf16.mxu0 %v6670_v49 }
0x165b   : > { %6057 = vmatpush3.bf16.msra.mxu0 %v6056_v12 }
0x165e   : > { %5189 = vmatmul.mubr.f32.vlgmr.msra.gmra.mrb[0].mxu0 %v2530_v13 }
0x1731   : > { %v2619_v15 = vpop.f32.mrb[0].mxu0 }
0x1732   : > { %v2620_v16 = vadd.f32 %v2619_v15, %v2552_v14  ;;  %v5190_v17 = vpop.f32.mrb[1].mxu0 }
0x1734   : > { %v2623_v19 = vmax.f32 %v2620_v16, 0.0 }
0x1736   : > { %v2625_v20 = vmax.f32 %v2624_v18, %v2623_v19 }
0x1738   : > { %2626 = vst [vmem:[#allocation3] sm:$0x1] %v2625_v20 }
0x1739 PF: > { %s2627_s26 = sadd.s32 2, %s7645_s20 }
0x173a   : > { %s7743_s18 = sld [smem:[#allocation7 + %s2627_s26]] }
0x1740   : > { %p3823_p12 = scmp.lt.s32.totalorder %s7743_s18, 0 }
0x1741   : > { %s2635_s16 = sadd.s32 (!%p3823_p12), %s6964_s0, %s7743_s18  ;;  %v6673_v21 = vmov (!%p3823_p12), 0.0|0.0   ;;  %vm6674_vm3 = vmmov (!%p3823_p12), 0   ;;  %v6675_v22 = vmov (!%p3823_p12), 0.0   ;;  %s2633_s20 = scalar_lea.vmem (!%p3823_p12), [#allocation2], %s7743_s18  ;;  %v2728_v52 = vld [vmem:[#allocation3] sm:$0x1] (!%p3823_p12) }
0x1742   : > { %2632 = sbr.rel (%p3823_p12) target bundleno = 6215 (0x1847), region = 124  ;;  %6058 = vmatprep.subr.bf16.mxu0 (!%p3823_p12), %v6673_v21  ;;  %s7748_s22 = sld [smem:[#allocation6 + %s2635_s16]] (!%p3823_p12)  ;;  %5223 = vmatprep.mubr.msk.f32.mxu0 (!%p3823_p12), %vm6674_vm3, %v6675_v22  ;;  %v2634_v47 = vld [vmem:[%s2633_s20] sm:$0x1] (!%p3823_p12) }
0x1748   : > { %s3824_s23 = sshll.u32 (!%p3823_p12), %s7748_s22, 7  ;;  %s2655_s21 = scalar_lea.vmem (!%p3823_p12), %s8101_s7, %s7748_s22 }
0x1749   : > { %s7751_s24 = scalar_lea.vmem [#allocation13], %s3824_s23  ;;  %v2656_v48 = vld [vmem:[%s2655_s21] sm:$0x1] }
0x174a   : > { %v2639_v23 = vld [vmem:[%s7751_s24] sm:$0xff]  ;;  %v2640_v24 = vld [vmem:[%s7751_s24 + $0x8] sm:$0xff]  ;;  %v2641_v25 = vld [vmem:[%s7751_s24 + $0x10] sm:$0xff] }
0x174b   : > { %v6059_v26 = vpack.c.bf16 %v2640_v24, %v2639_v23  ;;  %v2642_v27 = vld [vmem:[%s7751_s24 + $0x18] sm:$0xff]  ;;  %v2643_v29 = vld [vmem:[%s7751_s24 + $0x20] sm:$0xff]  ;;  %v2644_v30 = vld [vmem:[%s7751_s24 + $0x28] sm:$0xff] }
0x174c   : > { %v6062_v28 = vpack.c.bf16 %v2642_v27, %v2641_v25  ;;  %v6065_v31 = vpack.c.bf16 %v2644_v30, %v2643_v29  ;;  %v2645_v32 = vld [vmem:[%s7751_s24 + $0x30] sm:$0xff]  ;;  %v2646_v33 = vld [vmem:[%s7751_s24 + $0x38] sm:$0xff]  ;;  %v2647_v35 = vld [vmem:[%s7751_s24 + $0x40] sm:$0xff] }
0x174d   : > { %6060 = vmatpush3.bf16.msra.mxu0 %v6059_v26  ;;  %v6068_v34 = vpack.c.bf16 %v2646_v33, %v2645_v32  ;;  %v2648_v36 = vld [vmem:[%s7751_s24 + $0x48] sm:$0xff]  ;;  %v2649_v38 = vld [vmem:[%s7751_s24 + $0x50] sm:$0xff]  ;;  %v2650_v39 = vld [vmem:[%s7751_s24 + $0x58] sm:$0xff] }
0x174e   : > { %6061 = vmatprep.subr.bf16.mxu0 %v6673_v21  ;;  %v6071_v37 = vpack.c.bf16 %v2648_v36, %v2647_v35  ;;  %v6074_v40 = vpack.c.bf16 %v2650_v39, %v2649_v38  ;;  %v2651_v41 = vld [vmem:[%s7751_s24 + $0x60] sm:$0xff]  ;;  %v2652_v42 = vld [vmem:[%s7751_s24 + $0x68] sm:$0xff]  ;;  %v2653_v44 = vld [vmem:[%s7751_s24 + $0x70] sm:$0xff] }
0x174f   : > { %v6077_v43 = vpack.c.bf16 %v2652_v42, %v2651_v41  ;;  %v2654_v45 = vld [vmem:[%s7751_s24 + $0x78] sm:$0xff] }
0x1750   : > { %v6080_v46 = vpack.c.bf16 %v2654_v45, %v2653_v44 }
0x1751   : > { %6063 = vmatpush3.bf16.msra.mxu0 %v6062_v28 }
0x1752   : > { %6064 = vmatprep.subr.bf16.mxu0 %v6673_v21 }
0x1755   : > { %6066 = vmatpush3.bf16.msra.mxu0 %v6065_v31 }
0x1756   : > { %6067 = vmatprep.subr.bf16.mxu0 %v6673_v21 }
0x1759   : > { %6069 = vmatpush3.bf16.msra.mxu0 %v6068_v34 }
0x175a   : > { %6070 = vmatprep.subr.bf16.mxu0 %v6673_v21 }
0x175d   : > { %6072 = vmatpush3.bf16.msra.mxu0 %v6071_v37 }
0x175e   : > { %6073 = vmatprep.subr.bf16.mxu0 %v6673_v21 }
0x1761   : > { %6075 = vmatpush3.bf16.msra.mxu0 %v6074_v40 }
0x1762   : > { %6076 = vmatprep.subr.bf16.mxu0 %v6673_v21 }
0x1765   : > { %6078 = vmatpush3.bf16.msra.mxu0 %v6077_v43 }
0x1766   : > { %6079 = vmatprep.subr.bf16.mxu0 %v6673_v21 }
0x1769   : > { %6081 = vmatpush3.bf16.msra.mxu0 %v6080_v46 }
0x176c   : > { %5224 = vmatmul.mubr.f32.vlgmr.msra.gmra.mrb[0].mxu0 %v2634_v47 }
0x183f   : > { %v2723_v49 = vpop.f32.mrb[0].mxu0 }
0x1840   : > { %v2724_v50 = vadd.f32 %v2723_v49, %v2656_v48  ;;  %v5225_v51 = vpop.f32.mrb[1].mxu0 }
0x1842   : > { %v2727_v53 = vmax.f32 %v2724_v50, 0.0 }
0x1844   : > { %v2729_v54 = vmax.f32 %v2728_v52, %v2727_v53 }
0x1846   : > { %2730 = vst [vmem:[#allocation3] sm:$0x1] %v2729_v54 }
0x1847 PF: > { %6082 = vmatprep.subr.bf16.mxu0 %v6619_v0  ;;  %s2733_s29 = sadd.s32 6, %s6964_s0  ;;  %5258 = vmatprep.mubr.msk.f32.mxu0 %vm6620_vm0, %v6621_v1  ;;  %v2735_v18 = vld [vmem:[%s6949_s11 + $0x6] sm:$0x1] }
0x1848   : > { %s7778_s27 = sld [smem:[#allocation5 + %s2733_s29]]  ;;  %s7780_s26 = smul.u32 3, %s2733_s29 }
0x184a   : > { %s7783_s18 = sld [smem:[#allocation7 + %s7780_s26]] }
0x184d   : > { %v2731_v55 = vld [vmem:[#allocation3] sm:$0x1] }
0x184e   : > { %2732 = vst [vmem:[#allocation2 + $0x5] sm:$0x1] %v2731_v55  ;;  %s3825_s16 = sshll.u32 %s7778_s27, 7  ;;  %s2754_s20 = scalar_lea.vmem %s8099_s5, %s7778_s27 }
0x184f   : > { %s7786_s22 = scalar_lea.vmem [#allocation11], %s3825_s16  ;;  %v2755_v19 = vld [vmem:[%s2754_s20] sm:$0x1] }
0x1850   : > { %v2738_v56 = vld [vmem:[%s7786_s22] sm:$0xff]  ;;  %v2739_v57 = vld [vmem:[%s7786_s22 + $0x8] sm:$0xff]  ;;  %v2740_v58 = vld [vmem:[%s7786_s22 + $0x10] sm:$0xff]  ;;  %p3826_p2 = scmp.lt.s32.totalorder %s7783_s18, 0 }
0x1851   : > { %v6083_v59 = vpack.c.bf16 %v2739_v57, %v2738_v56  ;;  %v2741_v60 = vld [vmem:[%s7786_s22 + $0x18] sm:$0xff]  ;;  %v2742_v62 = vld [vmem:[%s7786_s22 + $0x20] sm:$0xff]  ;;  %v2743_v63 = vld [vmem:[%s7786_s22 + $0x28] sm:$0xff]  ;;  %s2836_s25 = sadd.s32 (!%p3826_p2), %s6964_s0, %s7783_s18  ;;  %v6676_v24 = vmov (!%p3826_p2), 0.0|0.0   ;;  %vm6677_vm4 = vmmov (!%p3826_p2), 0   ;;  %v6678_v25 = vmov (!%p3826_p2), 0.0  }
0x1852   : > { %v6086_v61 = vpack.c.bf16 %v2741_v60, %v2740_v58  ;;  %v6089_v2 = vpack.c.bf16 %v2743_v63, %v2742_v62  ;;  %v2744_v3 = vld [vmem:[%s7786_s22 + $0x30] sm:$0xff]  ;;  %v2745_v4 = vld [vmem:[%s7786_s22 + $0x38] sm:$0xff]  ;;  %v2746_v6 = vld [vmem:[%s7786_s22 + $0x40] sm:$0xff]  ;;  %s7819_s10 = sld [smem:[#allocation6 + %s2836_s25]] (!%p3826_p2)  ;;  %s2834_s27 = scalar_lea.vmem (!%p3826_p2), [#allocation2], %s7783_s18 }
0x1853   : > { %6084 = vmatpush3.bf16.msra.mxu0 %v6083_v59  ;;  %v6092_v5 = vpack.c.bf16 %v2745_v4, %v2744_v3  ;;  %v2747_v7 = vld [vmem:[%s7786_s22 + $0x48] sm:$0xff]  ;;  %v2748_v9 = vld [vmem:[%s7786_s22 + $0x50] sm:$0xff]  ;;  %v2749_v10 = vld [vmem:[%s7786_s22 + $0x58] sm:$0xff] }
0x1854   : > { %6085 = vmatprep.subr.bf16.mxu0 %v6619_v0  ;;  %v6095_v8 = vpack.c.bf16 %v2747_v7, %v2746_v6  ;;  %v6098_v11 = vpack.c.bf16 %v2749_v10, %v2748_v9  ;;  %v2750_v12 = vld [vmem:[%s7786_s22 + $0x60] sm:$0xff]  ;;  %v2751_v13 = vld [vmem:[%s7786_s22 + $0x68] sm:$0xff]  ;;  %v2752_v15 = vld [vmem:[%s7786_s22 + $0x70] sm:$0xff] }
0x1855   : > { %v6101_v14 = vpack.c.bf16 %v2751_v13, %v2750_v12  ;;  %v2753_v16 = vld [vmem:[%s7786_s22 + $0x78] sm:$0xff]  ;;  %v2835_v50 = vld [vmem:[%s2834_s27] sm:$0x1] (!%p3826_p2) }
0x1856   : > { %v6104_v17 = vpack.c.bf16 %v2753_v16, %v2752_v15 }
0x1857   : > { %6087 = vmatpush3.bf16.msra.mxu0 %v6086_v61 }
0x1858   : > { %6088 = vmatprep.subr.bf16.mxu0 %v6619_v0  ;;  %s3827_s21 = sshll.u32 (!%p3826_p2), %s7819_s10, 7  ;;  %s2856_s23 = scalar_lea.vmem (!%p3826_p2), %s8101_s7, %s7819_s10 }
0x1859   : > { %s7822_s29 = scalar_lea.vmem (!%p3826_p2), [#allocation13], %s3827_s21  ;;  %v2857_v51 = vld [vmem:[%s2856_s23] sm:$0x1] (!%p3826_p2) }
0x185a   : > { %v2840_v26 = vld [vmem:[%s7822_s29] sm:$0xff] (!%p3826_p2)  ;;  %v2841_v27 = vld [vmem:[%s7822_s29 + $0x8] sm:$0xff] (!%p3826_p2)  ;;  %v2842_v28 = vld [vmem:[%s7822_s29 + $0x10] sm:$0xff] (!%p3826_p2) }
0x185b   : > { %6090 = vmatpush3.bf16.msra.mxu0 %v6089_v2  ;;  %v6107_v29 = vpack.c.bf16 (!%p3826_p2), %v2841_v27, %v2840_v26  ;;  %v2843_v30 = vld [vmem:[%s7822_s29 + $0x18] sm:$0xff] (!%p3826_p2)  ;;  %v2844_v32 = vld [vmem:[%s7822_s29 + $0x20] sm:$0xff] (!%p3826_p2)  ;;  %v2845_v33 = vld [vmem:[%s7822_s29 + $0x28] sm:$0xff] (!%p3826_p2) }
0x185c   : > { %6091 = vmatprep.subr.bf16.mxu0 %v6619_v0  ;;  %v6110_v31 = vpack.c.bf16 (!%p3826_p2), %v2843_v30, %v2842_v28  ;;  %v6113_v34 = vpack.c.bf16 (!%p3826_p2), %v2845_v33, %v2844_v32  ;;  %v2846_v35 = vld [vmem:[%s7822_s29 + $0x30] sm:$0xff] (!%p3826_p2)  ;;  %v2847_v36 = vld [vmem:[%s7822_s29 + $0x38] sm:$0xff] (!%p3826_p2)  ;;  %v2848_v38 = vld [vmem:[%s7822_s29 + $0x40] sm:$0xff] (!%p3826_p2) }
0x185d   : > { %v6116_v37 = vpack.c.bf16 (!%p3826_p2), %v2847_v36, %v2846_v35  ;;  %v2849_v39 = vld [vmem:[%s7822_s29 + $0x48] sm:$0xff] (!%p3826_p2)  ;;  %v2850_v41 = vld [vmem:[%s7822_s29 + $0x50] sm:$0xff] (!%p3826_p2)  ;;  %v2851_v42 = vld [vmem:[%s7822_s29 + $0x58] sm:$0xff] (!%p3826_p2) }
0x185e   : > { %v6119_v40 = vpack.c.bf16 (!%p3826_p2), %v2849_v39, %v2848_v38  ;;  %v6122_v43 = vpack.c.bf16 (!%p3826_p2), %v2851_v42, %v2850_v41  ;;  %v2852_v44 = vld [vmem:[%s7822_s29 + $0x60] sm:$0xff] (!%p3826_p2)  ;;  %v2853_v45 = vld [vmem:[%s7822_s29 + $0x68] sm:$0xff] (!%p3826_p2)  ;;  %v2854_v47 = vld [vmem:[%s7822_s29 + $0x70] sm:$0xff] (!%p3826_p2) }
0x185f   : > { %6093 = vmatpush3.bf16.msra.mxu0 %v6092_v5  ;;  %v6125_v46 = vpack.c.bf16 (!%p3826_p2), %v2853_v45, %v2852_v44  ;;  %v2855_v48 = vld [vmem:[%s7822_s29 + $0x78] sm:$0xff] (!%p3826_p2) }
0x1860   : > { %6094 = vmatprep.subr.bf16.mxu0 %v6619_v0  ;;  %v6128_v49 = vpack.c.bf16 (!%p3826_p2), %v2855_v48, %v2854_v47 }
0x1863   : > { %6096 = vmatpush3.bf16.msra.mxu0 %v6095_v8 }
0x1864   : > { %6097 = vmatprep.subr.bf16.mxu0 %v6619_v0 }
0x1867   : > { %6099 = vmatpush3.bf16.msra.mxu0 %v6098_v11 }
0x1868   : > { %6100 = vmatprep.subr.bf16.mxu0 %v6619_v0 }
0x186b   : > { %6102 = vmatpush3.bf16.msra.mxu0 %v6101_v14 }
0x186c   : > { %6103 = vmatprep.subr.bf16.mxu0 %v6619_v0 }
0x186f   : > { %6105 = vmatpush3.bf16.msra.mxu0 %v6104_v17 }
0x1870   : > { %6106 = vmatprep.subr.bf16.mxu0 (!%p3826_p2), %v6676_v24 }
0x1872   : > { %5259 = vmatmul.mubr.f32.vlgmr.msra.gmra.mrb[0].mxu0 %v2735_v18 }
0x1873   : > { %5293 = vmatprep.mubr.msk.f32.mxu0 (!%p3826_p2), %vm6677_vm4, %v6678_v25  ;;  %6108 = vmatpush3.bf16.msra.mxu0 (!%p3826_p2), %v6107_v29 }
0x1874   : > { %6109 = vmatprep.subr.bf16.mxu0 (!%p3826_p2), %v6676_v24 }
0x1877   : > { %6111 = vmatpush3.bf16.msra.mxu0 (!%p3826_p2), %v6110_v31 }
0x1878   : > { %6112 = vmatprep.subr.bf16.mxu0 (!%p3826_p2), %v6676_v24 }
0x187b   : > { %6114 = vmatpush3.bf16.msra.mxu0 (!%p3826_p2), %v6113_v34 }
0x187c   : > { %6115 = vmatprep.subr.bf16.mxu0 (!%p3826_p2), %v6676_v24 }
0x187f   : > { %6117 = vmatpush3.bf16.msra.mxu0 (!%p3826_p2), %v6116_v37 }
0x1880   : > { %6118 = vmatprep.subr.bf16.mxu0 (!%p3826_p2), %v6676_v24 }
0x1883   : > { %6120 = vmatpush3.bf16.msra.mxu0 (!%p3826_p2), %v6119_v40 }
0x1884   : > { %6121 = vmatprep.subr.bf16.mxu0 (!%p3826_p2), %v6676_v24 }
0x1887   : > { %6123 = vmatpush3.bf16.msra.mxu0 (!%p3826_p2), %v6122_v43 }
0x1888   : > { %6124 = vmatprep.subr.bf16.mxu0 (!%p3826_p2), %v6676_v24 }
0x188b   : > { %6126 = vmatpush3.bf16.msra.mxu0 (!%p3826_p2), %v6125_v46 }
0x188c   : > { %6127 = vmatprep.subr.bf16.mxu0 (!%p3826_p2), %v6676_v24 }
0x188f   : > { %6129 = vmatpush3.bf16.msra.mxu0 (!%p3826_p2), %v6128_v49 }
0x1944   : > { %2833 = sbr.rel (%p3826_p2) target bundleno = 6689 (0x1a21), region = 128 }
0x1945   : > { %v2822_v20 = vpop.f32.mrb[0].mxu0 }
0x1946   : > { %v2823_v21 = vadd.f32 %v2822_v20, %v2755_v19  ;;  %v5260_v22 = vpop.f32.mrb[1].mxu0  ;;  %5294 = vmatmul.mubr.f32.vlgmr.msra.gmra.mrb[0].mxu0 (!%p3826_p2), %v2835_v50 }
0x1948   : > { %v2826_v23 = vmax.f32 %v2823_v21, 0.0 }
0x194a   : > { %2827 = vst [vmem:[#allocation3] sm:$0x1] %v2826_v23 }
0x1951   : > { %v2929_v55 = vld [vmem:[#allocation3] sm:$0x1] }
0x1a19   : > { %v2924_v52 = vpop.f32.mrb[0].mxu0 }
0x1a1a   : > { %v2925_v53 = vadd.f32 %v2924_v52, %v2857_v51  ;;  %v5295_v54 = vpop.f32.mrb[1].mxu0 }
0x1a1c   : > { %v2928_v56 = vmax.f32 %v2925_v53, 0.0 }
0x1a1e   : > { %v2930_v57 = vmax.f32 %v2929_v55, %v2928_v56 }
0x1a20   : > { %2931 = vst [vmem:[#allocation3] sm:$0x1] %v2930_v57 }
0x1a21 PF: > { %s2932_s24 = sadd.s32 1, %s7780_s26 }
0x1a22   : > { %s7846_s20 = sld [smem:[#allocation7 + %s2932_s24]] }
0x1a28   : > { %p3828_p4 = scmp.lt.s32.totalorder %s7846_s20, 0 }
0x1a29   : > { %s2940_s18 = sadd.s32 (!%p3828_p4), %s6964_s0, %s7846_s20  ;;  %v6679_v58 = vmov (!%p3828_p4), 0.0|0.0   ;;  %vm6680_vm5 = vmmov (!%p3828_p4), 0   ;;  %v6681_v59 = vmov (!%p3828_p4), 0.0   ;;  %s2938_s29 = scalar_lea.vmem (!%p3828_p4), [#allocation2], %s7846_s20  ;;  %v3033_v27 = vld [vmem:[#allocation3] sm:$0x1] (!%p3828_p4) }
0x1a2a   : > { %2937 = sbr.rel (%p3828_p4) target bundleno = 6959 (0x1b2f), region = 132  ;;  %6130 = vmatprep.subr.bf16.mxu0 (!%p3828_p4), %v6679_v58  ;;  %s7851_s25 = sld [smem:[#allocation6 + %s2940_s18]] (!%p3828_p4)  ;;  %5328 = vmatprep.mubr.msk.f32.mxu0 (!%p3828_p4), %vm6680_vm5, %v6681_v59  ;;  %v2939_v22 = vld [vmem:[%s2938_s29] sm:$0x1] (!%p3828_p4) }
0x1a30   : > { %s3829_s10 = sshll.u32 (!%p3828_p4), %s7851_s25, 7  ;;  %s2960_s22 = scalar_lea.vmem (!%p3828_p4), %s8101_s7, %s7851_s25 }
0x1a31   : > { %s7854_s21 = scalar_lea.vmem [#allocation13], %s3829_s10  ;;  %v2961_v23 = vld [vmem:[%s2960_s22] sm:$0x1] }
0x1a32   : > { %v2944_v60 = vld [vmem:[%s7854_s21] sm:$0xff]  ;;  %v2945_v61 = vld [vmem:[%s7854_s21 + $0x8] sm:$0xff]  ;;  %v2946_v62 = vld [vmem:[%s7854_s21 + $0x10] sm:$0xff] }
0x1a33   : > { %v6131_v63 = vpack.c.bf16 %v2945_v61, %v2944_v60  ;;  %v2947_v2 = vld [vmem:[%s7854_s21 + $0x18] sm:$0xff]  ;;  %v2948_v4 = vld [vmem:[%s7854_s21 + $0x20] sm:$0xff]  ;;  %v2949_v5 = vld [vmem:[%s7854_s21 + $0x28] sm:$0xff] }
0x1a34   : > { %v6134_v3 = vpack.c.bf16 %v2947_v2, %v2946_v62  ;;  %v6137_v6 = vpack.c.bf16 %v2949_v5, %v2948_v4  ;;  %v2950_v7 = vld [vmem:[%s7854_s21 + $0x30] sm:$0xff]  ;;  %v2951_v8 = vld [vmem:[%s7854_s21 + $0x38] sm:$0xff]  ;;  %v2952_v10 = vld [vmem:[%s7854_s21 + $0x40] sm:$0xff] }
0x1a35   : > { %6132 = vmatpush3.bf16.msra.mxu0 %v6131_v63  ;;  %v6140_v9 = vpack.c.bf16 %v2951_v8, %v2950_v7  ;;  %v2953_v11 = vld [vmem:[%s7854_s21 + $0x48] sm:$0xff]  ;;  %v2954_v13 = vld [vmem:[%s7854_s21 + $0x50] sm:$0xff]  ;;  %v2955_v14 = vld [vmem:[%s7854_s21 + $0x58] sm:$0xff] }
0x1a36   : > { %6133 = vmatprep.subr.bf16.mxu0 %v6679_v58  ;;  %v6143_v12 = vpack.c.bf16 %v2953_v11, %v2952_v10  ;;  %v6146_v15 = vpack.c.bf16 %v2955_v14, %v2954_v13  ;;  %v2956_v16 = vld [vmem:[%s7854_s21 + $0x60] sm:$0xff]  ;;  %v2957_v17 = vld [vmem:[%s7854_s21 + $0x68] sm:$0xff]  ;;  %v2958_v19 = vld [vmem:[%s7854_s21 + $0x70] sm:$0xff] }
0x1a37   : > { %v6149_v18 = vpack.c.bf16 %v2957_v17, %v2956_v16  ;;  %v2959_v20 = vld [vmem:[%s7854_s21 + $0x78] sm:$0xff] }
0x1a38   : > { %v6152_v21 = vpack.c.bf16 %v2959_v20, %v2958_v19 }
0x1a39   : > { %6135 = vmatpush3.bf16.msra.mxu0 %v6134_v3 }
0x1a3a   : > { %6136 = vmatprep.subr.bf16.mxu0 %v6679_v58 }
0x1a3d   : > { %6138 = vmatpush3.bf16.msra.mxu0 %v6137_v6 }
0x1a3e   : > { %6139 = vmatprep.subr.bf16.mxu0 %v6679_v58 }
0x1a41   : > { %6141 = vmatpush3.bf16.msra.mxu0 %v6140_v9 }
0x1a42   : > { %6142 = vmatprep.subr.bf16.mxu0 %v6679_v58 }
0x1a45   : > { %6144 = vmatpush3.bf16.msra.mxu0 %v6143_v12 }
0x1a46   : > { %6145 = vmatprep.subr.bf16.mxu0 %v6679_v58 }
0x1a49   : > { %6147 = vmatpush3.bf16.msra.mxu0 %v6146_v15 }
0x1a4a   : > { %6148 = vmatprep.subr.bf16.mxu0 %v6679_v58 }
0x1a4d   : > { %6150 = vmatpush3.bf16.msra.mxu0 %v6149_v18 }
0x1a4e   : > { %6151 = vmatprep.subr.bf16.mxu0 %v6679_v58 }
0x1a51   : > { %6153 = vmatpush3.bf16.msra.mxu0 %v6152_v21 }
0x1a54   : > { %5329 = vmatmul.mubr.f32.vlgmr.msra.gmra.mrb[0].mxu0 %v2939_v22 }
0x1b27   : > { %v3028_v24 = vpop.f32.mrb[0].mxu0 }
0x1b28   : > { %v3029_v25 = vadd.f32 %v3028_v24, %v2961_v23  ;;  %v5330_v26 = vpop.f32.mrb[1].mxu0 }
0x1b2a   : > { %v3032_v28 = vmax.f32 %v3029_v25, 0.0 }
0x1b2c   : > { %v3034_v29 = vmax.f32 %v3033_v27, %v3032_v28 }
0x1b2e   : > { %3035 = vst [vmem:[#allocation3] sm:$0x1] %v3034_v29 }
0x1b2f PF: > { %s3036_s23 = sadd.s32 2, %s7780_s26 }
0x1b30   : > { %s7878_s24 = sld [smem:[#allocation7 + %s3036_s23]] }
0x1b36   : > { %p3830_p7 = scmp.lt.s32.totalorder %s7878_s24, 0 }
0x1b37   : > { %s3044_s20 = sadd.s32 (!%p3830_p7), %s6964_s0, %s7878_s24  ;;  %v6682_v30 = vmov (!%p3830_p7), 0.0|0.0   ;;  %vm6683_vm6 = vmmov (!%p3830_p7), 0   ;;  %v6684_v31 = vmov (!%p3830_p7), 0.0   ;;  %s3042_s26 = scalar_lea.vmem (!%p3830_p7), [#allocation2], %s7878_s24  ;;  %v3137_v61 = vld [vmem:[#allocation3] sm:$0x1] (!%p3830_p7) }
0x1b38   : > { %3041 = sbr.rel (%p3830_p7) target bundleno = 7229 (0x1c3d), region = 136  ;;  %6154 = vmatprep.subr.bf16.mxu0 (!%p3830_p7), %v6682_v30  ;;  %s7883_s18 = sld [smem:[#allocation6 + %s3044_s20]] (!%p3830_p7)  ;;  %5363 = vmatprep.mubr.msk.f32.mxu0 (!%p3830_p7), %vm6683_vm6, %v6684_v31  ;;  %v3043_v56 = vld [vmem:[%s3042_s26] sm:$0x1] (!%p3830_p7) }
0x1b3e   : > { %s3831_s25 = sshll.u32 (!%p3830_p7), %s7883_s18, 7  ;;  %s3064_s27 = scalar_lea.vmem (!%p3830_p7), %s8101_s7, %s7883_s18 }
0x1b3f   : > { %s7886_s10 = scalar_lea.vmem [#allocation13], %s3831_s25  ;;  %v3065_v57 = vld [vmem:[%s3064_s27] sm:$0x1] }
0x1b40   : > { %v3048_v32 = vld [vmem:[%s7886_s10] sm:$0xff]  ;;  %v3049_v33 = vld [vmem:[%s7886_s10 + $0x8] sm:$0xff]  ;;  %v3050_v34 = vld [vmem:[%s7886_s10 + $0x10] sm:$0xff] }
0x1b41   : > { %v6155_v35 = vpack.c.bf16 %v3049_v33, %v3048_v32  ;;  %v3051_v36 = vld [vmem:[%s7886_s10 + $0x18] sm:$0xff]  ;;  %v3052_v38 = vld [vmem:[%s7886_s10 + $0x20] sm:$0xff]  ;;  %v3053_v39 = vld [vmem:[%s7886_s10 + $0x28] sm:$0xff] }
0x1b42   : > { %v6158_v37 = vpack.c.bf16 %v3051_v36, %v3050_v34  ;;  %v6161_v40 = vpack.c.bf16 %v3053_v39, %v3052_v38  ;;  %v3054_v41 = vld [vmem:[%s7886_s10 + $0x30] sm:$0xff]  ;;  %v3055_v42 = vld [vmem:[%s7886_s10 + $0x38] sm:$0xff]  ;;  %v3056_v44 = vld [vmem:[%s7886_s10 + $0x40] sm:$0xff] }
0x1b43   : > { %6156 = vmatpush3.bf16.msra.mxu0 %v6155_v35  ;;  %v6164_v43 = vpack.c.bf16 %v3055_v42, %v3054_v41  ;;  %v3057_v45 = vld [vmem:[%s7886_s10 + $0x48] sm:$0xff]  ;;  %v3058_v47 = vld [vmem:[%s7886_s10 + $0x50] sm:$0xff]  ;;  %v3059_v48 = vld [vmem:[%s7886_s10 + $0x58] sm:$0xff] }
0x1b44   : > { %6157 = vmatprep.subr.bf16.mxu0 %v6682_v30  ;;  %v6167_v46 = vpack.c.bf16 %v3057_v45, %v3056_v44  ;;  %v6170_v49 = vpack.c.bf16 %v3059_v48, %v3058_v47  ;;  %v3060_v50 = vld [vmem:[%s7886_s10 + $0x60] sm:$0xff]  ;;  %v3061_v51 = vld [vmem:[%s7886_s10 + $0x68] sm:$0xff]  ;;  %v3062_v53 = vld [vmem:[%s7886_s10 + $0x70] sm:$0xff] }
0x1b45   : > { %v6173_v52 = vpack.c.bf16 %v3061_v51, %v3060_v50  ;;  %v3063_v54 = vld [vmem:[%s7886_s10 + $0x78] sm:$0xff] }
0x1b46   : > { %v6176_v55 = vpack.c.bf16 %v3063_v54, %v3062_v53 }
0x1b47   : > { %6159 = vmatpush3.bf16.msra.mxu0 %v6158_v37 }
0x1b48   : > { %6160 = vmatprep.subr.bf16.mxu0 %v6682_v30 }
0x1b4b   : > { %6162 = vmatpush3.bf16.msra.mxu0 %v6161_v40 }
0x1b4c   : > { %6163 = vmatprep.subr.bf16.mxu0 %v6682_v30 }
0x1b4f   : > { %6165 = vmatpush3.bf16.msra.mxu0 %v6164_v43 }
0x1b50   : > { %6166 = vmatprep.subr.bf16.mxu0 %v6682_v30 }
0x1b53   : > { %6168 = vmatpush3.bf16.msra.mxu0 %v6167_v46 }
0x1b54   : > { %6169 = vmatprep.subr.bf16.mxu0 %v6682_v30 }
0x1b57   : > { %6171 = vmatpush3.bf16.msra.mxu0 %v6170_v49 }
0x1b58   : > { %6172 = vmatprep.subr.bf16.mxu0 %v6682_v30 }
0x1b5b   : > { %6174 = vmatpush3.bf16.msra.mxu0 %v6173_v52 }
0x1b5c   : > { %6175 = vmatprep.subr.bf16.mxu0 %v6682_v30 }
0x1b5f   : > { %6177 = vmatpush3.bf16.msra.mxu0 %v6176_v55 }
0x1b62   : > { %5364 = vmatmul.mubr.f32.vlgmr.msra.gmra.mrb[0].mxu0 %v3043_v56 }
0x1c35   : > { %v3132_v58 = vpop.f32.mrb[0].mxu0 }
0x1c36   : > { %v3133_v59 = vadd.f32 %v3132_v58, %v3065_v57  ;;  %v5365_v60 = vpop.f32.mrb[1].mxu0 }
0x1c38   : > { %v3136_v62 = vmax.f32 %v3133_v59, 0.0 }
0x1c3a   : > { %v3138_v63 = vmax.f32 %v3137_v61, %v3136_v62 }
0x1c3c   : > { %3139 = vst [vmem:[#allocation3] sm:$0x1] %v3138_v63 }
0x1c3d PF: > { %6178 = vmatprep.subr.bf16.mxu0 %v6619_v0  ;;  %s3142_s16 = sadd.s32 7, %s6964_s0  ;;  %5398 = vmatprep.mubr.msk.f32.mxu0 %vm6620_vm0, %v6621_v1  ;;  %v3144_v26 = vld [vmem:[%s6949_s11 + $0x7] sm:$0x1] }
0x1c3e   : > { %s7913_s22 = sld [smem:[#allocation5 + %s3142_s16]]  ;;  %s7915_s23 = smul.u32 3, %s3142_s16 }
0x1c40   : > { %s7918_s24 = sld [smem:[#allocation7 + %s7915_s23]] }
0x1c43   : > { %v3140_v2 = vld [vmem:[#allocation3] sm:$0x1] }
0x1c44   : > { %3141 = vst [vmem:[#allocation2 + $0x6] sm:$0x1] %v3140_v2  ;;  %s3832_s20 = sshll.u32 %s7913_s22, 7  ;;  %s3163_s26 = scalar_lea.vmem %s8099_s5, %s7913_s22 }
0x1c45   : > { %s7921_s18 = scalar_lea.vmem [#allocation11], %s3832_s20  ;;  %v3164_v27 = vld [vmem:[%s3163_s26] sm:$0x1] }
0x1c46   : > { %v3147_v1 = vld [vmem:[%s7921_s18] sm:$0xff]  ;;  %v3148_v3 = vld [vmem:[%s7921_s18 + $0x8] sm:$0xff]  ;;  %v3149_v4 = vld [vmem:[%s7921_s18 + $0x10] sm:$0xff]  ;;  %p3833_p11 = scmp.lt.s32.totalorder %s7918_s24, 0 }
0x1c47   : > { %v6179_v5 = vpack.c.bf16 %v3148_v3, %v3147_v1  ;;  %v3150_v6 = vld [vmem:[%s7921_s18 + $0x18] sm:$0xff]  ;;  %v3151_v8 = vld [vmem:[%s7921_s18 + $0x20] sm:$0xff]  ;;  %v3152_v9 = vld [vmem:[%s7921_s18 + $0x28] sm:$0xff]  ;;  %s3245_s21 = sadd.s32 (!%p3833_p11), %s6964_s0, %s7918_s24  ;;  %vm6686_vm0 = vmmov (!%p3833_p11), 0   ;;  %v6687_v32 = vmov (!%p3833_p11), 0.0   ;;  %s3243_s16 = scalar_lea.vmem (!%p3833_p11), [#allocation2], %s7918_s24 }
0x1c48   : > { %v6182_v7 = vpack.c.bf16 %v3150_v6, %v3149_v4  ;;  %v6185_v10 = vpack.c.bf16 %v3152_v9, %v3151_v8  ;;  %v3153_v11 = vld [vmem:[%s7921_s18 + $0x30] sm:$0xff]  ;;  %v3154_v12 = vld [vmem:[%s7921_s18 + $0x38] sm:$0xff]  ;;  %v3155_v14 = vld [vmem:[%s7921_s18 + $0x40] sm:$0xff]  ;;  %s7954_s11 = sld [smem:[#allocation6 + %s3245_s21]] (!%p3833_p11) }
0x1c49   : > { %6180 = vmatpush3.bf16.msra.mxu0 %v6179_v5  ;;  %v6188_v13 = vpack.c.bf16 %v3154_v12, %v3153_v11  ;;  %v3156_v15 = vld [vmem:[%s7921_s18 + $0x48] sm:$0xff]  ;;  %v3157_v17 = vld [vmem:[%s7921_s18 + $0x50] sm:$0xff]  ;;  %v3158_v18 = vld [vmem:[%s7921_s18 + $0x58] sm:$0xff] }
0x1c4a   : > { %6181 = vmatprep.subr.bf16.mxu0 %v6619_v0  ;;  %v6191_v16 = vpack.c.bf16 %v3156_v15, %v3155_v14  ;;  %v6194_v19 = vpack.c.bf16 %v3158_v18, %v3157_v17  ;;  %v3159_v20 = vld [vmem:[%s7921_s18 + $0x60] sm:$0xff]  ;;  %v3160_v21 = vld [vmem:[%s7921_s18 + $0x68] sm:$0xff]  ;;  %v3161_v23 = vld [vmem:[%s7921_s18 + $0x70] sm:$0xff] }
0x1c4b   : > { %v6197_v22 = vpack.c.bf16 %v3160_v21, %v3159_v20  ;;  %v3162_v24 = vld [vmem:[%s7921_s18 + $0x78] sm:$0xff]  ;;  %v3244_v57 = vld [vmem:[%s3243_s16] sm:$0x1] (!%p3833_p11) }
0x1c4c   : > { %v6200_v25 = vpack.c.bf16 %v3162_v24, %v3161_v23 }
0x1c4d   : > { %6183 = vmatpush3.bf16.msra.mxu0 %v6182_v7 }
0x1c4e   : > { %6184 = vmatprep.subr.bf16.mxu0 %v6619_v0  ;;  %s3834_s29 = sshll.u32 (!%p3833_p11), %s7954_s11, 7  ;;  %s3265_s18 = scalar_lea.vmem (!%p3833_p11), %s8101_s7, %s7954_s11 }
0x1c4f   : > { %s7957_s27 = scalar_lea.vmem (!%p3833_p11), [#allocation13], %s3834_s29  ;;  %v3266_v58 = vld [vmem:[%s3265_s18] sm:$0x1] (!%p3833_p11) }
0x1c50   : > { %v3249_v33 = vld [vmem:[%s7957_s27] sm:$0xff] (!%p3833_p11)  ;;  %v3250_v34 = vld [vmem:[%s7957_s27 + $0x8] sm:$0xff] (!%p3833_p11)  ;;  %v3251_v35 = vld [vmem:[%s7957_s27 + $0x10] sm:$0xff] (!%p3833_p11) }
0x1c51   : > { %6186 = vmatpush3.bf16.msra.mxu0 %v6185_v10  ;;  %v6203_v36 = vpack.c.bf16 (!%p3833_p11), %v3250_v34, %v3249_v33  ;;  %v3252_v37 = vld [vmem:[%s7957_s27 + $0x18] sm:$0xff] (!%p3833_p11)  ;;  %v3253_v39 = vld [vmem:[%s7957_s27 + $0x20] sm:$0xff] (!%p3833_p11)  ;;  %v3254_v40 = vld [vmem:[%s7957_s27 + $0x28] sm:$0xff] (!%p3833_p11) }
0x1c52   : > { %6187 = vmatprep.subr.bf16.mxu0 %v6619_v0  ;;  %v6206_v38 = vpack.c.bf16 (!%p3833_p11), %v3252_v37, %v3251_v35  ;;  %v6209_v41 = vpack.c.bf16 (!%p3833_p11), %v3254_v40, %v3253_v39  ;;  %v3255_v42 = vld [vmem:[%s7957_s27 + $0x30] sm:$0xff] (!%p3833_p11)  ;;  %v3256_v43 = vld [vmem:[%s7957_s27 + $0x38] sm:$0xff] (!%p3833_p11)  ;;  %v3257_v45 = vld [vmem:[%s7957_s27 + $0x40] sm:$0xff] (!%p3833_p11) }
0x1c53   : > { %v6212_v44 = vpack.c.bf16 (!%p3833_p11), %v3256_v43, %v3255_v42  ;;  %v3258_v46 = vld [vmem:[%s7957_s27 + $0x48] sm:$0xff] (!%p3833_p11)  ;;  %v3259_v48 = vld [vmem:[%s7957_s27 + $0x50] sm:$0xff] (!%p3833_p11)  ;;  %v3260_v49 = vld [vmem:[%s7957_s27 + $0x58] sm:$0xff] (!%p3833_p11) }
0x1c54   : > { %v6215_v47 = vpack.c.bf16 (!%p3833_p11), %v3258_v46, %v3257_v45  ;;  %v6218_v50 = vpack.c.bf16 (!%p3833_p11), %v3260_v49, %v3259_v48  ;;  %v3261_v51 = vld [vmem:[%s7957_s27 + $0x60] sm:$0xff] (!%p3833_p11)  ;;  %v3262_v52 = vld [vmem:[%s7957_s27 + $0x68] sm:$0xff] (!%p3833_p11)  ;;  %v3263_v54 = vld [vmem:[%s7957_s27 + $0x70] sm:$0xff] (!%p3833_p11) }
0x1c55   : > { %6189 = vmatpush3.bf16.msra.mxu0 %v6188_v13  ;;  %v6221_v53 = vpack.c.bf16 (!%p3833_p11), %v3262_v52, %v3261_v51  ;;  %v3264_v55 = vld [vmem:[%s7957_s27 + $0x78] sm:$0xff] (!%p3833_p11) }
0x1c56   : > { %6190 = vmatprep.subr.bf16.mxu0 %v6619_v0  ;;  %v6224_v56 = vpack.c.bf16 (!%p3833_p11), %v3264_v55, %v3263_v54 }
0x1c59   : > { %6192 = vmatpush3.bf16.msra.mxu0 %v6191_v16 }
0x1c5a   : > { %6193 = vmatprep.subr.bf16.mxu0 %v6619_v0 }
0x1c5d   : > { %6195 = vmatpush3.bf16.msra.mxu0 %v6194_v19 }
0x1c5e   : > { %6196 = vmatprep.subr.bf16.mxu0 %v6619_v0 }
0x1c61   : > { %6198 = vmatpush3.bf16.msra.mxu0 %v6197_v22 }
0x1c62   : > { %6199 = vmatprep.subr.bf16.mxu0 %v6619_v0  ;;  %v6685_v0 = vmov (!%p3833_p11), 0.0|0.0  }
0x1c65   : > { %6201 = vmatpush3.bf16.msra.mxu0 %v6200_v25 }
0x1c66   : > { %6202 = vmatprep.subr.bf16.mxu0 (!%p3833_p11), %v6685_v0 }
0x1c68   : > { %5399 = vmatmul.mubr.f32.vlgmr.msra.gmra.mrb[0].mxu0 %v3144_v26 }
0x1c69   : > { %5433 = vmatprep.mubr.msk.f32.mxu0 (!%p3833_p11), %vm6686_vm0, %v6687_v32  ;;  %6204 = vmatpush3.bf16.msra.mxu0 (!%p3833_p11), %v6203_v36 }
0x1c6a   : > { %6205 = vmatprep.subr.bf16.mxu0 (!%p3833_p11), %v6685_v0 }
0x1c6d   : > { %6207 = vmatpush3.bf16.msra.mxu0 (!%p3833_p11), %v6206_v38 }
0x1c6e   : > { %6208 = vmatprep.subr.bf16.mxu0 (!%p3833_p11), %v6685_v0 }
0x1c71   : > { %6210 = vmatpush3.bf16.msra.mxu0 (!%p3833_p11), %v6209_v41 }
0x1c72   : > { %6211 = vmatprep.subr.bf16.mxu0 (!%p3833_p11), %v6685_v0 }
0x1c75   : > { %6213 = vmatpush3.bf16.msra.mxu0 (!%p3833_p11), %v6212_v44 }
0x1c76   : > { %6214 = vmatprep.subr.bf16.mxu0 (!%p3833_p11), %v6685_v0 }
0x1c79   : > { %6216 = vmatpush3.bf16.msra.mxu0 (!%p3833_p11), %v6215_v47 }
0x1c7a   : > { %6217 = vmatprep.subr.bf16.mxu0 (!%p3833_p11), %v6685_v0 }
0x1c7d   : > { %6219 = vmatpush3.bf16.msra.mxu0 (!%p3833_p11), %v6218_v50 }
0x1c7e   : > { %6220 = vmatprep.subr.bf16.mxu0 (!%p3833_p11), %v6685_v0 }
0x1c81   : > { %6222 = vmatpush3.bf16.msra.mxu0 (!%p3833_p11), %v6221_v53 }
0x1c82   : > { %6223 = vmatprep.subr.bf16.mxu0 (!%p3833_p11), %v6685_v0 }
0x1c85   : > { %6225 = vmatpush3.bf16.msra.mxu0 (!%p3833_p11), %v6224_v56 }
0x1d3a   : > { %3242 = sbr.rel (%p3833_p11) target bundleno = 7703 (0x1e17), region = 140 }
0x1d3b   : > { %v3231_v28 = vpop.f32.mrb[0].mxu0 }
0x1d3c   : > { %v3232_v29 = vadd.f32 %v3231_v28, %v3164_v27  ;;  %v5400_v30 = vpop.f32.mrb[1].mxu0  ;;  %5434 = vmatmul.mubr.f32.vlgmr.msra.gmra.mrb[0].mxu0 (!%p3833_p11), %v3244_v57 }
0x1d3e   : > { %v3235_v31 = vmax.f32 %v3232_v29, 0.0 }
0x1d40   : > { %3236 = vst [vmem:[#allocation3] sm:$0x1] %v3235_v31 }
0x1d47   : > { %v3338_v62 = vld [vmem:[#allocation3] sm:$0x1] }
0x1e0f   : > { %v3333_v59 = vpop.f32.mrb[0].mxu0 }
0x1e10   : > { %v3334_v60 = vadd.f32 %v3333_v59, %v3266_v58  ;;  %v5435_v61 = vpop.f32.mrb[1].mxu0 }
0x1e12   : > { %v3337_v63 = vmax.f32 %v3334_v60, 0.0 }
0x1e14   : > { %v3339_v2 = vmax.f32 %v3338_v62, %v3337_v63 }
0x1e16   : > { %3340 = vst [vmem:[#allocation3] sm:$0x1] %v3339_v2 }
0x1e17 PF: > { %s3341_s25 = sadd.s32 1, %s7915_s23 }
0x1e18   : > { %s7981_s10 = sld [smem:[#allocation7 + %s3341_s25]] }
0x1e1e   : > { %p3835_p8 = scmp.lt.s32.totalorder %s7981_s10, 0 }
0x1e1f   : > { %s3349_s24 = sadd.s32 (!%p3835_p8), %s6964_s0, %s7981_s10  ;;  %v6688_v1 = vmov (!%p3835_p8), 0.0|0.0   ;;  %vm6689_vm7 = vmmov (!%p3835_p8), 0   ;;  %v6690_v3 = vmov (!%p3835_p8), 0.0   ;;  %s3347_s29 = scalar_lea.vmem (!%p3835_p8), [#allocation2], %s7981_s10  ;;  %v3442_v32 = vld [vmem:[#allocation3] sm:$0x1] (!%p3835_p8) }
0x1e20   : > { %3346 = sbr.rel (%p3835_p8) target bundleno = 7973 (0x1f25), region = 144  ;;  %6226 = vmatprep.subr.bf16.mxu0 (!%p3835_p8), %v6688_v1  ;;  %s7986_s26 = sld [smem:[#allocation6 + %s3349_s24]] (!%p3835_p8)  ;;  %5468 = vmatprep.mubr.msk.f32.mxu0 (!%p3835_p8), %vm6689_vm7, %v6690_v3  ;;  %v3348_v28 = vld [vmem:[%s3347_s29] sm:$0x1] (!%p3835_p8) }
0x1e26   : > { %s3836_s21 = sshll.u32 (!%p3835_p8), %s7986_s26, 7  ;;  %s3369_s22 = scalar_lea.vmem (!%p3835_p8), %s8101_s7, %s7986_s26 }
0x1e27   : > { %s7989_s11 = scalar_lea.vmem [#allocation13], %s3836_s21  ;;  %v3370_v29 = vld [vmem:[%s3369_s22] sm:$0x1] }
0x1e28   : > { %v3353_v4 = vld [vmem:[%s7989_s11] sm:$0xff]  ;;  %v3354_v5 = vld [vmem:[%s7989_s11 + $0x8] sm:$0xff]  ;;  %v3355_v6 = vld [vmem:[%s7989_s11 + $0x10] sm:$0xff] }
0x1e29   : > { %v6227_v7 = vpack.c.bf16 %v3354_v5, %v3353_v4  ;;  %v3356_v8 = vld [vmem:[%s7989_s11 + $0x18] sm:$0xff]  ;;  %v3357_v10 = vld [vmem:[%s7989_s11 + $0x20] sm:$0xff]  ;;  %v3358_v11 = vld [vmem:[%s7989_s11 + $0x28] sm:$0xff] }
0x1e2a   : > { %v6230_v9 = vpack.c.bf16 %v3356_v8, %v3355_v6  ;;  %v6233_v12 = vpack.c.bf16 %v3358_v11, %v3357_v10  ;;  %v3359_v13 = vld [vmem:[%s7989_s11 + $0x30] sm:$0xff]  ;;  %v3360_v14 = vld [vmem:[%s7989_s11 + $0x38] sm:$0xff]  ;;  %v3361_v16 = vld [vmem:[%s7989_s11 + $0x40] sm:$0xff] }
0x1e2b   : > { %6228 = vmatpush3.bf16.msra.mxu0 %v6227_v7  ;;  %v6236_v15 = vpack.c.bf16 %v3360_v14, %v3359_v13  ;;  %v3362_v17 = vld [vmem:[%s7989_s11 + $0x48] sm:$0xff]  ;;  %v3363_v19 = vld [vmem:[%s7989_s11 + $0x50] sm:$0xff]  ;;  %v3364_v20 = vld [vmem:[%s7989_s11 + $0x58] sm:$0xff] }
0x1e2c   : > { %6229 = vmatprep.subr.bf16.mxu0 %v6688_v1  ;;  %v6239_v18 = vpack.c.bf16 %v3362_v17, %v3361_v16  ;;  %v6242_v21 = vpack.c.bf16 %v3364_v20, %v3363_v19  ;;  %v3365_v22 = vld [vmem:[%s7989_s11 + $0x60] sm:$0xff]  ;;  %v3366_v23 = vld [vmem:[%s7989_s11 + $0x68] sm:$0xff]  ;;  %v3367_v25 = vld [vmem:[%s7989_s11 + $0x70] sm:$0xff] }
0x1e2d   : > { %v6245_v24 = vpack.c.bf16 %v3366_v23, %v3365_v22  ;;  %v3368_v26 = vld [vmem:[%s7989_s11 + $0x78] sm:$0xff] }
0x1e2e   : > { %v6248_v27 = vpack.c.bf16 %v3368_v26, %v3367_v25 }
0x1e2f   : > { %6231 = vmatpush3.bf16.msra.mxu0 %v6230_v9 }
0x1e30   : > { %6232 = vmatprep.subr.bf16.mxu0 %v6688_v1 }
0x1e33   : > { %6234 = vmatpush3.bf16.msra.mxu0 %v6233_v12 }
0x1e34   : > { %6235 = vmatprep.subr.bf16.mxu0 %v6688_v1 }
0x1e37   : > { %6237 = vmatpush3.bf16.msra.mxu0 %v6236_v15 }
0x1e38   : > { %6238 = vmatprep.subr.bf16.mxu0 %v6688_v1 }
0x1e3b   : > { %6240 = vmatpush3.bf16.msra.mxu0 %v6239_v18 }
0x1e3c   : > { %6241 = vmatprep.subr.bf16.mxu0 %v6688_v1 }
0x1e3f   : > { %6243 = vmatpush3.bf16.msra.mxu0 %v6242_v21 }
0x1e40   : > { %6244 = vmatprep.subr.bf16.mxu0 %v6688_v1 }
0x1e43   : > { %6246 = vmatpush3.bf16.msra.mxu0 %v6245_v24 }
0x1e44   : > { %6247 = vmatprep.subr.bf16.mxu0 %v6688_v1 }
0x1e47   : > { %6249 = vmatpush3.bf16.msra.mxu0 %v6248_v27 }
0x1e4a   : > { %5469 = vmatmul.mubr.f32.vlgmr.msra.gmra.mrb[0].mxu0 %v3348_v28 }
0x1f1d   : > { %v3437_v30 = vpop.f32.mrb[0].mxu0 }
0x1f1e   : > { %v3438_v31 = vadd.f32 %v3437_v30, %v3370_v29  ;;  %v5470_v0 = vpop.f32.mrb[1].mxu0 }
0x1f20   : > { %v3441_v33 = vmax.f32 %v3438_v31, 0.0 }
0x1f22   : > { %v3443_v34 = vmax.f32 %v3442_v32, %v3441_v33 }
0x1f24   : > { %3444 = vst [vmem:[#allocation3] sm:$0x1] %v3443_v34 }
0x1f25 PF: > { %s3445_s20 = sadd.s32 2, %s7915_s23 }
0x1f26   : > { %s8013_s18 = sld [smem:[#allocation7 + %s3445_s20]] }
0x1f2c   : > { %p3837_p1 = scmp.lt.s32.totalorder %s8013_s18, 0 }
0x1f2d   : > { %s3453_s25 = sadd.s32 (!%p3837_p1), %s6964_s0, %s8013_s18  ;;  %v6691_v35 = vmov (!%p3837_p1), 0.0|0.0   ;;  %vm6692_vm8 = vmmov (!%p3837_p1), 0   ;;  %v6693_v36 = vmov (!%p3837_p1), 0.0   ;;  %s3451_s0 = scalar_lea.vmem (!%p3837_p1), [#allocation2], %s8013_s18  ;;  %v3546_v3 = vld [vmem:[#allocation3] sm:$0x1] (!%p3837_p1) }
0x1f2e   : > { %3450 = sbr.rel (%p3837_p1) target bundleno = 8243 (0x2033), region = 148  ;;  %6250 = vmatprep.subr.bf16.mxu0 (!%p3837_p1), %v6691_v35  ;;  %s8018_s10 = sld [smem:[#allocation6 + %s3453_s25]] (!%p3837_p1)  ;;  %5503 = vmatprep.mubr.msk.f32.mxu0 (!%p3837_p1), %vm6692_vm8, %v6693_v36  ;;  %v3452_v61 = vld [vmem:[%s3451_s0] sm:$0x1] (!%p3837_p1) }
0x1f34   : > { %s3838_s24 = sshll.u32 (!%p3837_p1), %s8018_s10, 7  ;;  %s3473_s11 = scalar_lea.vmem (!%p3837_p1), %s8101_s7, %s8018_s10 }
0x1f35   : > { %s8021_s26 = scalar_lea.vmem [#allocation13], %s3838_s24  ;;  %v3474_v62 = vld [vmem:[%s3473_s11] sm:$0x1] }
0x1f36   : > { %v3457_v37 = vld [vmem:[%s8021_s26] sm:$0xff]  ;;  %v3458_v38 = vld [vmem:[%s8021_s26 + $0x8] sm:$0xff]  ;;  %v3459_v39 = vld [vmem:[%s8021_s26 + $0x10] sm:$0xff] }
0x1f37   : > { %v6251_v40 = vpack.c.bf16 %v3458_v38, %v3457_v37  ;;  %v3460_v41 = vld [vmem:[%s8021_s26 + $0x18] sm:$0xff]  ;;  %v3461_v43 = vld [vmem:[%s8021_s26 + $0x20] sm:$0xff]  ;;  %v3462_v44 = vld [vmem:[%s8021_s26 + $0x28] sm:$0xff] }
0x1f38   : > { %v6254_v42 = vpack.c.bf16 %v3460_v41, %v3459_v39  ;;  %v6257_v45 = vpack.c.bf16 %v3462_v44, %v3461_v43  ;;  %v3463_v46 = vld [vmem:[%s8021_s26 + $0x30] sm:$0xff]  ;;  %v3464_v47 = vld [vmem:[%s8021_s26 + $0x38] sm:$0xff]  ;;  %v3465_v49 = vld [vmem:[%s8021_s26 + $0x40] sm:$0xff] }
0x1f39   : > { %6252 = vmatpush3.bf16.msra.mxu0 %v6251_v40  ;;  %v6260_v48 = vpack.c.bf16 %v3464_v47, %v3463_v46  ;;  %v3466_v50 = vld [vmem:[%s8021_s26 + $0x48] sm:$0xff]  ;;  %v3467_v52 = vld [vmem:[%s8021_s26 + $0x50] sm:$0xff]  ;;  %v3468_v53 = vld [vmem:[%s8021_s26 + $0x58] sm:$0xff] }
0x1f3a   : > { %6253 = vmatprep.subr.bf16.mxu0 %v6691_v35  ;;  %v6263_v51 = vpack.c.bf16 %v3466_v50, %v3465_v49  ;;  %v6266_v54 = vpack.c.bf16 %v3468_v53, %v3467_v52  ;;  %v3469_v55 = vld [vmem:[%s8021_s26 + $0x60] sm:$0xff]  ;;  %v3470_v56 = vld [vmem:[%s8021_s26 + $0x68] sm:$0xff]  ;;  %v3471_v58 = vld [vmem:[%s8021_s26 + $0x70] sm:$0xff] }
0x1f3b   : > { %v6269_v57 = vpack.c.bf16 %v3470_v56, %v3469_v55  ;;  %v3472_v59 = vld [vmem:[%s8021_s26 + $0x78] sm:$0xff] }
0x1f3c   : > { %v6272_v60 = vpack.c.bf16 %v3472_v59, %v3471_v58 }
0x1f3d   : > { %6255 = vmatpush3.bf16.msra.mxu0 %v6254_v42 }
0x1f3e   : > { %6256 = vmatprep.subr.bf16.mxu0 %v6691_v35 }
0x1f41   : > { %6258 = vmatpush3.bf16.msra.mxu0 %v6257_v45 }
0x1f42   : > { %6259 = vmatprep.subr.bf16.mxu0 %v6691_v35 }
0x1f45   : > { %6261 = vmatpush3.bf16.msra.mxu0 %v6260_v48 }
0x1f46   : > { %6262 = vmatprep.subr.bf16.mxu0 %v6691_v35 }
0x1f49   : > { %6264 = vmatpush3.bf16.msra.mxu0 %v6263_v51 }
0x1f4a   : > { %6265 = vmatprep.subr.bf16.mxu0 %v6691_v35 }
0x1f4d   : > { %6267 = vmatpush3.bf16.msra.mxu0 %v6266_v54 }
0x1f4e   : > { %6268 = vmatprep.subr.bf16.mxu0 %v6691_v35 }
0x1f51   : > { %6270 = vmatpush3.bf16.msra.mxu0 %v6269_v57 }
0x1f52   : > { %6271 = vmatprep.subr.bf16.mxu0 %v6691_v35 }
0x1f55   : > { %6273 = vmatpush3.bf16.msra.mxu0 %v6272_v60 }
0x1f58   : > { %5504 = vmatmul.mubr.f32.vlgmr.msra.gmra.mrb[0].mxu0 %v3452_v61 }
0x202b   : > { %v3541_v63 = vpop.f32.mrb[0].mxu0 }
0x202c   : > { %v3542_v2 = vadd.f32 %v3541_v63, %v3474_v62  ;;  %v5505_v1 = vpop.f32.mrb[1].mxu0 }
0x202e   : > { %v3545_v4 = vmax.f32 %v3542_v2, 0.0 }
0x2030   : > { %v3547_v5 = vmax.f32 %v3546_v3, %v3545_v4 }
0x2032   : > { %3548 = vst [vmem:[#allocation3] sm:$0x1] %v3547_v5 }
0x2033 PF: > { %s3839_s29 = sshll.u32 %s6797_s2, 4  ;;  %s3566_s27 = sshll.u32 %s278_s9, 4  ;;  %s8052_s27 = int_to_ptr.vmem [resolvable:$true] %s3566_s27 }
0x2034   : > { %s8050_s20 = scalar_lea.hbm %s8102_s8, %s3839_s29  ;;  %s3554_s18 = scalar_lea.sflag [#allocation10], %s6945_s28 }
0x2035   : > { %s6537_s25 = scalar_lea.vmem %s8052_s27, 16  ;;  %p8118_p13 = scmp.ne.s32.totalorder %s8113_s15, 0 }
0x2036   : > { %p6538_p5 = scmp.ne.s32.totalorder %s8052_s27, %s6537_s25  ;;  %s6694_s2 = smov [#allocation14]  }
0x2037   : > { %s6541_s10 = sshll.u32 %s6694_s2, 4  ;;  %s6542_s10 = int_to_ptr.vmem [resolvable:$false] %s6541_s10 }
0x2038   : > { %p6539_p0 = pnand %p6538_p5, %p8118_p13  ;;  %s6543_s24 = scalar_lea.vmem %s6542_s10, 32 }
0x2039   : > { %v3549_v6 = vld [vmem:[#allocation3] sm:$0x1]  ;;  %p6544_p6 = scmp.lt.s32.totalorder %s8052_s27, %s6542_s10  ;;  %p6545_p9 = scmp.lt.s32.totalorder %s6543_s24, %s6537_s25 }
0x203a   : > { %3550 = vst [vmem:[#allocation2 + $0x7] sm:$0x1] %v3549_v6  ;;  %p6540_p3 = pneg %p6539_p0 }
0x203b   : > { %p6546_p10 = por %p6545_p9, %p6544_p6 }
0x203d   : > { %p6547_p12 = pnand %p6546_p10, %p6540_p3 }
0x2041   : > { %v3551_v7 = vld [vmem:[#allocation2 + $0x7] sm:$0x1] }
0x2042   : > { %3552 = vst [vmem:[%s278_s9] sm:$0x1] %v3551_v7 }
0x2043   : > { %6550 = shalt.err (!%p6547_p12)
}
0x2044   : > { %s6551_s28 = scalar_lea.hbm %s8050_s20, 16  ;;  %s6555_s0 = scalar_lea.hbm %s8102_s8, 32 }
0x2045   : > { %p6552_p2 = scmp.ne.s32.totalorder %s8050_s20, %s6551_s28  ;;  %p6556_p11 = scmp.lt.u32.totalorder %s8050_s20, %s8102_s8 }
0x2046   : > { %p6557_p8 = scmp.lt.u32.totalorder %s6555_s0, %s6551_s28  ;;  %p6559_p5 = scmp.lt.u32.totalorder %s6551_s28, %s8050_s20 }
0x2047   : > { %p6553_p4 = pnand %p6552_p2, %p8118_p13 }
0x2048   : > { %p6558_p1 = por %p6557_p8, %p6556_p11 }
0x2049   : > { %p6554_p7 = pneg %p6553_p4 }
0x204a   : > { %p6560_p0 = por %p6559_p5, %p6558_p1 }
0x204c   : > { %p6561_p3 = pnand %p6560_p0, %p6554_p7 }
0x204e   : > { %6564 = shalt.err (!%p6561_p3)
}
0x204f   : > { %6284 = dma.vmem_to_hbm [thread:$0]  (%p8118_p13), %s8052_s27, 16, %s8050_s20, %s3554_s18  }
0x2050 PF: > { %s3578_s11 = sand.u32 1, %s6597_s1   ;;  %p8119_p6 = scmp.ne.s32.totalorder %s8109_s17, 0 }
0x2051   : > { %p8120_p9 = scmp.ge.s32.totalorder %s6609_s14, 2  ;;  %s3579_s29 = scalar_lea.sflag [#allocation10], %s3578_s11 }
0x2053   : > { %p6298_p10 = pnand %p8120_p9, %p8119_p6 }
0x2055   : > { %6592 = dma.done.wait (!%p6298_p10), %s3579_s29, 16  }
0x2056   : > { %6594 = vsyncadd (!%p6298_p10), %s3579_s29, 4294967280  ;;  %p30_p12 = scmp.ge.s32.totalorder %s6886_s30, 4   ;;  %s8121_s1 = smov %s6601_s12 }
0x2057   : > { %s8122_s12 = smov %s6605_s13  ;;  %s8123_s13 = smov %s6902_s19 }
0x2058   : > { %s8124_s14 = smov %s6886_s30  ;;  %32 = sbr.rel (!%p30_p12) target bundleno = 32 (0x20), region = 277 }
0x205f   :  { %3583 = vsyncpa [#allocation9], 1 }
0x2060   :  { %3585 = vsyncpa [#allocation9 + $0x1], 1 }
0x2061   :  { %3586 = vsyncpa [#allocation12], 1 }
0x2062   :  { %3587 = vsyncpa [#allocation10], 1 }
0x2063   :  { %3589 = vsyncpa [#allocation10 + $0x1], 1 }

</bundles_post_ra>
